<compile_context>
chip_gen: v7x
topology: tpu7x:2x2x1
jax: 0.10.0
libtpu: 0.0.40
codegen_flags: <defaults>
</compile_context>

<pallas_src>
import functools

import jax
import jax.numpy as jnp
from jax import lax
from jax.experimental import pallas as pl
from jax.experimental.pallas import tpu as pltpu


def _geu_kernel(x_ref, w1_ref, b1_ref, w2_ref, b2_ref, gamma_ref, beta_ref,
                o_ref,
                h_cache, g_cache, ssum_ref, ssq_ref, scale_ref, shift_ref,
                *, batch_size):
    p = pl.program_id(0)          # 0: stats + cache pass, 1: apply pass
    i = pl.program_id(1)          # batch tile index
    n_tiles = pl.num_programs(1)

    @pl.when(p == 0)
    def _stats_pass():
        @pl.when(i == 0)
        def _init():
            ssum_ref[...] = jnp.zeros_like(ssum_ref)
            ssq_ref[...] = jnp.zeros_like(ssq_ref)

        # fc: h = x @ W1 + b1   (bf16 MXU inputs, f32 accumulate)
        h = jnp.dot(x_ref[...], w1_ref[...],
                    preferred_element_type=jnp.float32) + b1_ref[...]
        # Context_Gating.fc: g = h @ W2 + b2
        g = jnp.dot(h.astype(jnp.bfloat16), w2_ref[...],
                    preferred_element_type=jnp.float32) + b2_ref[...]

        # Cache activations so pass 1 does no matmuls and streams no x.
        h_cache[i] = h
        g_cache[i] = g

        ssum_ref[...] += jnp.sum(g, axis=0, keepdims=True)
        ssq_ref[...] += jnp.sum(g * g, axis=0, keepdims=True)

        @pl.when(i == n_tiles - 1)
        def _finalize():
            inv_b = 1.0 / batch_size
            mean = ssum_ref[...] * inv_b
            # One-pass variance can go slightly negative by cancellation; clamp.
            var = jnp.maximum(ssq_ref[...] * inv_b - mean * mean, 0.0)
            scale = gamma_ref[...] * lax.rsqrt(var + 1e-5)   # BN folded to FMA
            scale_ref[...] = scale
            shift_ref[...] = beta_ref[...] - mean * scale

    @pl.when(p == 1)
    def _apply_pass():
        h = h_cache[i]
        g = g_cache[i]
        g_bn = g * scale_ref[...] + shift_ref[...]                   # BatchNorm1d
        # GLU(cat(h, g), dim=1) == h * sigmoid(g); reciprocal goes to the EUP.
        gated = h * pl.reciprocal(1.0 + jnp.exp(-g_bn), approx=True)
        # F.normalize(p=2, dim=1, eps=1e-12) via rsqrt (no per-element divide).
        nrm2 = jnp.sum(gated * gated, axis=1, keepdims=True)
        o_ref[...] = (gated * lax.rsqrt(jnp.maximum(nrm2, 1e-24))).astype(o_ref.dtype)


def gated_embedding_unit(x, w1, b1, w2, b2, gamma, beta, *, batch_tile=None):
    """x: (B, D_in); w1: (D_in, D); w2: (D, D); b1/b2/gamma/beta: (1, D)."""
    B, D_in = x.shape
    D = w1.shape[1]
    if batch_tile is None:
        # Large tiles amortize per-grid-step overhead; 512-2048 is the sweet
        # spot per the perf review.  Clamp to B for small batches.
        batch_tile = min(B, 1024)
    assert B % batch_tile == 0, "batch must be a multiple of the batch tile"
    assert batch_tile % 8 == 0, "batch tile must be sublane aligned"
    n_tiles = B // batch_tile

    # bf16 MXU inputs (f32 accumulate); halves weight/activation DMA traffic.
    xb = x.astype(jnp.bfloat16)
    w1b = w1.astype(jnp.bfloat16)
    w2b = w2.astype(jnp.bfloat16)

    kernel = functools.partial(_geu_kernel, batch_size=B)

    const = lambda p, i: (0, 0)                 # resident weights / BN params
    # x is only needed in pass 0; pin pass 1 to block 0 so it issues no new DMAs.
    x_map = lambda p, i: (i * (1 - p), 0)
    # Pass 0 produces no output; pin its out-block index to 0 so no extra HBM
    # writeback happens before pass 1 rewrites every block in order.
    out_map = lambda p, i: (i * p, 0)

    # Matmuls are now computed exactly once per row (pass 0 only).
    flops = 2 * B * D * (D_in + D)
    transcendentals = B * D
    bytes_accessed = (xb.size * 2                       # x streamed once (bf16)
                      + (w1b.size + w2b.size) * 2
                      + (b1.size + b2.size + gamma.size + beta.size) * 4
                      + B * D * 4)                      # f32 output

    # VMEM budget: tiles (double-buffered) + resident operands + h/g caches.
    vmem_need = (2 * batch_tile * D_in * 2              # x tiles (bf16)
                 + 2 * batch_tile * D * 4               # out tiles (f32)
                 + 2 * (D_in * D + D * D) * 2           # weights (bf16)
                 + 2 * 4 * D * 4                        # biases / gamma / beta
                 + 2 * B * D * 4                        # persistent h/g caches
                 + 6 * 8 * 128 * 4)                     # BN scratch (padded)
    vmem_limit_bytes = int(min(max(32 << 20, 1.3 * vmem_need), 64 << 20))

    return pl.pallas_call(
        kernel,
        # TODO(synk): emit bf16 output if downstream tolerates it (halves the
        # largest remaining HBM stream); kept f32 to match PyTorch semantics.
        out_shape=jax.ShapeDtypeStruct((B, D), jnp.float32),
        grid_spec=pltpu.PrefetchScalarGridSpec(
            num_scalar_prefetch=0,
            grid=(2, n_tiles),
            in_specs=[
                pl.BlockSpec((batch_tile, D_in), x_map),
                pl.BlockSpec((D_in, D), const),
                pl.BlockSpec((1, D), const),
                pl.BlockSpec((D, D), const),
                pl.BlockSpec((1, D), const),
                pl.BlockSpec((1, D), const),
                pl.BlockSpec((1, D), const),
            ],
            out_specs=pl.BlockSpec((batch_tile, D), out_map),
            scratch_shapes=[
                pltpu.VMEM((n_tiles, batch_tile, D), jnp.float32),  # h cache
                pltpu.VMEM((n_tiles, batch_tile, D), jnp.float32),  # g cache
                pltpu.VMEM((1, D), jnp.float32),                    # BN sum
                pltpu.VMEM((1, D), jnp.float32),                    # BN sumsq
                pltpu.VMEM((1, D), jnp.float32),                    # BN scale
                pltpu.VMEM((1, D), jnp.float32),                    # BN shift
            ],
        ),
        compiler_params=pltpu.CompilerParams(
            # BN stats couple all batch tiles -> both axes must stay sequential.
            dimension_semantics=("arbitrary", "arbitrary"),
            vmem_limit_bytes=vmem_limit_bytes),
        cost_estimate=pl.CostEstimate(flops=flops,
                                      transcendentals=transcendentals,
                                      bytes_accessed=bytes_accessed),
    )(xb, w1b, b1, w2b, b2, gamma, beta)


if __name__ == "__main__":
    # Small but lane-dense / MXU-aligned shapes; batch_tile=512 exercises the
    # multi-tile BN accumulation and the cached apply pass.
    B, D_IN, D_OUT = 1024, 256, 128

    key = jax.random.PRNGKey(0)
    k_x, k_w1, k_b1, k_w2, k_b2, k_g, k_bt = jax.random.split(key, 7)

    x = jax.random.normal(k_x, (B, D_IN), dtype=jnp.float32)

    # nn.Linear(D_IN, D_OUT): weight stored pre-transposed as (D_IN, D_OUT).
    bound1 = 1.0 / (D_IN ** 0.5)
    w1 = jax.random.uniform(k_w1, (D_IN, D_OUT), jnp.float32, -bound1, bound1)
    b1 = jax.random.uniform(k_b1, (1, D_OUT), jnp.float32, -bound1, bound1)

    # nn.Linear(D_OUT, D_OUT) inside Context_Gating.
    bound2 = 1.0 / (D_OUT ** 0.5)
    w2 = jax.random.uniform(k_w2, (D_OUT, D_OUT), jnp.float32, -bound2, bound2)
    b2 = jax.random.uniform(k_b2, (1, D_OUT), jnp.float32, -bound2, bound2)

    # Non-trivial BN affine params to exercise the scale/shift fold.
    gamma = 1.0 + 0.1 * jax.random.normal(k_g, (1, D_OUT), jnp.float32)
    beta = 0.1 * jax.random.normal(k_bt, (1, D_OUT), jnp.float32)

    out = gated_embedding_unit(x, w1, b1, w2, b2, gamma, beta, batch_tile=512)
    jax.block_until_ready(out)

    # Pure-JAX reference (same bf16 matmul inputs, PyTorch semantics elsewhere).
    h = jnp.dot(x.astype(jnp.bfloat16), w1.astype(jnp.bfloat16),
                preferred_element_type=jnp.float32) + b1
    g = jnp.dot(h.astype(jnp.bfloat16), w2.astype(jnp.bfloat16),
                preferred_element_type=jnp.float32) + b2
    mu = g.mean(0, keepdims=True)
    var = ((g - mu) ** 2).mean(0, keepdims=True)
    gbn = (g - mu) / jnp.sqrt(var + 1e-5) * gamma + beta
    ref = h * jax.nn.sigmoid(gbn)
    ref = ref / jnp.maximum(jnp.linalg.norm(ref, axis=1, keepdims=True), 1e-12)

    assert jnp.allclose(out, ref, atol=5e-3, rtol=5e-3), \
        float(jnp.max(jnp.abs(out - ref)))
    print("KERNEL_OK")
</pallas_src>

<mosaic_0001>
module attributes {stable_mosaic.version = 11 : i64} {
  func.func @_geu_kernel(%arg0: i32, %arg1: i32, %arg2: memref<512x256xbf16, #tpu.memory_space<vmem>>, %arg3: memref<256x128xbf16, #tpu.memory_space<vmem>>, %arg4: memref<1x128xf32, #tpu.memory_space<vmem>>, %arg5: memref<128x128xbf16, #tpu.memory_space<vmem>>, %arg6: memref<1x128xf32, #tpu.memory_space<vmem>>, %arg7: memref<1x128xf32, #tpu.memory_space<vmem>>, %arg8: memref<1x128xf32, #tpu.memory_space<vmem>>, %arg9: memref<512x128xf32, #tpu.memory_space<vmem>>, %arg10: memref<2x512x128xf32, #tpu.memory_space<vmem>>, %arg11: memref<2x512x128xf32, #tpu.memory_space<vmem>>, %arg12: memref<1x128xf32, #tpu.memory_space<vmem>>, %arg13: memref<1x128xf32, #tpu.memory_space<vmem>>, %arg14: memref<1x128xf32, #tpu.memory_space<vmem>>, %arg15: memref<1x128xf32, #tpu.memory_space<vmem>>) attributes {dimension_semantics = [#tpu.dimension_semantics<arbitrary>, #tpu.dimension_semantics<arbitrary>], iteration_bounds = array<i64: 2, 2>, scalar_prefetch = 0 : i64, scratch_operands = 6 : i64, tpu.core_type = #tpu.core_type<tc>, window_params = [{transform_indices = @transform_0, window_bounds = array<i64: 512, 256>}, {pipeline_mode = #tpu.pipeline_mode<synchronous>, transform_indices = @transform_1, window_bounds = array<i64: 256, 128>}, {pipeline_mode = #tpu.pipeline_mode<synchronous>, transform_indices = @transform_2, window_bounds = array<i64: 1, 128>}, {pipeline_mode = #tpu.pipeline_mode<synchronous>, transform_indices = @transform_3, window_bounds = array<i64: 128, 128>}, {pipeline_mode = #tpu.pipeline_mode<synchronous>, transform_indices = @transform_4, window_bounds = array<i64: 1, 128>}, {pipeline_mode = #tpu.pipeline_mode<synchronous>, transform_indices = @transform_5, window_bounds = array<i64: 1, 128>}, {pipeline_mode = #tpu.pipeline_mode<synchronous>, transform_indices = @transform_6, window_bounds = array<i64: 1, 128>}, {transform_indices = @transform_7, window_bounds = array<i64: 512, 128>}]} {
    %c0_i32 = arith.constant 0 : i32
    %0 = arith.cmpi eq, %arg0, %c0_i32 : i32
    %1 = arith.extui %0 : i1 to i32
    %c0_i32_0 = arith.constant 0 : i32
    %2 = arith.cmpi ne, %1, %c0_i32_0 : i32
    scf.if %2 {
      %c0_i32_2 = arith.constant 0 : i32
      %6 = arith.cmpi eq, %arg1, %c0_i32_2 : i32
      %7 = arith.extui %6 : i1 to i32
      %c0_i32_3 = arith.constant 0 : i32
      %8 = arith.cmpi ne, %7, %c0_i32_3 : i32
      scf.if %8 {
        %cst_30 = arith.constant 0.000000e+00 : f32
        %43 = vector.broadcast %cst_30 : f32 to vector<1x128xf32>
        %c0_31 = arith.constant 0 : index
        %c0_32 = arith.constant 0 : index
        %44 = vector.load %arg12[%c0_31, %c0_32] : memref<1x128xf32, #tpu.memory_space<vmem>>, vector<1x128xf32>
        tpu.vector_store %arg12[%c0_31, %c0_32], %43 {strides = array<i32>} : memref<1x128xf32, #tpu.memory_space<vmem>>, vector<1x128xf32>,
        %cst_33 = arith.constant 0.000000e+00 : f32
        %45 = vector.broadcast %cst_33 : f32 to vector<1x128xf32>
        %c0_34 = arith.constant 0 : index
        %c0_35 = arith.constant 0 : index
        %46 = vector.load %arg13[%c0_34, %c0_35] : memref<1x128xf32, #tpu.memory_space<vmem>>, vector<1x128xf32>
        tpu.vector_store %arg13[%c0_34, %c0_35], %45 {strides = array<i32>} : memref<1x128xf32, #tpu.memory_space<vmem>>, vector<1x128xf32>,
      } else {
      }
      %c0 = arith.constant 0 : index
      %c0_4 = arith.constant 0 : index
      %9 = vector.load %arg2[%c0, %c0_4] : memref<512x256xbf16, #tpu.memory_space<vmem>>, vector<512x256xbf16>
      %c0_5 = arith.constant 0 : index
      %c0_6 = arith.constant 0 : index
      %10 = vector.load %arg3[%c0_5, %c0_6] : memref<256x128xbf16, #tpu.memory_space<vmem>>, vector<256x128xbf16>
      %cst = arith.constant dense<0.000000e+00> : vector<512x128xf32>
      %11 = tpu.matmul %9, %10, %cst {dimension_numbers = #tpu.dot_dimension_numbers<[1], [0], [0], [1], [0, 0, 1, 1], [], []>} : vector<512x256xbf16>, vector<256x128xbf16>, vector<512x128xf32> -> vector<512x128xf32>
      %c0_7 = arith.constant 0 : index
      %c0_8 = arith.constant 0 : index
      %12 = vector.load %arg4[%c0_7, %c0_8] : memref<1x128xf32, #tpu.memory_space<vmem>>, vector<1x128xf32>
      %13 = vector.broadcast %12 : vector<1x128xf32> to vector<512x128xf32>
      %14 = arith.addf %11, %13 : vector<512x128xf32>
      %15 = arith.truncf %14 : vector<512x128xf32> to vector<512x128xbf16>
      %c0_9 = arith.constant 0 : index
      %c0_10 = arith.constant 0 : index
      %16 = vector.load %arg5[%c0_9, %c0_10] : memref<128x128xbf16, #tpu.memory_space<vmem>>, vector<128x128xbf16>
      %cst_11 = arith.constant dense<0.000000e+00> : vector<512x128xf32>
      %17 = tpu.matmul %15, %16, %cst_11 {dimension_numbers = #tpu.dot_dimension_numbers<[1], [0], [0], [1], [0, 0, 1, 1], [], []>} : vector<512x128xbf16>, vector<128x128xbf16>, vector<512x128xf32> -> vector<512x128xf32>
      %c0_12 = arith.constant 0 : index
      %c0_13 = arith.constant 0 : index
      %18 = vector.load %arg6[%c0_12, %c0_13] : memref<1x128xf32, #tpu.memory_space<vmem>>, vector<1x128xf32>
      %19 = vector.broadcast %18 : vector<1x128xf32> to vector<512x128xf32>
      %20 = arith.addf %17, %19 : vector<512x128xf32>
      %21 = arith.index_cast %arg1 : i32 to index
      %c0_14 = arith.constant 0 : index
      %c0_15 = arith.constant 0 : index
      %22 = vector.load %arg10[%21, %c0_14, %c0_15] : memref<2x512x128xf32, #tpu.memory_space<vmem>>, vector<1x512x128xf32>
      %23 = vector.shape_cast %22 : vector<1x512x128xf32> to vector<512x128xf32>
      %24 = vector.shape_cast %14 : vector<512x128xf32> to vector<1x512x128xf32>
      tpu.vector_store %arg10[%21, %c0_14, %c0_15], %24 {strides = array<i32>} : memref<2x512x128xf32, #tpu.memory_space<vmem>>, vector<1x512x128xf32>,
      %25 = arith.index_cast %arg1 : i32 to index
      %c0_16 = arith.constant 0 : index
      %c0_17 = arith.constant 0 : index
      %26 = vector.load %arg11[%25, %c0_16, %c0_17] : memref<2x512x128xf32, #tpu.memory_space<vmem>>, vector<1x512x128xf32>
      %27 = vector.shape_cast %26 : vector<1x512x128xf32> to vector<512x128xf32>
      %28 = vector.shape_cast %20 : vector<512x128xf32> to vector<1x512x128xf32>
      tpu.vector_store %arg11[%25, %c0_16, %c0_17], %28 {strides = array<i32>} : memref<2x512x128xf32, #tpu.memory_space<vmem>>, vector<1x512x128xf32>,
      %c0_18 = arith.constant 0 : index
      %c0_19 = arith.constant 0 : index
      %29 = vector.load %arg12[%c0_18, %c0_19] : memref<1x128xf32, #tpu.memory_space<vmem>>, vector<1x128xf32>
      %cst_20 = arith.constant dense<0.000000e+00> : vector<128xf32>
      %30 = vector.multi_reduction <add>, %20, %cst_20 [0] : vector<512x128xf32> to vector<128xf32>
      %31 = vector.shape_cast %30 : vector<128xf32> to vector<1x128xf32>
      %32 = arith.addf %29, %31 : vector<1x128xf32>
      %c0_21 = arith.constant 0 : index
      %c0_22 = arith.constant 0 : index
      %33 = vector.load %arg12[%c0_21, %c0_22] : memref<1x128xf32, #tpu.memory_space<vmem>>, vector<1x128xf32>
      tpu.vector_store %arg12[%c0_21, %c0_22], %32 {strides = array<i32>} : memref<1x128xf32, #tpu.memory_space<vmem>>, vector<1x128xf32>,
      %c0_23 = arith.constant 0 : index
      %c0_24 = arith.constant 0 : index
      %34 = vector.load %arg13[%c0_23, %c0_24] : memref<1x128xf32, #tpu.memory_space<vmem>>, vector<1x128xf32>
      %35 = arith.mulf %20, %20 : vector<512x128xf32>
      %cst_25 = arith.constant dense<0.000000e+00> : vector<128xf32>
      %36 = vector.multi_reduction <add>, %35, %cst_25 [0] : vector<512x128xf32> to vector<128xf32>
      %37 = vector.shape_cast %36 : vector<128xf32> to vector<1x128xf32>
      %38 = arith.addf %34, %37 : vector<1x128xf32>
      %c0_26 = arith.constant 0 : index
      %c0_27 = arith.constant 0 : index
      %39 = vector.load %arg13[%c0_26, %c0_27] : memref<1x128xf32, #tpu.memory_space<vmem>>, vector<1x128xf32>
      tpu.vector_store %arg13[%c0_26, %c0_27], %38 {strides = array<i32>} : memref<1x128xf32, #tpu.memory_space<vmem>>, vector<1x128xf32>,
      %c1_i32_28 = arith.constant 1 : i32
      %40 = arith.cmpi eq, %arg1, %c1_i32_28 : i32
      %41 = arith.extui %40 : i1 to i32
      %c0_i32_29 = arith.constant 0 : i32
      %42 = arith.cmpi ne, %41, %c0_i32_29 : i32
      scf.if %42 {
        %c0_30 = arith.constant 0 : index
        %c0_31 = arith.constant 0 : index
        %43 = vector.load %arg12[%c0_30, %c0_31] : memref<1x128xf32, #tpu.memory_space<vmem>>, vector<1x128xf32>
        %cst_32 = arith.constant 9.765625E-4 : f32
        %44 = vector.broadcast %cst_32 : f32 to vector<1x128xf32>
        %45 = arith.mulf %43, %44 : vector<1x128xf32>
        %c0_33 = arith.constant 0 : index
        %c0_34 = arith.constant 0 : index
        %46 = vector.load %arg13[%c0_33, %c0_34] : memref<1x128xf32, #tpu.memory_space<vmem>>, vector<1x128xf32>
        %cst_35 = arith.constant 9.765625E-4 : f32
        %47 = vector.broadcast %cst_35 : f32 to vector<1x128xf32>
        %48 = arith.mulf %46, %47 : vector<1x128xf32>
        %49 = arith.mulf %45, %45 : vector<1x128xf32>
        %50 = arith.subf %48, %49 : vector<1x128xf32>
        %cst_36 = arith.constant 0.000000e+00 : f32
        %51 = vector.broadcast %cst_36 : f32 to vector<1x128xf32>
        %52 = arith.maximumf %50, %51 : vector<1x128xf32>
        %c0_37 = arith.constant 0 : index
        %c0_38 = arith.constant 0 : index
        %53 = vector.load %arg7[%c0_37, %c0_38] : memref<1x128xf32, #tpu.memory_space<vmem>>, vector<1x128xf32>
        %cst_39 = arith.constant 9.99999974E-6 : f32
        %54 = vector.broadcast %cst_39 : f32 to vector<1x128xf32>
        %55 = arith.addf %52, %54 : vector<1x128xf32>
        %56 = math.rsqrt %55 : vector<1x128xf32>
        %57 = arith.mulf %53, %56 : vector<1x128xf32>
        %c0_40 = arith.constant 0 : index
        %c0_41 = arith.constant 0 : index
        %58 = vector.load %arg14[%c0_40, %c0_41] : memref<1x128xf32, #tpu.memory_space<vmem>>, vector<1x128xf32>
        tpu.vector_store %arg14[%c0_40, %c0_41], %57 {strides = array<i32>} : memref<1x128xf32, #tpu.memory_space<vmem>>, vector<1x128xf32>,
        %c0_42 = arith.constant 0 : index
        %c0_43 = arith.constant 0 : index
        %59 = vector.load %arg8[%c0_42, %c0_43] : memref<1x128xf32, #tpu.memory_space<vmem>>, vector<1x128xf32>
        %60 = arith.mulf %45, %57 : vector<1x128xf32>
        %61 = arith.subf %59, %60 : vector<1x128xf32>
        %c0_44 = arith.constant 0 : index
        %c0_45 = arith.constant 0 : index
        %62 = vector.load %arg15[%c0_44, %c0_45] : memref<1x128xf32, #tpu.memory_space<vmem>>, vector<1x128xf32>
        tpu.vector_store %arg15[%c0_44, %c0_45], %61 {strides = array<i32>} : memref<1x128xf32, #tpu.memory_space<vmem>>, vector<1x128xf32>,
      } else {
      }
    } else {
    }
    %c1_i32 = arith.constant 1 : i32
    %3 = arith.cmpi eq, %arg0, %c1_i32 : i32
    %4 = arith.extui %3 : i1 to i32
    %c0_i32_1 = arith.constant 0 : i32
    %5 = arith.cmpi ne, %4, %c0_i32_1 : i32
    scf.if %5 {
      %6 = arith.index_cast %arg1 : i32 to index
      %c0 = arith.constant 0 : index
      %c0_2 = arith.constant 0 : index
      %7 = vector.load %arg10[%6, %c0, %c0_2] : memref<2x512x128xf32, #tpu.memory_space<vmem>>, vector<1x512x128xf32>
      %8 = vector.shape_cast %7 : vector<1x512x128xf32> to vector<512x128xf32>
      %9 = arith.index_cast %arg1 : i32 to index
      %c0_3 = arith.constant 0 : index
      %c0_4 = arith.constant 0 : index
      %10 = vector.load %arg11[%9, %c0_3, %c0_4] : memref<2x512x128xf32, #tpu.memory_space<vmem>>, vector<1x512x128xf32>
      %11 = vector.shape_cast %10 : vector<1x512x128xf32> to vector<512x128xf32>
      %c0_5 = arith.constant 0 : index
      %c0_6 = arith.constant 0 : index
      %12 = vector.load %arg14[%c0_5, %c0_6] : memref<1x128xf32, #tpu.memory_space<vmem>>, vector<1x128xf32>
      %13 = vector.broadcast %12 : vector<1x128xf32> to vector<512x128xf32>
      %14 = arith.mulf %11, %13 : vector<512x128xf32>
      %c0_7 = arith.constant 0 : index
      %c0_8 = arith.constant 0 : index
      %15 = vector.load %arg15[%c0_7, %c0_8] : memref<1x128xf32, #tpu.memory_space<vmem>>, vector<1x128xf32>
      %16 = vector.broadcast %15 : vector<1x128xf32> to vector<512x128xf32>
      %17 = arith.addf %14, %16 : vector<512x128xf32>
      %cst = arith.constant 0.000000e+00 : f32
      %18 = vector.broadcast %cst : f32 to vector<512x128xf32>
      %19 = arith.subf %18, %17 : vector<512x128xf32>
      %20 = math.exp %19 : vector<512x128xf32>
      %cst_9 = arith.constant 1.000000e+00 : f32
      %21 = vector.broadcast %cst_9 : f32 to vector<512x128xf32>
      %22 = arith.addf %21, %20 : vector<512x128xf32>
      %23 = tpu.reciprocal %22 {approx = true} : vector<512x128xf32> -> vector<512x128xf32>
      %24 = arith.mulf %8, %23 : vector<512x128xf32>
      %25 = arith.mulf %24, %24 : vector<512x128xf32>
      %cst_10 = arith.constant dense<0.000000e+00> : vector<512xf32>
      %26 = vector.multi_reduction <add>, %25, %cst_10 [1] : vector<512x128xf32> to vector<512xf32>
      %27 = vector.shape_cast %26 : vector<512xf32> to vector<512x1xf32>
      %cst_11 = arith.constant 1.000000e-24 : f32
      %28 = vector.broadcast %cst_11 : f32 to vector<512x1xf32>
      %29 = arith.maximumf %27, %28 : vector<512x1xf32>
      %30 = math.rsqrt %29 : vector<512x1xf32>
      %31 = vector.broadcast %30 : vector<512x1xf32> to vector<512x128xf32>
      %32 = arith.mulf %24, %31 : vector<512x128xf32>
      %c0_12 = arith.constant 0 : index
      %c0_13 = arith.constant 0 : index
      %33 = vector.load %arg9[%c0_12, %c0_13] : memref<512x128xf32, #tpu.memory_space<vmem>>, vector<512x128xf32>
      tpu.vector_store %arg9[%c0_12, %c0_13], %32 {strides = array<i32>} : memref<512x128xf32, #tpu.memory_space<vmem>>, vector<512x128xf32>,
    } else {
    }
    return
  }
  func.func @transform_0(%arg0: i32, %arg1: i32) -> (i32, i32) {
    %c1_i32 = arith.constant 1 : i32
    %0 = arith.subi %c1_i32, %arg0 : i32
    %1 = arith.muli %arg1, %0 : i32
    %c0_i32 = arith.constant 0 : i32
    %c0_i32_0 = arith.constant 0 : i32
    return %1, %c0_i32 : i32, i32
  }
  func.func @transform_1(%arg0: i32, %arg1: i32) -> (i32, i32) {
    %c0_i32 = arith.constant 0 : i32
    %c0_i32_0 = arith.constant 0 : i32
    %c0_i32_1 = arith.constant 0 : i32
    return %c0_i32, %c0_i32_0 : i32, i32
  }
  func.func @transform_2(%arg0: i32, %arg1: i32) -> (i32, i32) {
    %c0_i32 = arith.constant 0 : i32
    %c0_i32_0 = arith.constant 0 : i32
    %c0_i32_1 = arith.constant 0 : i32
    return %c0_i32, %c0_i32_0 : i32, i32
  }
  func.func @transform_3(%arg0: i32, %arg1: i32) -> (i32, i32) {
    %c0_i32 = arith.constant 0 : i32
    %c0_i32_0 = arith.constant 0 : i32
    %c0_i32_1 = arith.constant 0 : i32
    return %c0_i32, %c0_i32_0 : i32, i32
  }
  func.func @transform_4(%arg0: i32, %arg1: i32) -> (i32, i32) {
    %c0_i32 = arith.constant 0 : i32
    %c0_i32_0 = arith.constant 0 : i32
    %c0_i32_1 = arith.constant 0 : i32
    return %c0_i32, %c0_i32_0 : i32, i32
  }
  func.func @transform_5(%arg0: i32, %arg1: i32) -> (i32, i32) {
    %c0_i32 = arith.constant 0 : i32
    %c0_i32_0 = arith.constant 0 : i32
    %c0_i32_1 = arith.constant 0 : i32
    return %c0_i32, %c0_i32_0 : i32, i32
  }
  func.func @transform_6(%arg0: i32, %arg1: i32) -> (i32, i32) {
    %c0_i32 = arith.constant 0 : i32
    %c0_i32_0 = arith.constant 0 : i32
    %c0_i32_1 = arith.constant 0 : i32
    return %c0_i32, %c0_i32_0 : i32, i32
  }
  func.func @transform_7(%arg0: i32, %arg1: i32) -> (i32, i32) {
    %0 = arith.muli %arg1, %arg0 : i32
    %c0_i32 = arith.constant 0 : i32
    %c0_i32_0 = arith.constant 0 : i32
    return %0, %c0_i32 : i32, i32
  }
}

</mosaic_0001>

<bundles_post_ra>
// kernel: tpu_custom_call.1
= control target key start
LH: loop header
LB: loop body
LE: loop exit
PB: predicated region body
PF: predicated region fallthrough
CT: control target
= control target key end

     0   :  { %s5800_s0 = inlined_call_operand.hbm [shape: bf16[1024,256], index: 0, kind: input, shape index: {}]   ;;  %s5801_s1 = inlined_call_operand.hbm [shape: bf16[256,128], index: 1, kind: input, shape index: {}]   ;;  %s5802_s2 = inlined_call_operand.vmem [shape: f32[1,128], index: 2, kind: input, shape index: {}]   ;;  %s5803_s3 = inlined_call_operand.hbm [shape: bf16[128,128], index: 3, kind: input, shape index: {}]   ;;  %s5804_s4 = inlined_call_operand.vmem [shape: f32[1,128], index: 4, kind: input, shape index: {}]   ;;  %s5805_s5 = inlined_call_operand.vmem [shape: f32[1,128], index: 5, kind: input, shape index: {}]   ;;  %s5806_s6 = inlined_call_operand.vmem [shape: f32[1,128], index: 6, kind: input, shape index: {}]   ;;  %s5807_s7 = inlined_call_operand.hbm [shape: f32[1024,128], index: 7, kind: output, shape index: {}]  }
   0x1   :  { %5834 = sst [smem:[#allocation37_spill]] %s5801_s1 }
   0x2   :  { %5835 = sst [smem:[#allocation38_spill]] %s5802_s2 }
   0x3   :  { %5836 = sst [smem:[#allocation39_spill]] %s5803_s3 }
   0x4   :  { %5837 = sst [smem:[#allocation40_spill]] %s5804_s4 }
   0x5   :  { %5838 = sst [smem:[#allocation41_spill]] %s5805_s5 }
   0x6   :  { %5839 = sst [smem:[#allocation42_spill]] %s5806_s6 }
   0x7   :  { %5840 = sst [smem:[#allocation43_spill]] %s5807_s7 }
   0x8   :  { %12 = vsyncpa [#allocation9], 0 }
   0x9   :  { %14 = vsyncpa [#allocation9 + $0x1], 0 }
   0xa   :  { %15 = vsyncpa [#allocation12], 0 }
   0xb   :  { %16 = vsyncpa [#allocation10], 0 }
   0xc   :  { %18 = vsyncpa [#allocation10 + $0x1], 0  ;;  %s4335_s24 = smov 0   ;;  %s4337_s25 = smov 0  }
   0xd   :  { %s4339_s26 = smov 0   ;;  %s4341_s27 = smov 0  }
   0xe   :  { %s4343_s28 = smov 0   ;;  %s4345_s29 = smov 0  }
   0xf   :  { %s4347_s30 = smov 0   ;;  %s4349_s8 = smov 0  }
  0x10   :  { %s4351_s9 = smov 0   ;;  %s4353_s10 = smov 0  }
  0x11   :  { %s4355_s11 = smov 0  }
  0x12 LB: > { %5841 = sst [smem:[#allocation18_spill]] %s4241_s24  ;;  %s3157_s12 = sadd.s32 4294967295, %s4281_s11   ;;  %s4281_s11 = sphi %s4355_s11, %s24_s11   ;;  %s4277_s10 = sphi %s4353_s10, %s5907_s10   ;;  %s4273_s9 = sphi %s4351_s9, %s5906_s9   ;;  %s4269_s8 = sphi %s4349_s8, %s5899_s8   ;;  %s4265_s30 = sphi %s4347_s30, %s5898_s30   ;;  %s4261_s29 = sphi %s4345_s29, %s5905_s29   ;;  %s4257_s28 = sphi %s4343_s28, %s5904_s28   ;;  %s4253_s27 = sphi %s4341_s27, %s5903_s27   ;;  %s4249_s26 = sphi %s4339_s26, %s5902_s26   ;;  %s4245_s25 = sphi %s4337_s25, %s5901_s25   ;;  %s4241_s24 = sphi %s4335_s24, %s5900_s24  }
  0x13   : > { %5842 = sst [smem:[#allocation19_spill]] %s4273_s9  ;;  %s3158_s13 = sadd.s32 4294967294, %s4281_s11  }
  0x14   : > { %5843 = sst [smem:[#allocation20_spill]] %s4277_s10  ;;  %p60_p0 = scmp.ne.s32.totalorder %s4257_s28, %s4253_s27 }
  0x15   : > { %p4391_p1 = scmp.eq.s32.totalorder %s3157_s12, 0  ;;  %p211_p2 = scmp.ne.s32.totalorder %s4249_s26, %s4245_s25 }
  0x16   : > { %p212_p4 = scmp.eq.s32.totalorder %s3157_s12, 3  ;;  %p217_p5 = scmp.ne.s32.totalorder %s4245_s25, %s4241_s24 }
  0x17   : > { %s5844_s14 = scalar_select %p4391_p1, 1, 0 }
  0x18   : > { %p4400_p3 = por %p4391_p1, %p60_p0  ;;  %p218_p6 = scmp.eq.s32.totalorder %s3158_s13, 3 }
  0x19   : > { %p4406_p7 = por %p212_p4, %p211_p2  ;;  %p3159_p8 = scmp.ge.s32.totalorder %s4281_s11, 1 }
  0x1a   : > { %s5845_s16 = scalar_select %p4400_p3, 1, 0 }
  0x1b   : > { %s5846_s17 = scalar_select %p4406_p7, 1, 0 }
  0x1c   : > { %p4411_p9 = por %p218_p6, %p217_p5  ;;  %p225_p10 = scmp.lt.s32.totalorder %s4281_s11, 5 }
  0x1d   : > { %5847 = sst [smem:[#allocation21_spill]] %s5846_s17  ;;  %s4283_s20 = smov [#allocation11]  }
  0x1e   : > { %s5848_s18 = scalar_select %p4411_p9, 1, 0 }
  0x1f   : > { %p4416_p11 = pnand %p3159_p8, %p225_p10  ;;  %s237_s21 = sshll.u32 %s4283_s20, 4  ;;  %s238_s21 = int_to_ptr.vmem [resolvable:$true] %s237_s21 }
  0x20   : > { %5849 = sst [smem:[#allocation22_spill]] %s5848_s18  ;;  %s4284_s23 = smov [#allocation13]  }
  0x21   : > { %s5850_s19 = scalar_select %p4416_p11, 1, 0 }
  0x22   : > { %p3442_p12 = pneg %p4416_p11  ;;  %s253_s27 = sshll.u32 %s4284_s23, 4  ;;  %s4428_s27 = int_to_ptr.vmem [resolvable:$true] %s253_s27 }
  0x23   : > { %s5852_s1 = sld [smem:[#allocation37_spill]] }
  0x24   : > { %p4424_p13 = pnand %p3442_p12, %p4391_p1 }
  0x26   : > { %p4071_p2 = pneg %p4424_p13 }
  0x29   : > { %s4069_s15 = scalar_lea.hbm %s5852_s1, 2048 }
  0x2a   : > { %p4070_p0 = scmp.ne.s32.totalorder %s5852_s1, %s4069_s15  ;;  %p4076_p6 = scmp.lt.u32.totalorder %s4069_s15, %s5852_s1 }
  0x2c   : > { %p4072_p4 = pnand %p4071_p2, %p4070_p0 }
  0x2e   : > { %p4073_p5 = pneg %p4072_p4 }
  0x30   : > { %p4078_p8 = pnand %p4076_p6, %p4073_p5 }
  0x32   : > { %4081 = shalt.err (!%p4078_p8)
}
  0x33   : > { %s4082_s23 = scalar_lea.vmem %s238_s21, 2048  ;;  %p4090_p7 = scmp.lt.s32.totalorder %s238_s21, %s238_s21 }
  0x34   : > { %p4083_p10 = scmp.ne.s32.totalorder %s238_s21, %s4082_s23  ;;  %p4091_p1 = scmp.lt.s32.totalorder %s4082_s23, %s4082_s23 }
  0x36   : > { %p4085_p12 = pnand %p4083_p10, %p4071_p2  ;;  %p4092_p3 = por %p4091_p1, %p4090_p7 }
  0x38   : > { %p4086_p9 = pneg %p4085_p12 }
  0x3a   : > { %p4093_p11 = pnand %p4092_p3, %p4086_p9 }
  0x3c   : > { %4096 = shalt.err (!%p4093_p11)
}
  0x3d   : > { %s4285_s18 = smov 64   ;;  %s4286_s12 = smov 4  }
  0x3e   : > { %3445 = dma.hbm_to_vmem [thread:$0]  (!%p4424_p13), %s5852_s1, 2048, %s238_s21, [#allocation12], %s4285_s18, %s4285_s18, %s4286_s12  }
  0x3f   : > { %s5853_s3 = sld [smem:[#allocation39_spill]] }
  0x45   : > { %s4097_s20 = scalar_lea.hbm %s5853_s3, 1024 }
  0x46   : > { %p4098_p0 = scmp.ne.s32.totalorder %s5853_s3, %s4097_s20  ;;  %p4104_p7 = scmp.lt.u32.totalorder %s4097_s20, %s5853_s3 }
  0x48   : > { %p4100_p1 = pnand %p4098_p0, %p4071_p2 }
  0x4a   : > { %p4101_p3 = pneg %p4100_p1 }
  0x4c   : > { %p4106_p9 = pnand %p4104_p7, %p4101_p3 }
  0x4e   : > { %4109 = shalt.err (!%p4106_p9)
}
  0x4f   : > { %s4110_s21 = scalar_lea.vmem %s4428_s27, 1024  ;;  %p4118_p6 = scmp.lt.s32.totalorder %s4428_s27, %s4428_s27 }
  0x50   : > { %p4111_p11 = scmp.ne.s32.totalorder %s4428_s27, %s4110_s21  ;;  %p4119_p8 = scmp.lt.s32.totalorder %s4110_s21, %s4110_s21 }
  0x52   : > { %p4113_p4 = pnand %p4111_p11, %p4071_p2  ;;  %p4120_p10 = por %p4119_p8, %p4118_p6 }
  0x54   : > { %p4114_p5 = pneg %p4113_p4 }
  0x56   : > { %p4121_p12 = pnand %p4120_p10, %p4114_p5 }
  0x58   : > { %4124 = shalt.err (!%p4121_p12)
}
  0x59   : > { %3448 = dma.hbm_to_vmem [thread:$0]  (!%p4424_p13), %s5853_s3, 1024, %s4428_s27, [#allocation12], %s4285_s18, %s4285_s18, %s4286_s12  }
  0x5a   : > { %s33_s17 = sadd.s32 1, %s4273_s9  ;;  %s36_s22 = sadd.s32 1, %s4277_s10 }
  0x5b   : > { %p34_p2 = scmp.ge.s32.totalorder %s33_s17, 2  ;;  %s40_s7 = ssub.s32 1, %s4277_s10 }
  0x5c   : > { %s41_s24 = smul.u32 %s4273_s9, %s40_s7  ;;  %s47_s15 = sadd.s32 1, %s4261_s29 }
  0x5d   : > { %s5909_s17 = smov (%p34_p2, %s33_s17), 0  ;;  %s5911_s22 = smov (!%p34_p2, %s36_s22), %s4277_s10 }
  0x5e   : > { %p54_p0 = scmp.ne.s32.totalorder %s4261_s29, %s4257_s28  ;;  %p55_p1 = scmp.eq.s32.totalorder %s4281_s11, 0 }
  0x5f   : > { %p38_p3 = scmp.ge.s32.totalorder %s5911_s22, 2  ;;  %s196_s13 = smul.u32 %s4273_s9, %s4277_s10 }
  0x60   : > { %p4490_p13 = por %p55_p1, %p54_p0  ;;  %p3459_p7 = scmp.lt.s32.totalorder %s4281_s11, 4 }
  0x61   : > { %s5913_s22 = smov (%p38_p3, %s5911_s22), 0  ;;  %s276_s18 = sand.u32 1, %s4261_s29  }
  0x62   : > { %s3276_s12 = sshll.u32 %s41_s24, 13  ;;  %s42_s20 = ssub.s32 1, %s5913_s22 }
  0x63   : > { %s197_s23 = smul.u32 %s5913_s22, %s5909_s17  ;;  %s3163_s6 = sshll.u32 %s276_s18, 9 }
  0x64   : > { %s43_s21 = smul.u32 %s42_s20, %s5909_s17  ;;  %s5855_s1 = sadd.s32 1, %s4249_s26 }
  0x65   : > { %s198_s5 = ssub.s32 %s196_s13, %s197_s23  ;;  %s4513_s2 = scalar_lea.hbm %s5800_s0, %s3276_s12 }
  0x66   : > { %s44_s7 = ssub.s32 %s41_s24, %s43_s21  ;;  %p199_p9 = scmp.eq.s32.totalorder %s198_s5, 0 }
  0x67   : > { %p45_p11 = scmp.eq.s32.totalorder %s44_s7, 0  ;;  %s280_s20 = scalar_lea.vmem [#allocation8], %s3163_s6 }
  0x68   : > { %s4505_s3 = scalar_select %p199_p9, %s4249_s26, %s5855_s1  }
  0x69   : > { %s4508_s10 = scalar_select %p45_p11, %s4261_s29, %s47_s15  }
  0x6a   : > { %s290_s13 = sshll.u32 %s280_s20, 4  ;;  %p4521_p4 = pnand %p3459_p7, %p4490_p13  ;;  %s4515_s13 = int_to_ptr.vmem [resolvable:$true] %s290_s13 }
  0x6b   : > { %s4525_s24 = scalar_lea.sflag [#allocation9], %s276_s18  ;;  %s4125_s4 = scalar_lea.hbm %s4513_s2, 8192 }
  0x6c   : > { %p4126_p5 = scmp.ne.s32.totalorder %s4513_s2, %s4125_s4  ;;  %p4127_p6 = pneg %p4521_p4 }
  0x6d   : > { %s4130_s27 = scalar_lea.hbm %s5800_s0, 16384  ;;  %p4131_p12 = scmp.lt.u32.totalorder %s4513_s2, %s5800_s0 }
  0x6e   : > { %p4128_p8 = pnand %p4127_p6, %p4126_p5  ;;  %p4132_p2 = scmp.lt.u32.totalorder %s4130_s27, %s4125_s4 }
  0x6f   : > { %p4134_p1 = scmp.lt.u32.totalorder %s4125_s4, %s4513_s2 }
  0x70   : > { %p4129_p10 = pneg %p4128_p8  ;;  %p4133_p0 = por %p4132_p2, %p4131_p12 }
  0x72   : > { %p4135_p3 = por %p4134_p1, %p4133_p0 }
  0x74   : > { %p4136_p13 = pnand %p4135_p3, %p4129_p10 }
  0x76   : > { %4139 = shalt.err (!%p4136_p13)
}
  0x77   : > { %s4140_s18 = scalar_lea.vmem %s4515_s13, 8192  ;;  %s4287_s21 = smov [#allocation8]  }
  0x78   : > { %p4141_p7 = scmp.ne.s32.totalorder %s4515_s13, %s4140_s18  ;;  %s4145_s5 = sshll.u32 %s4287_s21, 4  ;;  %s4146_s5 = int_to_ptr.vmem [resolvable:$false] %s4145_s5 }
  0x79   : > { %s4147_s6 = scalar_lea.vmem %s4146_s5, 16384  ;;  %p4148_p5 = scmp.lt.s32.totalorder %s4515_s13, %s4146_s5 }
  0x7a   : > { %p4143_p9 = pnand %p4141_p7, %p4127_p6  ;;  %p4149_p8 = scmp.lt.s32.totalorder %s4147_s6, %s4140_s18 }
  0x7c   : > { %p4144_p11 = pneg %p4143_p9  ;;  %p4150_p12 = por %p4149_p8, %p4148_p5 }
  0x7e   : > { %p4151_p2 = pnand %p4150_p12, %p4144_p11 }
  0x80   : > { %4154 = shalt.err (!%p4151_p2)
}
  0x81   : > { %s4288_s7 = smov 128   ;;  %s4289_s20 = smov 8  }
  0x82   : > { %3452 = dma.hbm_to_vmem [thread:$0]  (!%p4521_p4), %s4513_s2, 8192, %s4515_s13, %s4525_s24, %s4288_s7, %s4288_s7, %s4289_s20  }
  0x83   : > { %p5857_p6 = scmp.ne.s32.totalorder %s5850_s19, 0 }
  0x84   : > { %s304_s4 = sand.u32 (!%p5857_p6), 1, %s4257_s28   ;;  %p5858_p10 = scmp.ne.s32.totalorder (!%p5857_p6), %s5845_s16, 0 }
  0x85   : > { %302 = sbr.rel (%p5857_p6) target bundleno = 1299 (0x513), region = 48  ;;  %s3168_s9 = sshll.u32 (!%p5857_p6), %s304_s4, 9 }
  0x86   : > { %s305_s15 = scalar_lea.sflag (!%p5857_p6), [#allocation9], %s304_s4  ;;  %s4556_s27 = scalar_lea.vmem (!%p5857_p6), [#allocation8], %s3168_s9 }
  0x8c   : > { %4228 = dma.done.wait (%p5858_p10), %s305_s15, 8192  }
  0x8d   : > { %4230 = vsyncadd (%p5858_p10), %s305_s15, 4294959104  ;;  %p5859_p0 = scmp.ne.s32.totalorder %s5844_s14, 0 }
  0x8f   : > { %4232 = dma.done.wait (%p5859_p0), [#allocation12], 3072  }
  0x90   : > { %4234 = vsyncadd (%p5859_p0), [#allocation12], 4294964224  ;;  %s344_s2 = sand.u32 1, %s4245_s25   ;;  %p3172_p4 = scmp.ne.s32.totalorder %s4269_s8, 0 }
  0x91   : > { %s3171_s19 = sshll.u32 %s344_s2, 9  ;;  %p3173_p1 = scmp.ne.s32.totalorder (!%p3172_p4), %s4265_s30, 0 }
  0x92   : > { %s4569_s13 = scalar_lea.vmem [#allocation14], %s3171_s19  ;;  %356 = sbr.rel (%p3172_p4) target bundleno = 932 (0x3a4), region = 64 }
  0x99   : > { %360 = sbr.rel (%p3173_p1) target bundleno = 160 (0xa0), region = 68  ;;  %v4290_v0 = vmov (!%p3173_p1), 0.0  }
  0x9a   : > { %361 = vst [vmem:[#allocation4] sm:$0x1] (!%p3173_p1), %v4290_v0  ;;  %362 = vst [vmem:[#allocation5] sm:$0x1] (!%p3173_p1), %v4290_v0 }
  0xa0 PF: > { %v3561_v1 = vld [vmem:[#allocation11] sm:$0xff]   ;;  %v4291_v2 = vmov 0   ;;  %v3562_v3 = vld [vmem:[#allocation11 + $0x8] sm:$0xff]   ;;  %v3563_v4 = vld [vmem:[#allocation11 + $0x10] sm:$0xff]   ;;  %s3264_s14 = sshll.u32 %s4265_s30, 9  ;;  %s5860_s24 = sld [smem:[#allocation38_spill]] }
  0xa1   : > { %882 = vmatprep.subr.bf16.mxu0 %v4291_v2  ;;  %3398 = vmatprep.subr.bf16.mxu1 %v4291_v2  ;;  %v3564_v5 = vld [vmem:[#allocation11 + $0x18] sm:$0xff]   ;;  %v3565_v6 = vld [vmem:[#allocation11 + $0x20] sm:$0xff]   ;;  %v3566_v8 = vld [vmem:[#allocation11 + $0x28] sm:$0xff]   ;;  %s4678_s12 = scalar_lea.vmem [#allocation2], %s3264_s14  ;;  %s5861_s21 = sld [smem:[#allocation40_spill]] }
  0xa2   : > { %883 = vmatpush1.bf16.msra.mxu0 %v3561_v1  ;;  %3414 = vmatpush1.bf16.msra.mxu1 %v3561_v1  ;;  %v3579_v7 = vld [vmem:[%s4556_s27 + $0x4] ss:$8 sps:$4 sm:$0xff]   ;;  %v3567_v9 = vld [vmem:[#allocation11 + $0x30] sm:$0xff]   ;;  %v3568_v10 = vld [vmem:[#allocation11 + $0x38] sm:$0xff]   ;;  %s4904_s5 = scalar_lea.vmem [#allocation3], %s3264_s14  ;;  %p3265_p3 = scmp.ne.s32.totalorder %s4265_s30, 1 }
  0xa3   : > { %884 = vmatprep.subr.bf16.mxu0 %v4291_v2  ;;  %3399 = vmatprep.subr.bf16.mxu1 %v4291_v2  ;;  %v3569_v11 = vld [vmem:[#allocation11 + $0x40] sm:$0xff]   ;;  %v3570_v12 = vld [vmem:[#allocation11 + $0x48] sm:$0xff]   ;;  %v3571_v13 = vld [vmem:[#allocation11 + $0x50] sm:$0xff]   ;;  %s5862_s20 = sld [smem:[#allocation41_spill]] (!%p3265_p3)  ;;  %s5863_s15 = sld [smem:[#allocation42_spill]] (!%p3265_p3) }
  0xa4   : > { %914 = vmatprep.mubr.bf16.mxu0 %v3579_v7  ;;  %v3572_v14 = vld [vmem:[#allocation11 + $0x58] sm:$0xff]   ;;  %v3573_v15 = vld [vmem:[#allocation11 + $0x60] sm:$0xff]   ;;  %v3574_v16 = vld [vmem:[#allocation11 + $0x68] sm:$0xff]  }
  0xa5   : > { %v3575_v17 = vld [vmem:[#allocation11 + $0x70] sm:$0xff]   ;;  %v3576_v18 = vld [vmem:[#allocation11 + $0x78] sm:$0xff]   ;;  %v3577_v19 = vld [vmem:[%s4556_s27] ss:$8 sps:$4 sm:$0xff]  }
  0xa6   : > { %885 = vmatpush1.bf16.msra.mxu0 %v3562_v3  ;;  %3415 = vmatpush1.bf16.msra.mxu1 %v3562_v3  ;;  %v3580_v20 = vld [vmem:[%s4556_s27 + $0x14] ss:$8 sps:$4 sm:$0xff]   ;;  %v3582_v21 = vld [vmem:[%s4556_s27 + $0x10] ss:$8 sps:$4 sm:$0xff]   ;;  %v3583_v22 = vld [vmem:[%s4556_s27 + $0x24] ss:$8 sps:$4 sm:$0xff]  }
  0xa7   : > { %886 = vmatprep.subr.bf16.mxu0 %v4291_v2  ;;  %3400 = vmatprep.subr.bf16.mxu1 %v4291_v2  ;;  %v3585_v23 = vld [vmem:[%s4556_s27 + $0x20] ss:$8 sps:$4 sm:$0xff]   ;;  %v3586_v24 = vld [vmem:[%s4556_s27 + $0x34] ss:$8 sps:$4 sm:$0xff]   ;;  %v3588_v25 = vld [vmem:[%s4556_s27 + $0x30] ss:$8 sps:$4 sm:$0xff]  }
  0xa8   : > { %v3589_v26 = vld [vmem:[%s4556_s27 + $0x44] ss:$8 sps:$4 sm:$0xff]   ;;  %v3637_v27 = vld [vmem:[%s4556_s27 + $0x180] ss:$8 sps:$4 sm:$0xff]   ;;  %v3592_v30 = vld [vmem:[%s4556_s27 + $0x54] ss:$8 sps:$4 sm:$0xff]  }
  0xa9   : > { %v3639_v28 = vld [vmem:[%s4556_s27 + $0x184] ss:$8 sps:$4 sm:$0xff]   ;;  %v3591_v29 = vld [vmem:[%s4556_s27 + $0x40] ss:$8 sps:$4 sm:$0xff]   ;;  %v3643_v31 = vld [vmem:[%s4556_s27 + $0x194] ss:$8 sps:$4 sm:$0xff]  }
  0xaa   : > { %887 = vmatpush1.bf16.msra.mxu0 %v3563_v4  ;;  %3416 = vmatpush1.bf16.msra.mxu1 %v3563_v4  ;;  %v3645_v32 = vld [vmem:[%s4556_s27 + $0x190] ss:$8 sps:$4 sm:$0xff]   ;;  %v3595_v34 = vld [vmem:[%s4556_s27 + $0x64] ss:$8 sps:$4 sm:$0xff]   ;;  %v3651_v36 = vld [vmem:[%s4556_s27 + $0x1a0] ss:$8 sps:$4 sm:$0xff]  }
  0xab   : > { %888 = vmatprep.subr.bf16.mxu0 %v4291_v2  ;;  %3401 = vmatprep.subr.bf16.mxu1 %v4291_v2  ;;  %v3594_v33 = vld [vmem:[%s4556_s27 + $0x50] ss:$8 sps:$4 sm:$0xff]   ;;  %v3649_v35 = vld [vmem:[%s4556_s27 + $0x1a4] ss:$8 sps:$4 sm:$0xff]   ;;  %v3597_v37 = vld [vmem:[%s4556_s27 + $0x60] ss:$8 sps:$4 sm:$0xff]  }
  0xac   : > { %1106 = vmatprep.mubr.bf16.mxu1 %v3639_v28  ;;  %v3598_v38 = vld [vmem:[%s4556_s27 + $0x74] ss:$8 sps:$4 sm:$0xff]   ;;  %v3657_v40 = vld [vmem:[%s4556_s27 + $0x1b0] ss:$8 sps:$4 sm:$0xff]   ;;  %v3601_v42 = vld [vmem:[%s4556_s27 + $0x84] ss:$8 sps:$4 sm:$0xff]  }
  0xad   : > { %v3655_v39 = vld [vmem:[%s4556_s27 + $0x1b4] ss:$8 sps:$4 sm:$0xff]   ;;  %v3600_v41 = vld [vmem:[%s4556_s27 + $0x70] ss:$8 sps:$4 sm:$0xff]   ;;  %v3661_v43 = vld [vmem:[%s4556_s27 + $0x1c4] ss:$8 sps:$4 sm:$0xff]  }
  0xae   : > { %889 = vmatpush1.bf16.msra.mxu0 %v3564_v5  ;;  %3417 = vmatpush1.bf16.msra.mxu1 %v3564_v5  ;;  %v3663_v44 = vld [vmem:[%s4556_s27 + $0x1c0] ss:$8 sps:$4 sm:$0xff]   ;;  %v3665_v46 = vld [vmem:[%s4556_s27 + $0x1d4] ss:$8 sps:$4 sm:$0xff]   ;;  %v3667_v51 = vld [vmem:[%s4556_s27 + $0x1d0] ss:$8 sps:$4 sm:$0xff]  }
  0xaf   : > { %890 = vmatprep.subr.bf16.mxu0 %v4291_v2  ;;  %3402 = vmatprep.subr.bf16.mxu1 %v4291_v2  ;;  %v3664_v45 = vld [vmem:[#allocation13] sm:$0xff]   ;;  %v3668_v47 = vld [vmem:[#allocation13 + $0x8] sm:$0xff]   ;;  %v3604_v49 = vld [vmem:[%s4556_s27 + $0x94] ss:$8 sps:$4 sm:$0xff]  }
  0xb0   : > { %v3603_v48 = vld [vmem:[%s4556_s27 + $0x80] ss:$8 sps:$4 sm:$0xff]   ;;  %v3669_v50 = vld [vmem:[#allocation13 + $0x10] sm:$0xff]   ;;  %v3670_v52 = vld [vmem:[%s4556_s27 + $0x1e4] ss:$8 sps:$4 sm:$0xff]  }
  0xb1   : > { %v3673_v53 = vld [vmem:[#allocation13 + $0x18] sm:$0xff]   ;;  %v3607_v55 = vld [vmem:[%s4556_s27 + $0xa4] ss:$8 sps:$4 sm:$0xff]   ;;  %v3672_v57 = vld [vmem:[%s4556_s27 + $0x1e0] ss:$8 sps:$4 sm:$0xff]  }
  0xb2   : > { %891 = vmatpush1.bf16.msra.mxu0 %v3565_v6  ;;  %3418 = vmatpush1.bf16.msra.mxu1 %v3565_v6  ;;  %v3606_v54 = vld [vmem:[%s4556_s27 + $0x90] ss:$8 sps:$4 sm:$0xff]   ;;  %v3674_v56 = vld [vmem:[#allocation13 + $0x20] sm:$0xff]   ;;  %v3610_v59 = vld [vmem:[%s4556_s27 + $0xb4] ss:$8 sps:$4 sm:$0xff]  }
  0xb3   : > { %892 = vmatprep.subr.bf16.mxu0 %v4291_v2  ;;  %3403 = vmatprep.subr.bf16.mxu1 %v4291_v2  ;;  %v3609_v58 = vld [vmem:[%s4556_s27 + $0xa0] ss:$8 sps:$4 sm:$0xff]   ;;  %v3675_v60 = vld [vmem:[%s4556_s27 + $0x1f4] ss:$8 sps:$4 sm:$0xff]   ;;  %v3677_v61 = vld [vmem:[%s4556_s27 + $0x1f0] ss:$8 sps:$4 sm:$0xff]  }
  0xb4   : > { %v3612_v62 = vld [vmem:[%s4556_s27 + $0xb0] ss:$8 sps:$4 sm:$0xff]   ;;  %v3678_v63 = vld [vmem:[#allocation13 + $0x28] sm:$0xff]   ;;  %v3616_v4 = vld [vmem:[%s4556_s27 + $0xd4] ss:$8 sps:$4 sm:$0xff]  }
  0xb5   : > { %v3613_v0 = vld [vmem:[%s4556_s27 + $0xc4] ss:$8 sps:$4 sm:$0xff]   ;;  %v3679_v1 = vld [vmem:[#allocation13 + $0x30] sm:$0xff]   ;;  %v3680_v3 = vld [vmem:[#allocation13 + $0x38] sm:$0xff]  }
  0xb6   : > { %893 = vmatpush1.bf16.msra.mxu0 %v3566_v8  ;;  %3419 = vmatpush1.bf16.msra.mxu1 %v3566_v8  ;;  %v3618_v5 = vld [vmem:[%s4556_s27 + $0xd0] ss:$8 sps:$4 sm:$0xff]   ;;  %v3619_v6 = vld [vmem:[%s4556_s27 + $0xe4] ss:$8 sps:$4 sm:$0xff]   ;;  %v3621_v7 = vld [vmem:[%s4556_s27 + $0xe0] ss:$8 sps:$4 sm:$0xff]  }
  0xb7   : > { %894 = vmatprep.subr.bf16.mxu0 %v4291_v2  ;;  %3404 = vmatprep.subr.bf16.mxu1 %v4291_v2  ;;  %v3622_v8 = vld [vmem:[%s4556_s27 + $0xf4] ss:$8 sps:$4 sm:$0xff]  }
  0xba   : > { %895 = vmatpush1.bf16.msra.mxu0 %v3567_v9  ;;  %3420 = vmatpush1.bf16.msra.mxu1 %v3567_v9  ;;  %v3624_v9 = vld [vmem:[%s4556_s27 + $0xf0] ss:$8 sps:$4 sm:$0xff]  }
  0xbb   : > { %896 = vmatprep.subr.bf16.mxu0 %v4291_v2  ;;  %3405 = vmatprep.subr.bf16.mxu1 %v4291_v2 }
  0xbe   : > { %897 = vmatpush1.bf16.msra.mxu0 %v3568_v10  ;;  %3421 = vmatpush1.bf16.msra.mxu1 %v3568_v10  ;;  %v3625_v10 = vld [vmem:[%s4556_s27 + $0x104] ss:$8 sps:$4 sm:$0xff]  }
  0xbf   : > { %898 = vmatprep.subr.bf16.mxu0 %v4291_v2  ;;  %3406 = vmatprep.subr.bf16.mxu1 %v4291_v2 }
  0xc2   : > { %899 = vmatpush1.bf16.msra.mxu0 %v3569_v11  ;;  %3422 = vmatpush1.bf16.msra.mxu1 %v3569_v11  ;;  %v3627_v11 = vld [vmem:[%s4556_s27 + $0x100] ss:$8 sps:$4 sm:$0xff]  }
  0xc3   : > { %900 = vmatprep.subr.bf16.mxu0 %v4291_v2  ;;  %3407 = vmatprep.subr.bf16.mxu1 %v4291_v2 }
  0xc6   : > { %901 = vmatpush1.bf16.msra.mxu0 %v3570_v12  ;;  %3423 = vmatpush1.bf16.msra.mxu1 %v3570_v12  ;;  %v3628_v12 = vld [vmem:[%s4556_s27 + $0x114] ss:$8 sps:$4 sm:$0xff]  }
  0xc7   : > { %902 = vmatprep.subr.bf16.mxu0 %v4291_v2  ;;  %3408 = vmatprep.subr.bf16.mxu1 %v4291_v2 }
  0xca   : > { %903 = vmatpush1.bf16.msra.mxu0 %v3571_v13  ;;  %3424 = vmatpush1.bf16.msra.mxu1 %v3571_v13  ;;  %v3630_v13 = vld [vmem:[%s4556_s27 + $0x110] ss:$8 sps:$4 sm:$0xff]  }
  0xcb   : > { %904 = vmatprep.subr.bf16.mxu0 %v4291_v2  ;;  %3409 = vmatprep.subr.bf16.mxu1 %v4291_v2 }
  0xce   : > { %905 = vmatpush1.bf16.msra.mxu0 %v3572_v14  ;;  %3425 = vmatpush1.bf16.msra.mxu1 %v3572_v14  ;;  %v3631_v14 = vld [vmem:[%s4556_s27 + $0x124] ss:$8 sps:$4 sm:$0xff]  }
  0xcf   : > { %906 = vmatprep.subr.bf16.mxu0 %v4291_v2  ;;  %3410 = vmatprep.subr.bf16.mxu1 %v4291_v2 }
  0xd2   : > { %907 = vmatpush1.bf16.msra.mxu0 %v3573_v15  ;;  %3426 = vmatpush1.bf16.msra.mxu1 %v3573_v15  ;;  %v3633_v15 = vld [vmem:[%s4556_s27 + $0x120] ss:$8 sps:$4 sm:$0xff]  }
  0xd3   : > { %908 = vmatprep.subr.bf16.mxu0 %v4291_v2  ;;  %3411 = vmatprep.subr.bf16.mxu1 %v4291_v2 }
  0xd6   : > { %909 = vmatpush1.bf16.msra.mxu0 %v3574_v16  ;;  %3427 = vmatpush1.bf16.msra.mxu1 %v3574_v16  ;;  %v3634_v16 = vld [vmem:[%s4556_s27 + $0x134] ss:$8 sps:$4 sm:$0xff]  }
  0xd7   : > { %910 = vmatprep.subr.bf16.mxu0 %v4291_v2  ;;  %3412 = vmatprep.subr.bf16.mxu1 %v4291_v2 }
  0xda   : > { %911 = vmatpush1.bf16.msra.mxu0 %v3575_v17  ;;  %3428 = vmatpush1.bf16.msra.mxu1 %v3575_v17  ;;  %v3636_v17 = vld [vmem:[%s4556_s27 + $0x130] ss:$8 sps:$4 sm:$0xff]  }
  0xdb   : > { %912 = vmatprep.subr.bf16.mxu0 %v4291_v2  ;;  %3413 = vmatprep.subr.bf16.mxu1 %v4291_v2  ;;  %v3615_v2 = vld [vmem:[%s4556_s27 + $0xc0] ss:$8 sps:$4 sm:$0xff]  }
  0xde   : > { %913 = vmatpush1.bf16.msra.mxu0 %v3576_v18  ;;  %3429 = vmatpush1.bf16.msra.mxu1 %v3576_v18  ;;  %v3640_v18 = vld [vmem:[%s4556_s27 + $0x144] ss:$8 sps:$4 sm:$0xff]  }
  0xdf   : > { %3318 = vmatprep.subr.bf16.mxu1 %v3664_v45 }
  0xe1   : > { %915 = vmatmul.mubr.bf16.vlgmr.msra.gmra.mrb[0].mxu0 %v3577_v19  ;;  %1107 = vmatmul.mubr.bf16.vlgmr.msra.gmra.mrb[0].mxu1 %v3637_v27  ;;  %v3642_v19 = vld [vmem:[%s4556_s27 + $0x140] ss:$8 sps:$4 sm:$0xff]  }
  0xe2   : > { %922 = vmatprep.mubr.bf16.mxu0 %v3580_v20  ;;  %1114 = vmatprep.mubr.bf16.mxu1 %v3643_v31  ;;  %v3646_v20 = vld [vmem:[%s4556_s27 + $0x154] ss:$8 sps:$4 sm:$0xff]  }
  0xe3   : > { %3319 = vmatpush3.bf16.msra.mxu1 %v3664_v45 }
  0xe4   : > { %3320 = vmatprep.subr.bf16.mxu1 %v3668_v47 }
  0xe7   : > { %3321 = vmatpush3.bf16.msra.mxu1 %v3668_v47 }
  0xe8   : > { %3322 = vmatprep.subr.bf16.mxu1 %v3669_v50 }
  0xe9   : > { %923 = vmatmul.mubr.bf16.gmra.mrb[4].mxu0 %v3582_v21  ;;  %1115 = vmatmul.mubr.bf16.gmra.mrb[4].mxu1 %v3645_v32  ;;  %v3648_v21 = vld [vmem:[%s4556_s27 + $0x150] ss:$8 sps:$4 sm:$0xff]  }
  0xea   : > { %930 = vmatprep.mubr.bf16.mxu0 %v3583_v22  ;;  %1122 = vmatprep.mubr.bf16.mxu1 %v3649_v35  ;;  %v3652_v22 = vld [vmem:[%s4556_s27 + $0x164] ss:$8 sps:$4 sm:$0xff]  }
  0xeb   : > { %3323 = vmatpush3.bf16.msra.mxu1 %v3669_v50 }
  0xec   : > { %3324 = vmatprep.subr.bf16.mxu1 %v3673_v53 }
  0xef   : > { %3325 = vmatpush3.bf16.msra.mxu1 %v3673_v53 }
  0xf0   : > { %3326 = vmatprep.subr.bf16.mxu1 %v3674_v56 }
  0xf1   : > { %931 = vmatmul.mubr.bf16.gmra.mrb[8].mxu0 %v3585_v23  ;;  %1123 = vmatmul.mubr.bf16.gmra.mrb[8].mxu1 %v3651_v36  ;;  %v3654_v23 = vld [vmem:[%s4556_s27 + $0x160] ss:$8 sps:$4 sm:$0xff]  }
  0xf2   : > { %938 = vmatprep.mubr.bf16.mxu0 %v3586_v24  ;;  %1130 = vmatprep.mubr.bf16.mxu1 %v3655_v39  ;;  %v3658_v24 = vld [vmem:[%s4556_s27 + $0x174] ss:$8 sps:$4 sm:$0xff]  }
  0xf3   : > { %3327 = vmatpush3.bf16.msra.mxu1 %v3674_v56 }
  0xf4   : > { %3328 = vmatprep.subr.bf16.mxu1 %v3678_v63 }
  0xf7   : > { %3329 = vmatpush3.bf16.msra.mxu1 %v3678_v63 }
  0xf8   : > { %3330 = vmatprep.subr.bf16.mxu1 %v3679_v1 }
  0xf9   : > { %939 = vmatmul.mubr.bf16.gmra.mrb[12].mxu0 %v3588_v25  ;;  %1131 = vmatmul.mubr.bf16.gmra.mrb[12].mxu1 %v3657_v40  ;;  %v3660_v25 = vld [vmem:[%s4556_s27 + $0x170] ss:$8 sps:$4 sm:$0xff]  }
  0xfa   : > { %946 = vmatprep.mubr.bf16.mxu0 %v3589_v26  ;;  %1138 = vmatprep.mubr.bf16.mxu1 %v3661_v43  ;;  %v4673_v26 = vld [vmem:[%s5860_s24] ss:$0 sm:$0xff] }
  0xfb   : > { %3331 = vmatpush3.bf16.msra.mxu1 %v3679_v1 }
  0xfc   : > { %3332 = vmatprep.subr.bf16.mxu1 %v3680_v3 }
  0xff   : > { %3333 = vmatpush3.bf16.msra.mxu1 %v3680_v3 }
 0x101   : > { %947 = vmatmul.mubr.bf16.gmra.mrb[16].mxu0 %v3591_v29  ;;  %1139 = vmatmul.mubr.bf16.gmra.mrb[16].mxu1 %v3663_v44 }
 0x102   : > { %954 = vmatprep.mubr.bf16.mxu0 %v3592_v30  ;;  %1146 = vmatprep.mubr.bf16.mxu1 %v3665_v46 }
 0x109   : > { %955 = vmatmul.mubr.bf16.gmra.mrb[20].mxu0 %v3594_v33  ;;  %1147 = vmatmul.mubr.bf16.gmra.mrb[20].mxu1 %v3667_v51 }
 0x10a   : > { %962 = vmatprep.mubr.bf16.mxu0 %v3595_v34  ;;  %1154 = vmatprep.mubr.bf16.mxu1 %v3670_v52 }
 0x111   : > { %963 = vmatmul.mubr.bf16.gmra.mrb[24].mxu0 %v3597_v37  ;;  %1155 = vmatmul.mubr.bf16.gmra.mrb[24].mxu1 %v3672_v57 }
 0x112   : > { %970 = vmatprep.mubr.bf16.mxu0 %v3598_v38  ;;  %1162 = vmatprep.mubr.bf16.mxu1 %v3675_v60 }
 0x119   : > { %971 = vmatmul.mubr.bf16.gmra.mrb[28].mxu0 %v3600_v41  ;;  %1163 = vmatmul.mubr.bf16.gmra.mrb[28].mxu1 %v3677_v61 }
 0x11a   : > { %978 = vmatprep.mubr.bf16.mxu0 %v3601_v42 }
 0x121   : > { %979 = vmatmul.mubr.bf16.gmra.mrb[32].mxu0 %v3603_v48 }
 0x122   : > { %986 = vmatprep.mubr.bf16.mxu0 %v3604_v49 }
 0x129   : > { %987 = vmatmul.mubr.bf16.gmra.mrb[36].mxu0 %v3606_v54 }
 0x12a   : > { %994 = vmatprep.mubr.bf16.mxu0 %v3607_v55 }
 0x131   : > { %995 = vmatmul.mubr.bf16.gmra.mrb[40].mxu0 %v3609_v58 }
 0x132   : > { %1002 = vmatprep.mubr.bf16.mxu0 %v3610_v59 }
 0x139   : > { %1003 = vmatmul.mubr.bf16.gmra.mrb[44].mxu0 %v3612_v62 }
 0x13a   : > { %1010 = vmatprep.mubr.bf16.mxu0 %v3613_v0 }
 0x141   : > { %1011 = vmatmul.mubr.bf16.gmra.mrb[48].mxu0 %v3615_v2 }
 0x142   : > { %1018 = vmatprep.mubr.bf16.mxu0 %v3616_v4 }
 0x149   : > { %1019 = vmatmul.mubr.bf16.gmra.mrb[52].mxu0 %v3618_v5 }
 0x14a   : > { %1026 = vmatprep.mubr.bf16.mxu0 %v3619_v6 }
 0x151   : > { %1027 = vmatmul.mubr.bf16.gmra.mrb[56].mxu0 %v3621_v7 }
 0x152   : > { %1034 = vmatprep.mubr.bf16.mxu0 %v3622_v8 }
 0x159   : > { %1035 = vmatmul.mubr.bf16.gmra.mrb[60].mxu0 %v3624_v9 }
 0x15a   : > { %1042 = vmatprep.mubr.bf16.mxu0 %v3625_v10 }
 0x161   : > { %1043 = vmatmul.mubr.bf16.gmra.mrb[64].mxu0 %v3627_v11 }
 0x162   : > { %1050 = vmatprep.mubr.bf16.mxu0 %v3628_v12 }
 0x169   : > { %1051 = vmatmul.mubr.bf16.gmra.mrb[68].mxu0 %v3630_v13 }
 0x16a   : > { %1058 = vmatprep.mubr.bf16.mxu0 %v3631_v14 }
 0x171   : > { %1059 = vmatmul.mubr.bf16.gmra.mrb[72].mxu0 %v3633_v15 }
 0x172   : > { %1066 = vmatprep.mubr.bf16.mxu0 %v3634_v16 }
 0x179   : > { %1067 = vmatmul.mubr.bf16.gmra.mrb[76].mxu0 %v3636_v17 }
 0x17a   : > { %1074 = vmatprep.mubr.bf16.mxu0 %v3640_v18 }
 0x181   : > { %1075 = vmatmul.mubr.bf16.gmra.mrb[80].mxu0 %v3642_v19 }
 0x182   : > { %1082 = vmatprep.mubr.bf16.mxu0 %v3646_v20 }
 0x189   : > { %1083 = vmatmul.mubr.bf16.gmra.mrb[84].mxu0 %v3648_v21 }
 0x18a   : > { %1090 = vmatprep.mubr.bf16.mxu0 %v3652_v22 }
 0x191   : > { %1091 = vmatmul.mubr.bf16.gmra.mrb[88].mxu0 %v3654_v23 }
 0x192   : > { %1098 = vmatprep.mubr.bf16.mxu0 %v3658_v24 }
 0x199   : > { %1099 = vmatmul.mubr.bf16.gmra.mrb[92].mxu0 %v3660_v25 }
 0x1b4   : > { %v916_v27 = vpop.f32.mrb[0].mxu0  ;;  %v1108_v55 = vpop.f32.mrb[0].mxu1 }
 0x1b5   : > { %v917_v28 = vadd.f32 %v4673_v26, %v916_v27  ;;  %v918_v29 = vpop.f32.mrb[1].mxu0  ;;  %v4696_v56 = vadd.f32 %v4673_v26, %v1108_v55  ;;  %v1110_v57 = vpop.f32.mrb[1].mxu1 }
 0x1b6   : > { %v919_v30 = vpop.f32.mrb[2].mxu0  ;;  %v1111_v58 = vpop.f32.mrb[2].mxu1 }
 0x1b7   : > { %1565 = vst [vmem:[%s4678_s12] sm:$0xff] %v917_v28  ;;  %v920_v31 = vadd.f32 %v4673_v26, %v919_v30  ;;  %v921_v32 = vpop.f32.mrb[3].mxu0  ;;  %1613 = vst [vmem:[%s4678_s12 + $0x180] sm:$0xff] %v4696_v56  ;;  %v4701_v60 = vadd.f32 %v4673_v26, %v1111_v58  ;;  %v1113_v61 = vpop.f32.mrb[3].mxu1 }
 0x1b9   : > { %v1171_v33 = vpack.c.bf16 %v920_v31, %v917_v28  ;;  %1566 = vst [vmem:[%s4678_s12 + $0x8] sm:$0xff] %v920_v31  ;;  %v1195_v1 = vpack.c.bf16 %v4701_v60, %v4696_v56  ;;  %1614 = vst [vmem:[%s4678_s12 + $0x188] sm:$0xff] %v4701_v60 }
 0x1bb   : > { %3334 = vmatprep.mubr.bf16.mxu1 %v1171_v33 }
 0x1bc   : > { %v924_v34 = vpop.f32.mrb[4].mxu0  ;;  %v1116_v5 = vpop.f32.mrb[4].mxu1 }
 0x1bd   : > { %v925_v35 = vadd.f32 %v4673_v26, %v924_v34  ;;  %v926_v36 = vpop.f32.mrb[5].mxu0  ;;  %v4712_v6 = vadd.f32 %v4673_v26, %v1116_v5  ;;  %v1118_v7 = vpop.f32.mrb[5].mxu1 }
 0x1be   : > { %v927_v37 = vpop.f32.mrb[6].mxu0  ;;  %v1119_v8 = vpop.f32.mrb[6].mxu1 }
 0x1bf   : > { %1567 = vst [vmem:[%s4678_s12 + $0x10] sm:$0xff] %v925_v35  ;;  %v928_v38 = vadd.f32 %v4673_v26, %v927_v37  ;;  %v929_v39 = vpop.f32.mrb[7].mxu0  ;;  %1615 = vst [vmem:[%s4678_s12 + $0x190] sm:$0xff] %v4712_v6  ;;  %v4717_v10 = vadd.f32 %v4673_v26, %v1119_v8  ;;  %v1121_v11 = vpop.f32.mrb[7].mxu1 }
 0x1c1   : > { %v1172_v40 = vpack.c.bf16 %v928_v38, %v925_v35  ;;  %1568 = vst [vmem:[%s4678_s12 + $0x18] sm:$0xff] %v928_v38  ;;  %v1196_v15 = vpack.c.bf16 %v4717_v10, %v4712_v6  ;;  %1616 = vst [vmem:[%s4678_s12 + $0x198] sm:$0xff] %v4717_v10 }
 0x1c3   : > { %3335 = vmatmul.mubr.bf16.vlgmr.msra.gmra.mrb[32].mxu1 %v1172_v40 }
 0x1c4   : > { %v932_v41 = vpop.f32.mrb[8].mxu0  ;;  %v1124_v19 = vpop.f32.mrb[8].mxu1 }
 0x1c5   : > { %v933_v42 = vadd.f32 %v4673_v26, %v932_v41  ;;  %v934_v43 = vpop.f32.mrb[9].mxu0  ;;  %v4728_v20 = vadd.f32 %v4673_v26, %v1124_v19  ;;  %v1126_v21 = vpop.f32.mrb[9].mxu1 }
 0x1c6   : > { %v935_v44 = vpop.f32.mrb[10].mxu0  ;;  %v1127_v22 = vpop.f32.mrb[10].mxu1 }
 0x1c7   : > { %1569 = vst [vmem:[%s4678_s12 + $0x20] sm:$0xff] %v933_v42  ;;  %v936_v45 = vadd.f32 %v4673_v26, %v935_v44  ;;  %v937_v46 = vpop.f32.mrb[11].mxu0  ;;  %1617 = vst [vmem:[%s4678_s12 + $0x1a0] sm:$0xff] %v4728_v20  ;;  %v4733_v24 = vadd.f32 %v4673_v26, %v1127_v22  ;;  %v1129_v25 = vpop.f32.mrb[11].mxu1 }
 0x1c9   : > { %v1173_v47 = vpack.c.bf16 %v936_v45, %v933_v42  ;;  %1570 = vst [vmem:[%s4678_s12 + $0x28] sm:$0xff] %v936_v45  ;;  %v1197_v30 = vpack.c.bf16 %v4733_v24, %v4728_v20  ;;  %1618 = vst [vmem:[%s4678_s12 + $0x1a8] sm:$0xff] %v4733_v24 }
 0x1cb   : > { %3338 = vmatprep.mubr.bf16.mxu1 %v1173_v47 }
 0x1cc   : > { %v940_v48 = vpop.f32.mrb[12].mxu0  ;;  %v1132_v34 = vpop.f32.mrb[12].mxu1 }
 0x1cd   : > { %v941_v49 = vadd.f32 %v4673_v26, %v940_v48  ;;  %v942_v50 = vpop.f32.mrb[13].mxu0  ;;  %v4744_v35 = vadd.f32 %v4673_v26, %v1132_v34  ;;  %v1134_v36 = vpop.f32.mrb[13].mxu1 }
 0x1ce   : > { %v943_v51 = vpop.f32.mrb[14].mxu0  ;;  %v1135_v37 = vpop.f32.mrb[14].mxu1 }
 0x1cf   : > { %1571 = vst [vmem:[%s4678_s12 + $0x30] sm:$0xff] %v941_v49  ;;  %v944_v52 = vadd.f32 %v4673_v26, %v943_v51  ;;  %v945_v53 = vpop.f32.mrb[15].mxu0  ;;  %1619 = vst [vmem:[%s4678_s12 + $0x1b0] sm:$0xff] %v4744_v35  ;;  %v4749_v39 = vadd.f32 %v4673_v26, %v1135_v37  ;;  %v1137_v40 = vpop.f32.mrb[15].mxu1 }
 0x1d1   : > { %v1174_v54 = vpack.c.bf16 %v944_v52, %v941_v49  ;;  %1572 = vst [vmem:[%s4678_s12 + $0x38] sm:$0xff] %v944_v52  ;;  %v1198_v44 = vpack.c.bf16 %v4749_v39, %v4744_v35  ;;  %1620 = vst [vmem:[%s4678_s12 + $0x1b8] sm:$0xff] %v4749_v39 }
 0x1d3   : > { %3339 = vmatmul.mubr.bf16.gmra.mrb[36].mxu1 %v1174_v54 }
 0x1d4   : > { %v948_v59 = vpop.f32.mrb[16].mxu0  ;;  %v1140_v48 = vpop.f32.mrb[16].mxu1 }
 0x1d5   : > { %v949_v62 = vadd.f32 %v4673_v26, %v948_v59  ;;  %v950_v63 = vpop.f32.mrb[17].mxu0  ;;  %v4760_v49 = vadd.f32 %v4673_v26, %v1140_v48  ;;  %v1142_v50 = vpop.f32.mrb[17].mxu1 }
 0x1d6   : > { %v951_v0 = vpop.f32.mrb[18].mxu0  ;;  %v1143_v51 = vpop.f32.mrb[18].mxu1 }
 0x1d7   : > { %1573 = vst [vmem:[%s4678_s12 + $0x40] sm:$0xff] %v949_v62  ;;  %v952_v2 = vadd.f32 %v4673_v26, %v951_v0  ;;  %v953_v3 = vpop.f32.mrb[19].mxu0  ;;  %1621 = vst [vmem:[%s4678_s12 + $0x1c0] sm:$0xff] %v4760_v49  ;;  %v4765_v53 = vadd.f32 %v4673_v26, %v1143_v51  ;;  %v1145_v54 = vpop.f32.mrb[19].mxu1 }
 0x1d9   : > { %v1175_v4 = vpack.c.bf16 %v952_v2, %v949_v62  ;;  %1574 = vst [vmem:[%s4678_s12 + $0x48] sm:$0xff] %v952_v2  ;;  %v1199_v59 = vpack.c.bf16 %v4765_v53, %v4760_v49  ;;  %1622 = vst [vmem:[%s4678_s12 + $0x1c8] sm:$0xff] %v4765_v53 }
 0x1db   : > { %3342 = vmatprep.mubr.bf16.mxu1 %v1175_v4 }
 0x1dc   : > { %v956_v9 = vpop.f32.mrb[20].mxu0  ;;  %v1148_v63 = vpop.f32.mrb[20].mxu1 }
 0x1dd   : > { %v957_v12 = vadd.f32 %v4673_v26, %v956_v9  ;;  %v958_v13 = vpop.f32.mrb[21].mxu0  ;;  %v4775_v0 = vadd.f32 %v4673_v26, %v1148_v63  ;;  %v1150_v2 = vpop.f32.mrb[21].mxu1 }
 0x1de   : > { %v959_v14 = vpop.f32.mrb[22].mxu0  ;;  %v1151_v4 = vpop.f32.mrb[22].mxu1 }
 0x1df   : > { %1575 = vst [vmem:[%s4678_s12 + $0x50] sm:$0xff] %v957_v12  ;;  %v960_v16 = vadd.f32 %v4673_v26, %v959_v14  ;;  %v961_v17 = vpop.f32.mrb[23].mxu0  ;;  %1623 = vst [vmem:[%s4678_s12 + $0x1d0] sm:$0xff] %v4775_v0  ;;  %v4781_v5 = vadd.f32 %v4673_v26, %v1151_v4  ;;  %v1153_v7 = vpop.f32.mrb[23].mxu1 }
 0x1e1   : > { %v1176_v18 = vpack.c.bf16 %v960_v16, %v957_v12  ;;  %1576 = vst [vmem:[%s4678_s12 + $0x58] sm:$0xff] %v960_v16  ;;  %v1200_v9 = vpack.c.bf16 %v4781_v5, %v4775_v0  ;;  %1624 = vst [vmem:[%s4678_s12 + $0x1d8] sm:$0xff] %v4781_v5 }
 0x1e3   : > { %3343 = vmatmul.mubr.bf16.gmra.mrb[40].mxu1 %v1176_v18 }
 0x1e4   : > { %v964_v23 = vpop.f32.mrb[24].mxu0  ;;  %v1156_v17 = vpop.f32.mrb[24].mxu1 }
 0x1e5   : > { %v965_v27 = vadd.f32 %v4673_v26, %v964_v23  ;;  %v966_v28 = vpop.f32.mrb[25].mxu0  ;;  %v4791_v18 = vadd.f32 %v4673_v26, %v1156_v17  ;;  %v1158_v19 = vpop.f32.mrb[25].mxu1 }
 0x1e6   : > { %v967_v29 = vpop.f32.mrb[26].mxu0  ;;  %v1159_v22 = vpop.f32.mrb[26].mxu1 }
 0x1e7   : > { %1577 = vst [vmem:[%s4678_s12 + $0x60] sm:$0xff] %v965_v27  ;;  %v968_v31 = vadd.f32 %v4673_v26, %v967_v29  ;;  %v969_v32 = vpop.f32.mrb[27].mxu0  ;;  %1625 = vst [vmem:[%s4678_s12 + $0x1e0] sm:$0xff] %v4791_v18  ;;  %v4797_v23 = vadd.f32 %v4673_v26, %v1159_v22  ;;  %v1161_v25 = vpop.f32.mrb[27].mxu1 }
 0x1e9   : > { %v1177_v33 = vpack.c.bf16 %v968_v31, %v965_v27  ;;  %1578 = vst [vmem:[%s4678_s12 + $0x68] sm:$0xff] %v968_v31  ;;  %v1201_v28 = vpack.c.bf16 %v4797_v23, %v4791_v18  ;;  %1626 = vst [vmem:[%s4678_s12 + $0x1e8] sm:$0xff] %v4797_v23 }
 0x1eb   : > { %3346 = vmatprep.mubr.bf16.mxu1 %v1177_v33 }
 0x1ec   : > { %v972_v38 = vpop.f32.mrb[28].mxu0  ;;  %v1164_v37 = vpop.f32.mrb[28].mxu1 }
 0x1ed   : > { %v973_v41 = vadd.f32 %v4673_v26, %v972_v38  ;;  %v974_v42 = vpop.f32.mrb[29].mxu0  ;;  %v4808_v38 = vadd.f32 %v4673_v26, %v1164_v37  ;;  %v1166_v40 = vpop.f32.mrb[29].mxu1 }
 0x1ee   : > { %v975_v43 = vpop.f32.mrb[30].mxu0 }
 0x1ef   : > { %1579 = vst [vmem:[%s4678_s12 + $0x70] sm:$0xff] %v973_v41  ;;  %v976_v45 = vadd.f32 %v4673_v26, %v975_v43  ;;  %v977_v46 = vpop.f32.mrb[31].mxu0  ;;  %1627 = vst [vmem:[%s4678_s12 + $0x1f0] sm:$0xff] %v4808_v38 }
 0x1f1   : > { %v1178_v47 = vpack.c.bf16 %v976_v45, %v973_v41  ;;  %1580 = vst [vmem:[%s4678_s12 + $0x78] sm:$0xff] %v976_v45  ;;  %v1167_v41 = vpop.f32.mrb[30].mxu1 }
 0x1f2   : > { %v4813_v43 = vadd.f32 %v4673_v26, %v1167_v41  ;;  %v1169_v45 = vpop.f32.mrb[31].mxu1 }
 0x1f3   : > { %3347 = vmatmul.mubr.bf16.gmra.mrb[44].mxu1 %v1178_v47 }
 0x1f4   : > { %v980_v52 = vpop.f32.mrb[32].mxu0  ;;  %v1202_v50 = vpack.c.bf16 %v4813_v43, %v4808_v38  ;;  %1628 = vst [vmem:[%s4678_s12 + $0x1f8] sm:$0xff] %v4813_v43 }
 0x1f5   : > { %v981_v55 = vadd.f32 %v4673_v26, %v980_v52  ;;  %v982_v57 = vpop.f32.mrb[33].mxu0 }
 0x1f6   : > { %v983_v58 = vpop.f32.mrb[34].mxu0 }
 0x1f7   : > { %1581 = vst [vmem:[%s4678_s12 + $0x80] sm:$0xff] %v981_v55  ;;  %v984_v61 = vadd.f32 %v4673_v26, %v983_v58  ;;  %v985_v62 = vpop.f32.mrb[35].mxu0 }
 0x1f9   : > { %v1179_v3 = vpack.c.bf16 %v984_v61, %v981_v55  ;;  %1582 = vst [vmem:[%s4678_s12 + $0x88] sm:$0xff] %v984_v61 }
 0x1fb   : > { %3350 = vmatprep.mubr.bf16.mxu1 %v1179_v3 }
 0x1fc   : > { %v988_v8 = vpop.f32.mrb[36].mxu0 }
 0x1fd   : > { %v989_v11 = vadd.f32 %v4673_v26, %v988_v8  ;;  %v990_v12 = vpop.f32.mrb[37].mxu0 }
 0x1fe   : > { %v991_v13 = vpop.f32.mrb[38].mxu0 }
 0x1ff   : > { %1583 = vst [vmem:[%s4678_s12 + $0x90] sm:$0xff] %v989_v11  ;;  %v992_v14 = vadd.f32 %v4673_v26, %v991_v13  ;;  %v993_v16 = vpop.f32.mrb[39].mxu0 }
 0x201   : > { %v1180_v21 = vpack.c.bf16 %v992_v14, %v989_v11  ;;  %1584 = vst [vmem:[%s4678_s12 + $0x98] sm:$0xff] %v992_v14 }
 0x203   : > { %3351 = vmatmul.mubr.bf16.gmra.mrb[48].mxu1 %v1180_v21 }
 0x204   : > { %v996_v27 = vpop.f32.mrb[40].mxu0 }
 0x205   : > { %v997_v29 = vadd.f32 %v4673_v26, %v996_v27  ;;  %v998_v31 = vpop.f32.mrb[41].mxu0 }
 0x206   : > { %v999_v32 = vpop.f32.mrb[42].mxu0 }
 0x207   : > { %1585 = vst [vmem:[%s4678_s12 + $0xa0] sm:$0xff] %v997_v29  ;;  %v1000_v33 = vadd.f32 %v4673_v26, %v999_v32  ;;  %v1001_v34 = vpop.f32.mrb[43].mxu0 }
 0x209   : > { %v1181_v36 = vpack.c.bf16 %v1000_v33, %v997_v29  ;;  %1586 = vst [vmem:[%s4678_s12 + $0xa8] sm:$0xff] %v1000_v33 }
 0x20b   : > { %3354 = vmatprep.mubr.bf16.mxu1 %v1181_v36 }
 0x20c   : > { %v1004_v42 = vpop.f32.mrb[44].mxu0 }
 0x20d   : > { %v1005_v46 = vadd.f32 %v4673_v26, %v1004_v42  ;;  %v1006_v47 = vpop.f32.mrb[45].mxu0 }
 0x20e   : > { %v1007_v48 = vpop.f32.mrb[46].mxu0 }
 0x20f   : > { %1587 = vst [vmem:[%s4678_s12 + $0xb0] sm:$0xff] %v1005_v46  ;;  %v1008_v51 = vadd.f32 %v4673_v26, %v1007_v48  ;;  %v1009_v52 = vpop.f32.mrb[47].mxu0 }
 0x211   : > { %v1182_v54 = vpack.c.bf16 %v1008_v51, %v1005_v46  ;;  %1588 = vst [vmem:[%s4678_s12 + $0xb8] sm:$0xff] %v1008_v51 }
 0x213   : > { %3355 = vmatmul.mubr.bf16.gmra.mrb[52].mxu1 %v1182_v54 }
 0x214   : > { %v1012_v55 = vpop.f32.mrb[48].mxu0 }
 0x215   : > { %v1013_v57 = vadd.f32 %v4673_v26, %v1012_v55  ;;  %v1014_v58 = vpop.f32.mrb[49].mxu0 }
 0x216   : > { %v1015_v61 = vpop.f32.mrb[50].mxu0 }
 0x217   : > { %1589 = vst [vmem:[%s4678_s12 + $0xc0] sm:$0xff] %v1013_v57  ;;  %v1016_v62 = vadd.f32 %v4673_v26, %v1015_v61  ;;  %v1017_v63 = vpop.f32.mrb[51].mxu0 }
 0x219   : > { %v1183_v2 = vpack.c.bf16 %v1016_v62, %v1013_v57  ;;  %1590 = vst [vmem:[%s4678_s12 + $0xc8] sm:$0xff] %v1016_v62 }
 0x21b   : > { %3358 = vmatprep.mubr.bf16.mxu1 %v1183_v2 }
 0x21c   : > { %v1020_v3 = vpop.f32.mrb[52].mxu0 }
 0x21d   : > { %v1021_v4 = vadd.f32 %v4673_v26, %v1020_v3  ;;  %v1022_v7 = vpop.f32.mrb[53].mxu0 }
 0x21e   : > { %v1023_v8 = vpop.f32.mrb[54].mxu0 }
 0x21f   : > { %1591 = vst [vmem:[%s4678_s12 + $0xd0] sm:$0xff] %v1021_v4  ;;  %v1024_v11 = vadd.f32 %v4673_v26, %v1023_v8  ;;  %v1025_v12 = vpop.f32.mrb[55].mxu0 }
 0x221   : > { %v1184_v13 = vpack.c.bf16 %v1024_v11, %v1021_v4  ;;  %1592 = vst [vmem:[%s4678_s12 + $0xd8] sm:$0xff] %v1024_v11 }
 0x223   : > { %3359 = vmatmul.mubr.bf16.gmra.mrb[56].mxu1 %v1184_v13 }
 0x224   : > { %v1028_v14 = vpop.f32.mrb[56].mxu0 }
 0x225   : > { %v1029_v16 = vadd.f32 %v4673_v26, %v1028_v14  ;;  %v1030_v17 = vpop.f32.mrb[57].mxu0 }
 0x226   : > { %v1031_v19 = vpop.f32.mrb[58].mxu0 }
 0x227   : > { %1593 = vst [vmem:[%s4678_s12 + $0xe0] sm:$0xff] %v1029_v16  ;;  %v1032_v21 = vadd.f32 %v4673_v26, %v1031_v19  ;;  %v1033_v22 = vpop.f32.mrb[59].mxu0 }
 0x229   : > { %v1185_v25 = vpack.c.bf16 %v1032_v21, %v1029_v16  ;;  %1594 = vst [vmem:[%s4678_s12 + $0xe8] sm:$0xff] %v1032_v21 }
 0x22b   : > { %3362 = vmatprep.mubr.bf16.mxu1 %v1185_v25 }
 0x22c   : > { %v1036_v27 = vpop.f32.mrb[60].mxu0 }
 0x22d   : > { %v1037_v29 = vadd.f32 %v4673_v26, %v1036_v27  ;;  %v1038_v31 = vpop.f32.mrb[61].mxu0 }
 0x22e   : > { %v1039_v32 = vpop.f32.mrb[62].mxu0 }
 0x22f   : > { %1595 = vst [vmem:[%s4678_s12 + $0xf0] sm:$0xff] %v1037_v29  ;;  %v1040_v33 = vadd.f32 %v4673_v26, %v1039_v32  ;;  %v1041_v34 = vpop.f32.mrb[63].mxu0 }
 0x231   : > { %v1186_v36 = vpack.c.bf16 %v1040_v33, %v1037_v29  ;;  %1596 = vst [vmem:[%s4678_s12 + $0xf8] sm:$0xff] %v1040_v33 }
 0x233   : > { %3363 = vmatmul.mubr.bf16.gmra.mrb[60].mxu1 %v1186_v36 }
 0x234   : > { %v1044_v37 = vpop.f32.mrb[64].mxu0 }
 0x235   : > { %v1045_v40 = vadd.f32 %v4673_v26, %v1044_v37  ;;  %v1046_v41 = vpop.f32.mrb[65].mxu0 }
 0x236   : > { %v1047_v42 = vpop.f32.mrb[66].mxu0 }
 0x237   : > { %1597 = vst [vmem:[%s4678_s12 + $0x100] sm:$0xff] %v1045_v40  ;;  %v1048_v45 = vadd.f32 %v4673_v26, %v1047_v42  ;;  %v1049_v46 = vpop.f32.mrb[67].mxu0 }
 0x239   : > { %v1187_v47 = vpack.c.bf16 %v1048_v45, %v1045_v40  ;;  %1598 = vst [vmem:[%s4678_s12 + $0x108] sm:$0xff] %v1048_v45 }
 0x23b   : > { %3366 = vmatprep.mubr.bf16.mxu1 %v1187_v47 }
 0x23c   : > { %v1052_v48 = vpop.f32.mrb[68].mxu0 }
 0x23d   : > { %v1053_v51 = vadd.f32 %v4673_v26, %v1052_v48  ;;  %v1054_v52 = vpop.f32.mrb[69].mxu0 }
 0x23e   : > { %v1055_v54 = vpop.f32.mrb[70].mxu0 }
 0x23f   : > { %1599 = vst [vmem:[%s4678_s12 + $0x110] sm:$0xff] %v1053_v51  ;;  %v1056_v55 = vadd.f32 %v4673_v26, %v1055_v54  ;;  %v1057_v57 = vpop.f32.mrb[71].mxu0 }
 0x241   : > { %v1188_v58 = vpack.c.bf16 %v1056_v55, %v1053_v51  ;;  %1600 = vst [vmem:[%s4678_s12 + $0x118] sm:$0xff] %v1056_v55 }
 0x243   : > { %3367 = vmatmul.mubr.bf16.gmra.mrb[64].mxu1 %v1188_v58 }
 0x244   : > { %v1060_v61 = vpop.f32.mrb[72].mxu0 }
 0x245   : > { %v1061_v62 = vadd.f32 %v4673_v26, %v1060_v61  ;;  %v1062_v63 = vpop.f32.mrb[73].mxu0 }
 0x246   : > { %v1063_v2 = vpop.f32.mrb[74].mxu0 }
 0x247   : > { %1601 = vst [vmem:[%s4678_s12 + $0x120] sm:$0xff] %v1061_v62  ;;  %v1064_v3 = vadd.f32 %v4673_v26, %v1063_v2  ;;  %v1065_v4 = vpop.f32.mrb[75].mxu0 }
 0x249   : > { %v1189_v7 = vpack.c.bf16 %v1064_v3, %v1061_v62  ;;  %1602 = vst [vmem:[%s4678_s12 + $0x128] sm:$0xff] %v1064_v3 }
 0x24b   : > { %3370 = vmatprep.mubr.bf16.mxu1 %v1189_v7 }
 0x24c   : > { %v1068_v8 = vpop.f32.mrb[76].mxu0 }
 0x24d   : > { %v1069_v11 = vadd.f32 %v4673_v26, %v1068_v8  ;;  %v1070_v12 = vpop.f32.mrb[77].mxu0 }
 0x24e   : > { %v1071_v13 = vpop.f32.mrb[78].mxu0 }
 0x24f   : > { %1603 = vst [vmem:[%s4678_s12 + $0x130] sm:$0xff] %v1069_v11  ;;  %v1072_v14 = vadd.f32 %v4673_v26, %v1071_v13  ;;  %v1073_v16 = vpop.f32.mrb[79].mxu0 }
 0x251   : > { %v1190_v17 = vpack.c.bf16 %v1072_v14, %v1069_v11  ;;  %1604 = vst [vmem:[%s4678_s12 + $0x138] sm:$0xff] %v1072_v14 }
 0x253   : > { %3371 = vmatmul.mubr.bf16.gmra.mrb[68].mxu1 %v1190_v17 }
 0x254   : > { %v1076_v19 = vpop.f32.mrb[80].mxu0 }
 0x255   : > { %v1077_v21 = vadd.f32 %v4673_v26, %v1076_v19  ;;  %v1078_v22 = vpop.f32.mrb[81].mxu0 }
 0x256   : > { %v1079_v25 = vpop.f32.mrb[82].mxu0 }
 0x257   : > { %1605 = vst [vmem:[%s4678_s12 + $0x140] sm:$0xff] %v1077_v21  ;;  %v1080_v27 = vadd.f32 %v4673_v26, %v1079_v25  ;;  %v1081_v29 = vpop.f32.mrb[83].mxu0 }
 0x259   : > { %v1191_v31 = vpack.c.bf16 %v1080_v27, %v1077_v21  ;;  %1606 = vst [vmem:[%s4678_s12 + $0x148] sm:$0xff] %v1080_v27 }
 0x25b   : > { %3374 = vmatprep.mubr.bf16.mxu1 %v1191_v31 }
 0x25c   : > { %v1084_v32 = vpop.f32.mrb[84].mxu0 }
 0x25d   : > { %v1085_v33 = vadd.f32 %v4673_v26, %v1084_v32  ;;  %v1086_v34 = vpop.f32.mrb[85].mxu0 }
 0x25e   : > { %v1087_v36 = vpop.f32.mrb[86].mxu0 }
 0x25f   : > { %1607 = vst [vmem:[%s4678_s12 + $0x150] sm:$0xff] %v1085_v33  ;;  %v1088_v37 = vadd.f32 %v4673_v26, %v1087_v36  ;;  %v1089_v40 = vpop.f32.mrb[87].mxu0 }
 0x261   : > { %v1192_v41 = vpack.c.bf16 %v1088_v37, %v1085_v33  ;;  %1608 = vst [vmem:[%s4678_s12 + $0x158] sm:$0xff] %v1088_v37 }
 0x263   : > { %3375 = vmatmul.mubr.bf16.gmra.mrb[72].mxu1 %v1192_v41 }
 0x264   : > { %v1092_v42 = vpop.f32.mrb[88].mxu0 }
 0x265   : > { %v1093_v45 = vadd.f32 %v4673_v26, %v1092_v42  ;;  %v1094_v46 = vpop.f32.mrb[89].mxu0 }
 0x266   : > { %v1095_v47 = vpop.f32.mrb[90].mxu0 }
 0x267   : > { %1609 = vst [vmem:[%s4678_s12 + $0x160] sm:$0xff] %v1093_v45  ;;  %v1096_v48 = vadd.f32 %v4673_v26, %v1095_v47  ;;  %v1097_v51 = vpop.f32.mrb[91].mxu0 }
 0x269   : > { %v1193_v52 = vpack.c.bf16 %v1096_v48, %v1093_v45  ;;  %1610 = vst [vmem:[%s4678_s12 + $0x168] sm:$0xff] %v1096_v48 }
 0x26b   : > { %3378 = vmatprep.mubr.bf16.mxu1 %v1193_v52 }
 0x26c   : > { %v1100_v54 = vpop.f32.mrb[92].mxu0 }
 0x26d   : > { %v1101_v55 = vadd.f32 %v4673_v26, %v1100_v54  ;;  %v1102_v57 = vpop.f32.mrb[93].mxu0 }
 0x26e   : > { %v1103_v58 = vpop.f32.mrb[94].mxu0 }
 0x26f   : > { %1611 = vst [vmem:[%s4678_s12 + $0x170] sm:$0xff] %v1101_v55  ;;  %v1104_v61 = vadd.f32 %v4673_v26, %v1103_v58  ;;  %v1105_v62 = vpop.f32.mrb[95].mxu0  ;;  %v4898_v26 = vld [vmem:[%s5861_s21] ss:$0 sm:$0xff] }
 0x271   : > { %v1194_v63 = vpack.c.bf16 %v1104_v61, %v1101_v55  ;;  %1612 = vst [vmem:[%s4678_s12 + $0x178] sm:$0xff] %v1104_v61 }
 0x273   : > { %3379 = vmatmul.mubr.bf16.gmra.mrb[76].mxu1 %v1194_v63 }
 0x274   : > { %3382 = vmatprep.mubr.bf16.mxu1 %v1195_v1 }
 0x27b   : > { %3383 = vmatmul.mubr.bf16.gmra.mrb[80].mxu1 %v1196_v15 }
 0x27c   : > { %3386 = vmatprep.mubr.bf16.mxu1 %v1197_v30 }
 0x283   : > { %3387 = vmatmul.mubr.bf16.gmra.mrb[84].mxu1 %v1198_v44 }
 0x284   : > { %3390 = vmatprep.mubr.bf16.mxu1 %v1199_v59 }
 0x28b   : > { %3391 = vmatmul.mubr.bf16.gmra.mrb[88].mxu1 %v1200_v9 }
 0x28c   : > { %3394 = vmatprep.mubr.bf16.mxu1 %v1201_v28 }
 0x293   : > { %3395 = vmatmul.mubr.bf16.gmra.mrb[92].mxu1 %v1202_v50 }
 0x296   : > { %v3336_v56 = vpop.f32.mrb[32].mxu1 }
 0x297   : > { %v1317_v60 = vadd.f32 %v3336_v56, %v4898_v26  ;;  %v1308_v1 = vpop.f32.mrb[33].mxu1 }
 0x298   : > { %v1309_v6 = vadd.f32 %v4898_v26, %v1308_v1  ;;  %v3337_v10 = vpop.f32.mrb[34].mxu1 }
 0x299   : > { %1632 = vst [vmem:[%s4904_s5 + $0x10] sm:$0xff] %v1317_v60  ;;  %v1320_v15 = vadd.f32 %v3337_v10, %v4898_v26  ;;  %v1311_v20 = vpop.f32.mrb[35].mxu1  ;;  %v1769_v44 = vmul.f32 %v1317_v60, %v1317_v60 }
 0x29a   : > { %1630 = vst [vmem:[%s4904_s5] sm:$0xff] %v1309_v6  ;;  %v1312_v24 = vadd.f32 %v4898_v26, %v1311_v20  ;;  %v1767_v30 = vmul.f32 %v1309_v6, %v1309_v6 }
 0x29b   : > { %1633 = vst [vmem:[%s4904_s5 + $0x18] sm:$0xff] %v1320_v15  ;;  %v1770_v59 = vmul.f32 %v1320_v15, %v1320_v15 }
 0x29c   : > { %1631 = vst [vmem:[%s4904_s5 + $0x8] sm:$0xff] %v1312_v24  ;;  %v1695_v35 = vadd.f32 %v1312_v24, %v1309_v6  ;;  %v1768_v39 = vmul.f32 %v1312_v24, %v1312_v24 }
 0x29e   : > { %v1696_v49 = vadd.f32 %v1695_v35, %v1317_v60  ;;  %v1831_v53 = vadd.f32 %v1768_v39, %v1767_v30 }
 0x2a0   : > { %v1832_v0 = vadd.f32 %v1831_v53, %v1769_v44  ;;  %v1697_v5 = vadd.f32 %v1696_v49, %v1320_v15 }
 0x2a2   : > { %v1833_v9 = vadd.f32 %v1832_v0, %v1770_v59 }
 0x2a6   : > { %v3340_v18 = vpop.f32.mrb[36].mxu1 }
 0x2a7   : > { %v1333_v23 = vadd.f32 %v3340_v18, %v4898_v26  ;;  %v1324_v28 = vpop.f32.mrb[37].mxu1 }
 0x2a8   : > { %v1325_v38 = vadd.f32 %v4898_v26, %v1324_v28  ;;  %v3341_v43 = vpop.f32.mrb[38].mxu1 }
 0x2a9   : > { %1636 = vst [vmem:[%s4904_s5 + $0x30] sm:$0xff] %v1333_v23  ;;  %v1336_v50 = vadd.f32 %v3341_v43, %v4898_v26  ;;  %v1327_v2 = vpop.f32.mrb[39].mxu1  ;;  %v1773_v13 = vmul.f32 %v1333_v23, %v1333_v23 }
 0x2aa   : > { %1634 = vst [vmem:[%s4904_s5 + $0x20] sm:$0xff] %v1325_v38  ;;  %v1698_v3 = vadd.f32 %v1697_v5, %v1325_v38  ;;  %v1771_v4 = vmul.f32 %v1325_v38, %v1325_v38  ;;  %v1328_v7 = vadd.f32 %v4898_v26, %v1327_v2 }
 0x2ab   : > { %1637 = vst [vmem:[%s4904_s5 + $0x38] sm:$0xff] %v1336_v50  ;;  %v1774_v17 = vmul.f32 %v1336_v50, %v1336_v50 }
 0x2ac   : > { %v1834_v8 = vadd.f32 %v1833_v9, %v1771_v4  ;;  %1635 = vst [vmem:[%s4904_s5 + $0x28] sm:$0xff] %v1328_v7  ;;  %v1699_v11 = vadd.f32 %v1698_v3, %v1328_v7  ;;  %v1772_v12 = vmul.f32 %v1328_v7, %v1328_v7 }
 0x2ae   : > { %v1700_v14 = vadd.f32 %v1699_v11, %v1333_v23  ;;  %v1835_v16 = vadd.f32 %v1834_v8, %v1772_v12 }
 0x2b0   : > { %v1836_v19 = vadd.f32 %v1835_v16, %v1773_v13  ;;  %v1701_v21 = vadd.f32 %v1700_v14, %v1336_v50 }
 0x2b2   : > { %v1837_v22 = vadd.f32 %v1836_v19, %v1774_v17 }
 0x2b6   : > { %v3344_v25 = vpop.f32.mrb[40].mxu1 }
 0x2b7   : > { %v1349_v27 = vadd.f32 %v3344_v25, %v4898_v26  ;;  %v1340_v29 = vpop.f32.mrb[41].mxu1 }
 0x2b8   : > { %v1341_v31 = vadd.f32 %v4898_v26, %v1340_v29  ;;  %v3345_v32 = vpop.f32.mrb[42].mxu1 }
 0x2b9   : > { %1640 = vst [vmem:[%s4904_s5 + $0x50] sm:$0xff] %v1349_v27  ;;  %v1352_v33 = vadd.f32 %v3345_v32, %v4898_v26  ;;  %v1343_v34 = vpop.f32.mrb[43].mxu1  ;;  %v1777_v46 = vmul.f32 %v1349_v27, %v1349_v27 }
 0x2ba   : > { %1638 = vst [vmem:[%s4904_s5 + $0x40] sm:$0xff] %v1341_v31  ;;  %v1702_v36 = vadd.f32 %v1701_v21, %v1341_v31  ;;  %v1775_v37 = vmul.f32 %v1341_v31, %v1341_v31  ;;  %v1344_v40 = vadd.f32 %v4898_v26, %v1343_v34 }
 0x2bb   : > { %1641 = vst [vmem:[%s4904_s5 + $0x58] sm:$0xff] %v1352_v33  ;;  %v1778_v51 = vmul.f32 %v1352_v33, %v1352_v33 }
 0x2bc   : > { %v1838_v41 = vadd.f32 %v1837_v22, %v1775_v37  ;;  %1639 = vst [vmem:[%s4904_s5 + $0x48] sm:$0xff] %v1344_v40  ;;  %v1703_v42 = vadd.f32 %v1702_v36, %v1344_v40  ;;  %v1776_v45 = vmul.f32 %v1344_v40, %v1344_v40 }
 0x2be   : > { %v1704_v47 = vadd.f32 %v1703_v42, %v1349_v27  ;;  %v1839_v48 = vadd.f32 %v1838_v41, %v1776_v45 }
 0x2c0   : > { %v1840_v52 = vadd.f32 %v1839_v48, %v1777_v46  ;;  %v1705_v54 = vadd.f32 %v1704_v47, %v1352_v33 }
 0x2c2   : > { %v1841_v55 = vadd.f32 %v1840_v52, %v1778_v51 }
 0x2c6   : > { %v3348_v57 = vpop.f32.mrb[44].mxu1 }
 0x2c7   : > { %v1365_v58 = vadd.f32 %v3348_v57, %v4898_v26  ;;  %v1356_v61 = vpop.f32.mrb[45].mxu1 }
 0x2c8   : > { %v1357_v62 = vadd.f32 %v4898_v26, %v1356_v61  ;;  %v3349_v63 = vpop.f32.mrb[46].mxu1 }
 0x2c9   : > { %1644 = vst [vmem:[%s4904_s5 + $0x70] sm:$0xff] %v1365_v58  ;;  %v1368_v56 = vadd.f32 %v3349_v63, %v4898_v26  ;;  %v1359_v60 = vpop.f32.mrb[47].mxu1  ;;  %v1781_v30 = vmul.f32 %v1365_v58, %v1365_v58 }
 0x2ca   : > { %1642 = vst [vmem:[%s4904_s5 + $0x60] sm:$0xff] %v1357_v62  ;;  %v1706_v1 = vadd.f32 %v1705_v54, %v1357_v62  ;;  %v1779_v6 = vmul.f32 %v1357_v62, %v1357_v62  ;;  %v1360_v10 = vadd.f32 %v4898_v26, %v1359_v60 }
 0x2cb   : > { %1645 = vst [vmem:[%s4904_s5 + $0x78] sm:$0xff] %v1368_v56  ;;  %v1782_v44 = vmul.f32 %v1368_v56, %v1368_v56 }
 0x2cc   : > { %v1842_v15 = vadd.f32 %v1841_v55, %v1779_v6  ;;  %1643 = vst [vmem:[%s4904_s5 + $0x68] sm:$0xff] %v1360_v10  ;;  %v1707_v20 = vadd.f32 %v1706_v1, %v1360_v10  ;;  %v1780_v24 = vmul.f32 %v1360_v10, %v1360_v10 }
 0x2ce   : > { %v1708_v35 = vadd.f32 %v1707_v20, %v1365_v58  ;;  %v1843_v39 = vadd.f32 %v1842_v15, %v1780_v24 }
 0x2d0   : > { %v1844_v49 = vadd.f32 %v1843_v39, %v1781_v30  ;;  %v1709_v53 = vadd.f32 %v1708_v35, %v1368_v56 }
 0x2d2   : > { %v1845_v59 = vadd.f32 %v1844_v49, %v1782_v44 }
 0x2d6   : > { %v3352_v0 = vpop.f32.mrb[48].mxu1 }
 0x2d7   : > { %v1381_v5 = vadd.f32 %v3352_v0, %v4898_v26  ;;  %v1372_v9 = vpop.f32.mrb[49].mxu1 }
 0x2d8   : > { %v1373_v18 = vadd.f32 %v4898_v26, %v1372_v9  ;;  %v3353_v23 = vpop.f32.mrb[50].mxu1 }
 0x2d9   : > { %1648 = vst [vmem:[%s4904_s5 + $0x90] sm:$0xff] %v1381_v5  ;;  %v1384_v28 = vadd.f32 %v3353_v23, %v4898_v26  ;;  %v1375_v38 = vpop.f32.mrb[51].mxu1  ;;  %v1785_v8 = vmul.f32 %v1381_v5, %v1381_v5 }
 0x2da   : > { %1646 = vst [vmem:[%s4904_s5 + $0x80] sm:$0xff] %v1373_v18  ;;  %v1710_v43 = vadd.f32 %v1709_v53, %v1373_v18  ;;  %v1783_v50 = vmul.f32 %v1373_v18, %v1373_v18  ;;  %v1376_v2 = vadd.f32 %v4898_v26, %v1375_v38 }
 0x2db   : > { %1649 = vst [vmem:[%s4904_s5 + $0x98] sm:$0xff] %v1384_v28  ;;  %v1786_v13 = vmul.f32 %v1384_v28, %v1384_v28 }
 0x2dc   : > { %v1846_v3 = vadd.f32 %v1845_v59, %v1783_v50  ;;  %1647 = vst [vmem:[%s4904_s5 + $0x88] sm:$0xff] %v1376_v2  ;;  %v1711_v4 = vadd.f32 %v1710_v43, %v1376_v2  ;;  %v1784_v7 = vmul.f32 %v1376_v2, %v1376_v2 }
 0x2de   : > { %v1712_v11 = vadd.f32 %v1711_v4, %v1381_v5  ;;  %v1847_v12 = vadd.f32 %v1846_v3, %v1784_v7 }
 0x2e0   : > { %v1848_v14 = vadd.f32 %v1847_v12, %v1785_v8  ;;  %v1713_v16 = vadd.f32 %v1712_v11, %v1384_v28 }
 0x2e2   : > { %v1849_v17 = vadd.f32 %v1848_v14, %v1786_v13 }
 0x2e6   : > { %v3356_v19 = vpop.f32.mrb[52].mxu1 }
 0x2e7   : > { %v1397_v21 = vadd.f32 %v3356_v19, %v4898_v26  ;;  %v1388_v22 = vpop.f32.mrb[53].mxu1 }
 0x2e8   : > { %v1389_v25 = vadd.f32 %v4898_v26, %v1388_v22  ;;  %v3357_v27 = vpop.f32.mrb[54].mxu1 }
 0x2e9   : > { %1652 = vst [vmem:[%s4904_s5 + $0xb0] sm:$0xff] %v1397_v21  ;;  %v1400_v29 = vadd.f32 %v3357_v27, %v4898_v26  ;;  %v1391_v31 = vpop.f32.mrb[55].mxu1  ;;  %v1789_v41 = vmul.f32 %v1397_v21, %v1397_v21 }
 0x2ea   : > { %1650 = vst [vmem:[%s4904_s5 + $0xa0] sm:$0xff] %v1389_v25  ;;  %v1714_v32 = vadd.f32 %v1713_v16, %v1389_v25  ;;  %v1787_v33 = vmul.f32 %v1389_v25, %v1389_v25  ;;  %v1392_v34 = vadd.f32 %v4898_v26, %v1391_v31 }
 0x2eb   : > { %1653 = vst [vmem:[%s4904_s5 + $0xb8] sm:$0xff] %v1400_v29  ;;  %v1790_v46 = vmul.f32 %v1400_v29, %v1400_v29 }
 0x2ec   : > { %v1850_v36 = vadd.f32 %v1849_v17, %v1787_v33  ;;  %1651 = vst [vmem:[%s4904_s5 + $0xa8] sm:$0xff] %v1392_v34  ;;  %v1715_v37 = vadd.f32 %v1714_v32, %v1392_v34  ;;  %v1788_v40 = vmul.f32 %v1392_v34, %v1392_v34 }
 0x2ee   : > { %v1716_v42 = vadd.f32 %v1715_v37, %v1397_v21  ;;  %v1851_v45 = vadd.f32 %v1850_v36, %v1788_v40 }
 0x2f0   : > { %v1852_v47 = vadd.f32 %v1851_v45, %v1789_v41  ;;  %v1717_v48 = vadd.f32 %v1716_v42, %v1400_v29 }
 0x2f2   : > { %v1853_v51 = vadd.f32 %v1852_v47, %v1790_v46 }
 0x2f6   : > { %v3360_v52 = vpop.f32.mrb[56].mxu1 }
 0x2f7   : > { %v1413_v54 = vadd.f32 %v3360_v52, %v4898_v26  ;;  %v1404_v55 = vpop.f32.mrb[57].mxu1 }
 0x2f8   : > { %v1405_v57 = vadd.f32 %v4898_v26, %v1404_v55  ;;  %v3361_v58 = vpop.f32.mrb[58].mxu1 }
 0x2f9   : > { %1656 = vst [vmem:[%s4904_s5 + $0xd0] sm:$0xff] %v1413_v54  ;;  %v1416_v61 = vadd.f32 %v3361_v58, %v4898_v26  ;;  %v1407_v62 = vpop.f32.mrb[59].mxu1  ;;  %v1793_v15 = vmul.f32 %v1413_v54, %v1413_v54 }
 0x2fa   : > { %1654 = vst [vmem:[%s4904_s5 + $0xc0] sm:$0xff] %v1405_v57  ;;  %v1718_v63 = vadd.f32 %v1717_v48, %v1405_v57  ;;  %v1791_v56 = vmul.f32 %v1405_v57, %v1405_v57  ;;  %v1408_v60 = vadd.f32 %v4898_v26, %v1407_v62 }
 0x2fb   : > { %1657 = vst [vmem:[%s4904_s5 + $0xd8] sm:$0xff] %v1416_v61  ;;  %v1794_v30 = vmul.f32 %v1416_v61, %v1416_v61 }
 0x2fc   : > { %v1854_v1 = vadd.f32 %v1853_v51, %v1791_v56  ;;  %1655 = vst [vmem:[%s4904_s5 + $0xc8] sm:$0xff] %v1408_v60  ;;  %v1719_v6 = vadd.f32 %v1718_v63, %v1408_v60  ;;  %v1792_v10 = vmul.f32 %v1408_v60, %v1408_v60 }
 0x2fe   : > { %v1720_v20 = vadd.f32 %v1719_v6, %v1413_v54  ;;  %v1855_v24 = vadd.f32 %v1854_v1, %v1792_v10 }
 0x300   : > { %v1856_v35 = vadd.f32 %v1855_v24, %v1793_v15  ;;  %v1721_v39 = vadd.f32 %v1720_v20, %v1416_v61 }
 0x302   : > { %v1857_v44 = vadd.f32 %v1856_v35, %v1794_v30 }
 0x306   : > { %v3364_v49 = vpop.f32.mrb[60].mxu1 }
 0x307   : > { %v1429_v53 = vadd.f32 %v3364_v49, %v4898_v26  ;;  %v1420_v59 = vpop.f32.mrb[61].mxu1 }
 0x308   : > { %v1421_v0 = vadd.f32 %v4898_v26, %v1420_v59  ;;  %v3365_v5 = vpop.f32.mrb[62].mxu1 }
 0x309   : > { %1660 = vst [vmem:[%s4904_s5 + $0xf0] sm:$0xff] %v1429_v53  ;;  %v1432_v9 = vadd.f32 %v3365_v5, %v4898_v26  ;;  %v1423_v18 = vpop.f32.mrb[63].mxu1  ;;  %v1797_v3 = vmul.f32 %v1429_v53, %v1429_v53 }
 0x30a   : > { %1658 = vst [vmem:[%s4904_s5 + $0xe0] sm:$0xff] %v1421_v0  ;;  %v1722_v23 = vadd.f32 %v1721_v39, %v1421_v0  ;;  %v1795_v28 = vmul.f32 %v1421_v0, %v1421_v0  ;;  %v1424_v38 = vadd.f32 %v4898_v26, %v1423_v18 }
 0x30b   : > { %1661 = vst [vmem:[%s4904_s5 + $0xf8] sm:$0xff] %v1432_v9  ;;  %v1798_v8 = vmul.f32 %v1432_v9, %v1432_v9 }
 0x30c   : > { %v1858_v43 = vadd.f32 %v1857_v44, %v1795_v28  ;;  %1659 = vst [vmem:[%s4904_s5 + $0xe8] sm:$0xff] %v1424_v38  ;;  %v1723_v50 = vadd.f32 %v1722_v23, %v1424_v38  ;;  %v1796_v2 = vmul.f32 %v1424_v38, %v1424_v38 }
 0x30e   : > { %v1724_v4 = vadd.f32 %v1723_v50, %v1429_v53  ;;  %v1859_v7 = vadd.f32 %v1858_v43, %v1796_v2 }
 0x310   : > { %v1860_v11 = vadd.f32 %v1859_v7, %v1797_v3  ;;  %v1725_v12 = vadd.f32 %v1724_v4, %v1432_v9 }
 0x312   : > { %v1861_v13 = vadd.f32 %v1860_v11, %v1798_v8 }
 0x316   : > { %v3368_v14 = vpop.f32.mrb[64].mxu1 }
 0x317   : > { %v1445_v16 = vadd.f32 %v3368_v14, %v4898_v26  ;;  %v1436_v17 = vpop.f32.mrb[65].mxu1 }
 0x318   : > { %v1437_v19 = vadd.f32 %v4898_v26, %v1436_v17  ;;  %v3369_v21 = vpop.f32.mrb[66].mxu1 }
 0x319   : > { %1664 = vst [vmem:[%s4904_s5 + $0x110] sm:$0xff] %v1445_v16  ;;  %v1448_v22 = vadd.f32 %v3369_v21, %v4898_v26  ;;  %v1439_v25 = vpop.f32.mrb[67].mxu1  ;;  %v1801_v36 = vmul.f32 %v1445_v16, %v1445_v16 }
 0x31a   : > { %1662 = vst [vmem:[%s4904_s5 + $0x100] sm:$0xff] %v1437_v19  ;;  %v1726_v27 = vadd.f32 %v1725_v12, %v1437_v19  ;;  %v1799_v29 = vmul.f32 %v1437_v19, %v1437_v19  ;;  %v1440_v31 = vadd.f32 %v4898_v26, %v1439_v25 }
 0x31b   : > { %1665 = vst [vmem:[%s4904_s5 + $0x118] sm:$0xff] %v1448_v22  ;;  %v1802_v41 = vmul.f32 %v1448_v22, %v1448_v22 }
 0x31c   : > { %v1862_v32 = vadd.f32 %v1861_v13, %v1799_v29  ;;  %1663 = vst [vmem:[%s4904_s5 + $0x108] sm:$0xff] %v1440_v31  ;;  %v1727_v33 = vadd.f32 %v1726_v27, %v1440_v31  ;;  %v1800_v34 = vmul.f32 %v1440_v31, %v1440_v31 }
 0x31e   : > { %v1728_v37 = vadd.f32 %v1727_v33, %v1445_v16  ;;  %v1863_v40 = vadd.f32 %v1862_v32, %v1800_v34 }
 0x320   : > { %v1864_v42 = vadd.f32 %v1863_v40, %v1801_v36  ;;  %v1729_v45 = vadd.f32 %v1728_v37, %v1448_v22 }
 0x322   : > { %v1865_v46 = vadd.f32 %v1864_v42, %v1802_v41 }
 0x326   : > { %v3372_v47 = vpop.f32.mrb[68].mxu1 }
 0x327   : > { %v1461_v48 = vadd.f32 %v3372_v47, %v4898_v26  ;;  %v1452_v51 = vpop.f32.mrb[69].mxu1 }
 0x328   : > { %v1453_v52 = vadd.f32 %v4898_v26, %v1452_v51  ;;  %v3373_v54 = vpop.f32.mrb[70].mxu1 }
 0x329   : > { %1668 = vst [vmem:[%s4904_s5 + $0x130] sm:$0xff] %v1461_v48  ;;  %v1464_v55 = vadd.f32 %v3373_v54, %v4898_v26  ;;  %v1455_v57 = vpop.f32.mrb[71].mxu1  ;;  %v1805_v1 = vmul.f32 %v1461_v48, %v1461_v48 }
 0x32a   : > { %1666 = vst [vmem:[%s4904_s5 + $0x120] sm:$0xff] %v1453_v52  ;;  %v1730_v58 = vadd.f32 %v1729_v45, %v1453_v52  ;;  %v1803_v61 = vmul.f32 %v1453_v52, %v1453_v52  ;;  %v1456_v62 = vadd.f32 %v4898_v26, %v1455_v57 }
 0x32b   : > { %1669 = vst [vmem:[%s4904_s5 + $0x138] sm:$0xff] %v1464_v55  ;;  %v1806_v15 = vmul.f32 %v1464_v55, %v1464_v55 }
 0x32c   : > { %v1866_v63 = vadd.f32 %v1865_v46, %v1803_v61  ;;  %1667 = vst [vmem:[%s4904_s5 + $0x128] sm:$0xff] %v1456_v62  ;;  %v1731_v56 = vadd.f32 %v1730_v58, %v1456_v62  ;;  %v1804_v60 = vmul.f32 %v1456_v62, %v1456_v62 }
 0x32e   : > { %v1732_v6 = vadd.f32 %v1731_v56, %v1461_v48  ;;  %v1867_v10 = vadd.f32 %v1866_v63, %v1804_v60 }
 0x330   : > { %v1868_v20 = vadd.f32 %v1867_v10, %v1805_v1  ;;  %v1733_v24 = vadd.f32 %v1732_v6, %v1464_v55 }
 0x332   : > { %v1869_v30 = vadd.f32 %v1868_v20, %v1806_v15 }
 0x336   : > { %v3376_v35 = vpop.f32.mrb[72].mxu1 }
 0x337   : > { %v1477_v39 = vadd.f32 %v3376_v35, %v4898_v26  ;;  %v1468_v44 = vpop.f32.mrb[73].mxu1 }
 0x338   : > { %v1469_v49 = vadd.f32 %v4898_v26, %v1468_v44  ;;  %v3377_v53 = vpop.f32.mrb[74].mxu1 }
 0x339   : > { %1672 = vst [vmem:[%s4904_s5 + $0x150] sm:$0xff] %v1477_v39  ;;  %v1480_v59 = vadd.f32 %v3377_v53, %v4898_v26  ;;  %v1471_v0 = vpop.f32.mrb[75].mxu1  ;;  %v1809_v43 = vmul.f32 %v1477_v39, %v1477_v39 }
 0x33a   : > { %1670 = vst [vmem:[%s4904_s5 + $0x140] sm:$0xff] %v1469_v49  ;;  %v1734_v5 = vadd.f32 %v1733_v24, %v1469_v49  ;;  %v1807_v9 = vmul.f32 %v1469_v49, %v1469_v49  ;;  %v1472_v18 = vadd.f32 %v4898_v26, %v1471_v0 }
 0x33b   : > { %1673 = vst [vmem:[%s4904_s5 + $0x158] sm:$0xff] %v1480_v59  ;;  %v1810_v3 = vmul.f32 %v1480_v59, %v1480_v59 }
 0x33c   : > { %v1870_v23 = vadd.f32 %v1869_v30, %v1807_v9  ;;  %1671 = vst [vmem:[%s4904_s5 + $0x148] sm:$0xff] %v1472_v18  ;;  %v1735_v28 = vadd.f32 %v1734_v5, %v1472_v18  ;;  %v1808_v38 = vmul.f32 %v1472_v18, %v1472_v18 }
 0x33e   : > { %v1736_v50 = vadd.f32 %v1735_v28, %v1477_v39  ;;  %v1871_v2 = vadd.f32 %v1870_v23, %v1808_v38 }
 0x340   : > { %v1872_v4 = vadd.f32 %v1871_v2, %v1809_v43  ;;  %v1737_v7 = vadd.f32 %v1736_v50, %v1480_v59 }
 0x342   : > { %v1873_v8 = vadd.f32 %v1872_v4, %v1810_v3 }
 0x346   : > { %v3380_v11 = vpop.f32.mrb[76].mxu1 }
 0x347   : > { %v1493_v12 = vadd.f32 %v3380_v11, %v4898_v26  ;;  %v1484_v13 = vpop.f32.mrb[77].mxu1 }
 0x348   : > { %v1485_v14 = vadd.f32 %v4898_v26, %v1484_v13  ;;  %v3381_v16 = vpop.f32.mrb[78].mxu1 }
 0x349   : > { %1676 = vst [vmem:[%s4904_s5 + $0x170] sm:$0xff] %v1493_v12  ;;  %v1496_v17 = vadd.f32 %v3381_v16, %v4898_v26  ;;  %v1487_v19 = vpop.f32.mrb[79].mxu1  ;;  %v1813_v32 = vmul.f32 %v1493_v12, %v1493_v12 }
 0x34a   : > { %1674 = vst [vmem:[%s4904_s5 + $0x160] sm:$0xff] %v1485_v14  ;;  %v1738_v21 = vadd.f32 %v1737_v7, %v1485_v14  ;;  %v1811_v22 = vmul.f32 %v1485_v14, %v1485_v14  ;;  %v1488_v25 = vadd.f32 %v4898_v26, %v1487_v19 }
 0x34b   : > { %1677 = vst [vmem:[%s4904_s5 + $0x178] sm:$0xff] %v1496_v17  ;;  %v1814_v41 = vmul.f32 %v1496_v17, %v1496_v17 }
 0x34c   : > { %v1874_v27 = vadd.f32 %v1873_v8, %v1811_v22  ;;  %1675 = vst [vmem:[%s4904_s5 + $0x168] sm:$0xff] %v1488_v25  ;;  %v1739_v29 = vadd.f32 %v1738_v21, %v1488_v25  ;;  %v1812_v31 = vmul.f32 %v1488_v25, %v1488_v25 }
 0x34e   : > { %v1740_v33 = vadd.f32 %v1739_v29, %v1493_v12  ;;  %v1875_v34 = vadd.f32 %v1874_v27, %v1812_v31  ;;  %v3384_v36 = vpop.f32.mrb[80].mxu1 }
 0x34f   : > { %v1509_v37 = vadd.f32 %v3384_v36, %v4898_v26  ;;  %v1500_v40 = vpop.f32.mrb[81].mxu1 }
 0x350   : > { %v1876_v42 = vadd.f32 %v1875_v34, %v1813_v32  ;;  %v1501_v45 = vadd.f32 %v4898_v26, %v1500_v40  ;;  %v1741_v46 = vadd.f32 %v1740_v33, %v1496_v17  ;;  %v3385_v47 = vpop.f32.mrb[82].mxu1 }
 0x351   : > { %1680 = vst [vmem:[%s4904_s5 + $0x190] sm:$0xff] %v1509_v37  ;;  %v1512_v48 = vadd.f32 %v3385_v47, %v4898_v26  ;;  %v1503_v51 = vpop.f32.mrb[83].mxu1  ;;  %v1817_v63 = vmul.f32 %v1509_v37, %v1509_v37 }
 0x352   : > { %1678 = vst [vmem:[%s4904_s5 + $0x180] sm:$0xff] %v1501_v45  ;;  %v1742_v52 = vadd.f32 %v1741_v46, %v1501_v45  ;;  %v1815_v54 = vmul.f32 %v1501_v45, %v1501_v45  ;;  %v1877_v55 = vadd.f32 %v1876_v42, %v1814_v41  ;;  %v1504_v57 = vadd.f32 %v4898_v26, %v1503_v51 }
 0x353   : > { %1681 = vst [vmem:[%s4904_s5 + $0x198] sm:$0xff] %v1512_v48  ;;  %v1818_v15 = vmul.f32 %v1512_v48, %v1512_v48 }
 0x354   : > { %v1878_v58 = vadd.f32 %v1877_v55, %v1815_v54  ;;  %1679 = vst [vmem:[%s4904_s5 + $0x188] sm:$0xff] %v1504_v57  ;;  %v1743_v61 = vadd.f32 %v1742_v52, %v1504_v57  ;;  %v1816_v62 = vmul.f32 %v1504_v57, %v1504_v57 }
 0x356   : > { %v1744_v56 = vadd.f32 %v1743_v61, %v1509_v37  ;;  %v1879_v60 = vadd.f32 %v1878_v58, %v1816_v62  ;;  %v3388_v1 = vpop.f32.mrb[84].mxu1 }
 0x357   : > { %v1525_v6 = vadd.f32 %v3388_v1, %v4898_v26  ;;  %v1516_v10 = vpop.f32.mrb[85].mxu1 }
 0x358   : > { %v1880_v20 = vadd.f32 %v1879_v60, %v1817_v63  ;;  %v1517_v24 = vadd.f32 %v4898_v26, %v1516_v10  ;;  %v1745_v30 = vadd.f32 %v1744_v56, %v1512_v48  ;;  %v3389_v35 = vpop.f32.mrb[86].mxu1 }
 0x359   : > { %1684 = vst [vmem:[%s4904_s5 + $0x1b0] sm:$0xff] %v1525_v6  ;;  %v1528_v39 = vadd.f32 %v3389_v35, %v4898_v26  ;;  %v1519_v44 = vpop.f32.mrb[87].mxu1  ;;  %v1821_v23 = vmul.f32 %v1525_v6, %v1525_v6 }
 0x35a   : > { %1682 = vst [vmem:[%s4904_s5 + $0x1a0] sm:$0xff] %v1517_v24  ;;  %v1746_v49 = vadd.f32 %v1745_v30, %v1517_v24  ;;  %v1819_v53 = vmul.f32 %v1517_v24, %v1517_v24  ;;  %v1881_v59 = vadd.f32 %v1880_v20, %v1818_v15  ;;  %v1520_v0 = vadd.f32 %v4898_v26, %v1519_v44  ;;  %v1694_v44 = vld [vmem:[#allocation4] sm:$0x1] }
 0x35b   : > { %1685 = vst [vmem:[%s4904_s5 + $0x1b8] sm:$0xff] %v1528_v39  ;;  %v1822_v3 = vmul.f32 %v1528_v39, %v1528_v39 }
 0x35c   : > { %v1882_v5 = vadd.f32 %v1881_v59, %v1819_v53  ;;  %1683 = vst [vmem:[%s4904_s5 + $0x1a8] sm:$0xff] %v1520_v0  ;;  %v1747_v9 = vadd.f32 %v1746_v49, %v1520_v0  ;;  %v1820_v18 = vmul.f32 %v1520_v0, %v1520_v0  ;;  %v1766_v59 = vld [vmem:[#allocation5] sm:$0x1] }
 0x35e   : > { %v1748_v28 = vadd.f32 %v1747_v9, %v1525_v6  ;;  %v1883_v38 = vadd.f32 %v1882_v5, %v1820_v18  ;;  %v3392_v43 = vpop.f32.mrb[88].mxu1 }
 0x35f   : > { %v1541_v50 = vadd.f32 %v3392_v43, %v4898_v26  ;;  %v1532_v2 = vpop.f32.mrb[89].mxu1 }
 0x360   : > { %v1884_v4 = vadd.f32 %v1883_v38, %v1821_v23  ;;  %v1533_v7 = vadd.f32 %v4898_v26, %v1532_v2  ;;  %v1749_v8 = vadd.f32 %v1748_v28, %v1528_v39  ;;  %v3393_v11 = vpop.f32.mrb[90].mxu1 }
 0x361   : > { %1688 = vst [vmem:[%s4904_s5 + $0x1d0] sm:$0xff] %v1541_v50  ;;  %v1544_v12 = vadd.f32 %v3393_v11, %v4898_v26  ;;  %v1535_v13 = vpop.f32.mrb[91].mxu1  ;;  %v1825_v27 = vmul.f32 %v1541_v50, %v1541_v50  ;;  %v1918_v11 = vld [vmem:[%s5863_s15] sm:$0x1] (!%p3265_p3) }
 0x362   : > { %1686 = vst [vmem:[%s4904_s5 + $0x1c0] sm:$0xff] %v1533_v7  ;;  %v1750_v14 = vadd.f32 %v1749_v8, %v1533_v7  ;;  %v1823_v16 = vmul.f32 %v1533_v7, %v1533_v7  ;;  %v1885_v17 = vadd.f32 %v1884_v4, %v1822_v3  ;;  %v1536_v19 = vadd.f32 %v4898_v26, %v1535_v13  ;;  %v1913_v4 = vld [vmem:[%s5862_s20] sm:$0x1] (!%p3265_p3) }
 0x363   : > { %1689 = vst [vmem:[%s4904_s5 + $0x1d8] sm:$0xff] %v1544_v12  ;;  %v1826_v36 = vmul.f32 %v1544_v12, %v1544_v12 }
 0x364   : > { %v1886_v21 = vadd.f32 %v1885_v17, %v1823_v16  ;;  %1687 = vst [vmem:[%s4904_s5 + $0x1c8] sm:$0xff] %v1536_v19  ;;  %v1751_v22 = vadd.f32 %v1750_v14, %v1536_v19  ;;  %v1824_v25 = vmul.f32 %v1536_v19, %v1536_v19 }
 0x366   : > { %v1752_v29 = vadd.f32 %v1751_v22, %v1541_v50  ;;  %v1887_v31 = vadd.f32 %v1886_v21, %v1824_v25  ;;  %v3396_v32 = vpop.f32.mrb[92].mxu1 }
 0x367   : > { %v1557_v33 = vadd.f32 %v3396_v32, %v4898_v26  ;;  %v1548_v34 = vpop.f32.mrb[93].mxu1 }
 0x368   : > { %v1888_v37 = vadd.f32 %v1887_v31, %v1825_v27  ;;  %v1549_v40 = vadd.f32 %v4898_v26, %v1548_v34  ;;  %v1753_v41 = vadd.f32 %v1752_v29, %v1544_v12  ;;  %v3397_v42 = vpop.f32.mrb[94].mxu1 }
 0x369   : > { %1692 = vst [vmem:[%s4904_s5 + $0x1f0] sm:$0xff] %v1557_v33  ;;  %v1560_v45 = vadd.f32 %v3397_v42, %v4898_v26  ;;  %v1551_v46 = vpop.f32.mrb[95].mxu1  ;;  %v1829_v58 = vmul.f32 %v1557_v33, %v1557_v33 }
 0x36a   : > { %1690 = vst [vmem:[%s4904_s5 + $0x1e0] sm:$0xff] %v1549_v40  ;;  %v1754_v47 = vadd.f32 %v1753_v41, %v1549_v40  ;;  %v1827_v48 = vmul.f32 %v1549_v40, %v1549_v40  ;;  %v1889_v51 = vadd.f32 %v1888_v37, %v1826_v36  ;;  %v1552_v52 = vadd.f32 %v4898_v26, %v1551_v46 }
 0x36b   : > { %1693 = vst [vmem:[%s4904_s5 + $0x1f8] sm:$0xff] %v1560_v45  ;;  %v1830_v63 = vmul.f32 %v1560_v45, %v1560_v45 }
 0x36c   : > { %v1890_v54 = vadd.f32 %v1889_v51, %v1827_v48  ;;  %1691 = vst [vmem:[%s4904_s5 + $0x1e8] sm:$0xff] %v1552_v52  ;;  %v1755_v55 = vadd.f32 %v1754_v47, %v1552_v52  ;;  %v1828_v57 = vmul.f32 %v1552_v52, %v1552_v52 }
 0x36e   : > { %v1756_v61 = vadd.f32 %v1755_v55, %v1557_v33  ;;  %v1891_v62 = vadd.f32 %v1890_v54, %v1828_v57 }
 0x370   : > { %v1757_v56 = vadd.f32 %v1756_v61, %v1560_v45  ;;  %v1892_v60 = vadd.f32 %v1891_v62, %v1829_v58 }
 0x372   : > { %v1758_v1 = vrot.slane %v1757_v56, 4  ;;  %v1893_v6 = vadd.f32 %v1892_v60, %v1830_v63 }
 0x374   : > { %v1759_v10 = vadd.f32 %v1758_v1, %v1757_v56  ;;  %v1894_v15 = vrot.slane %v1893_v6, 4 }
 0x376   : > { %v1760_v20 = vrot.slane %v1759_v10, 2  ;;  %v1895_v24 = vadd.f32 %v1894_v15, %v1893_v6 }
 0x378   : > { %v1761_v30 = vadd.f32 %v1760_v20, %v1759_v10  ;;  %v1896_v35 = vrot.slane %v1895_v24, 2 }
 0x37a   : > { %v1762_v26 = vrot.slane %v1761_v30, 1  ;;  %v1897_v39 = vadd.f32 %v1896_v35, %v1895_v24 }
 0x37c   : > { %v1763_v49 = vadd.f32 %v1762_v26, %v1761_v30  ;;  %v1898_v53 = vrot.slane %v1897_v39, 1  ;;  %1905 = sbr.rel (%p3265_p3) target bundleno = 932 (0x3a4), region = 72 }
 0x37e   : > { %v1764_v0 = vadd.f32 %v1763_v49, %v1694_v44  ;;  %v1899_v5 = vadd.f32 %v1898_v53, %v1897_v39 }
 0x380   : > { %1765 = vst [vmem:[#allocation4] sm:$0x1] %v1764_v0  ;;  %v1900_v9 = vadd.f32 %v1899_v5, %v1766_v59 }
 0x382   : > { %1901 = vst [vmem:[#allocation5] sm:$0x1] %v1900_v9 }
 0x387   : > { %v1906_v18 = vld [vmem:[#allocation4] sm:$0x1] }
 0x388   : > { %v1907_v28 = vmul.f32 0.0009765625, %v1906_v18 }
 0x389   : > { %v1908_v23 = vld [vmem:[#allocation5] sm:$0x1] }
 0x38a   : > { %v1909_v38 = vmul.f32 0.0009765625, %v1908_v23  ;;  %v1910_v43 = vmul.f32 %v1907_v28, %v1907_v28 }
 0x38c   : > { %v1911_v50 = vsub.f32 %v1909_v38, %v1910_v43 }
 0x38e   : > { %v1912_v2 = vmax.f32 %v1911_v50, 0.0 }
 0x390   : > { %v1914_v3 = vadd.f32 1e-05, %v1912_v2 }
 0x392   : > { %3681 = vrsqrt.f32 %v1914_v3 }
 0x39c   : > { %v3682_v7 = vpop.eup %3681 }
 0x39d   : > { %v1916_v8 = vmul.f32 %v3682_v7, %v1913_v4 }
 0x39f   : > { %1917 = vst [vmem:[#allocation6] sm:$0x1] %v1916_v8  ;;  %v1919_v12 = vmul.f32 %v1916_v8, %v1907_v28 }
 0x3a1   : > { %v1920_v13 = vsub.f32 %v1918_v11, %v1919_v12 }
 0x3a3   : > { %1921 = vst [vmem:[#allocation7] sm:$0x1] %v1920_v13 }
 0x3a4 PF: > { %p3266_p13 = scmp.ne.s32.totalorder %s4269_s8, 1 }
 0x3a6   : > { %1925 = sbr.rel (%p3266_p13) target bundleno = 1271 (0x4f7), region = 76 }
 0x3ad   : > { %s3267_s27 = sshll.u32 %s4265_s30, 9  ;;  %v5041_v14 = vld [vmem:[#allocation6] ss:$0 sm:$0xff]  ;;  %v5048_v17 = vld [vmem:[#allocation7] ss:$0 sm:$0xff] }
 0x3ae   : > { %s5045_s19 = scalar_lea.vmem [#allocation3], %s3267_s27  ;;  %s5125_s14 = scalar_lea.vmem [#allocation2], %s3267_s27 }
 0x3af   : > { %v1995_v16 = vld [vmem:[%s5045_s19 + $0x10] sm:$0xff]  ;;  %v1993_v21 = vld [vmem:[%s5045_s19] sm:$0xff]  ;;  %v1996_v22 = vld [vmem:[%s5045_s19 + $0x18] sm:$0xff] }
 0x3b0   : > { %v2066_v19 = vmul.f32 %v5041_v14, %v1995_v16  ;;  %v2064_v25 = vmul.f32 %v5041_v14, %v1993_v21  ;;  %v2067_v27 = vmul.f32 %v5041_v14, %v1996_v22  ;;  %v1994_v29 = vld [vmem:[%s5045_s19 + $0x8] sm:$0xff]  ;;  %v1997_v34 = vld [vmem:[%s5045_s19 + $0x20] sm:$0xff]  ;;  %v2000_v42 = vld [vmem:[%s5045_s19 + $0x38] sm:$0xff] }
 0x3b1   : > { %v2065_v32 = vmul.f32 %v5041_v14, %v1994_v29  ;;  %v1998_v33 = vld [vmem:[%s5045_s19 + $0x28] sm:$0xff]  ;;  %v2068_v41 = vmul.f32 %v5041_v14, %v1997_v34  ;;  %v2071_v47 = vmul.f32 %v5041_v14, %v2000_v42  ;;  %v1999_v48 = vld [vmem:[%s5045_s19 + $0x30] sm:$0xff]  ;;  %v2001_v56 = vld [vmem:[%s5045_s19 + $0x40] sm:$0xff] }
 0x3b2   : > { %v2137_v31 = vadd.f32 %v5048_v17, %v2066_v19  ;;  %v2135_v36 = vadd.f32 %v5048_v17, %v2064_v25  ;;  %v2138_v37 = vadd.f32 %v5048_v17, %v2067_v27  ;;  %v2069_v40 = vmul.f32 %v5041_v14, %v1998_v33  ;;  %v2002_v63 = vld [vmem:[%s5045_s19 + $0x48] sm:$0xff]  ;;  %v2004_v30 = vld [vmem:[%s5045_s19 + $0x58] sm:$0xff]  ;;  %v2003_v35 = vld [vmem:[%s5045_s19 + $0x50] sm:$0xff] }
 0x3b3   : > { %v2136_v46 = vadd.f32 %v5048_v17, %v2065_v32  ;;  %v2139_v55 = vadd.f32 %v5048_v17, %v2068_v41  ;;  %v2142_v61 = vadd.f32 %v5048_v17, %v2071_v47  ;;  %v2070_v62 = vmul.f32 %v5041_v14, %v1999_v48  ;;  %v2006_v49 = vld [vmem:[%s5045_s19 + $0x68] sm:$0xff]  ;;  %v2005_v23 = vld [vmem:[%s5045_s19 + $0x60] sm:$0xff]  ;;  %v2008_v4 = vld [vmem:[%s5045_s19 + $0x78] sm:$0xff] }
 0x3b4   : > { %v2201_v45 = vsub.f32 0.0, %v2137_v31  ;;  %v2199_v51 = vsub.f32 0.0, %v2135_v36  ;;  %v2202_v52 = vsub.f32 0.0, %v2138_v37  ;;  %v2140_v54 = vadd.f32 %v5048_v17, %v2069_v40  ;;  %v2007_v12 = vld [vmem:[%s5045_s19 + $0x70] sm:$0xff]  ;;  %v2010_v29 = vld [vmem:[%s5045_s19 + $0x88] sm:$0xff]  ;;  %v2009_v47 = vld [vmem:[%s5045_s19 + $0x80] sm:$0xff] }
 0x3b5   : > { %v2200_v58 = vsub.f32 0.0, %v2136_v46  ;;  %v2203_v10 = vsub.f32 0.0, %v2139_v55  ;;  %v2206_v20 = vsub.f32 0.0, %v2142_v61  ;;  %v2141_v24 = vadd.f32 %v5048_v17, %v2070_v62  ;;  %v2012_v62 = vld [vmem:[%s5045_s19 + $0x98] sm:$0xff] }
 0x3b6   : > { %v2267_v57 = vmul.f32 1.442695, %v2201_v45  ;;  %v2263_v60 = vmul.f32 1.442695, %v2199_v51  ;;  %v2269_v1 = vmul.f32 1.442695, %v2202_v52  ;;  %v2073_v44 = vmul.f32 %v5041_v14, %v2002_v63 }
 0x3b7   : > { %v2204_v6 = vsub.f32 0.0, %v2140_v54  ;;  %v2265_v15 = vmul.f32 1.442695, %v2200_v58  ;;  %v2271_v39 = vmul.f32 1.442695, %v2203_v10  ;;  %v2205_v59 = vsub.f32 0.0, %v2141_v24 }
 0x3b8   : > { %3683 = vpow2.f32 %v2267_v57  ;;  %v2277_v53 = vmul.f32 1.442695, %v2206_v20  ;;  %v2072_v0 = vmul.f32 %v5041_v14, %v2001_v56  ;;  %v2144_v5 = vadd.f32 %v5048_v17, %v2073_v44  ;;  %v2014_v44 = vld [vmem:[%s5045_s19 + $0xa8] sm:$0xff] }
 0x3b9   : > { %3685 = vpow2.f32 %v2263_v60  ;;  %v2273_v26 = vmul.f32 1.442695, %v2204_v6  ;;  %v2075_v9 = vmul.f32 %v5041_v14, %v2004_v30  ;;  %v2074_v18 = vmul.f32 %v5041_v14, %v2003_v35  ;;  %v2011_v6 = vld [vmem:[%s5045_s19 + $0x90] sm:$0xff] }
 0x3ba   : > { %3687 = vpow2.f32 %v2269_v1  ;;  %v2275_v28 = vmul.f32 1.442695, %v2205_v59  ;;  %v2143_v38 = vadd.f32 %v5048_v17, %v2072_v0  ;;  %v2077_v43 = vmul.f32 %v5041_v14, %v2006_v49  ;;  %v2013_v49 = vld [vmem:[%s5045_s19 + $0xa0] sm:$0xff] }
 0x3bb   : > { %3689 = vpow2.f32 %v2265_v15  ;;  %v2208_v50 = vsub.f32 0.0, %v2144_v5  ;;  %v2146_v2 = vadd.f32 %v5048_v17, %v2075_v9  ;;  %v2145_v3 = vadd.f32 %v5048_v17, %v2074_v18 }
 0x3bc   : > { %3691 = vpow2.f32 %v2273_v26  ;;  %v2207_v7 = vsub.f32 0.0, %v2143_v38  ;;  %v2148_v8 = vadd.f32 %v5048_v17, %v2077_v43  ;;  %v2076_v11 = vmul.f32 %v5041_v14, %v2005_v23 }
 0x3bd   : > { %3693 = vpow2.f32 %v2271_v39  ;;  %v2281_v13 = vmul.f32 1.442695, %v2208_v50  ;;  %v2210_v16 = vsub.f32 0.0, %v2146_v2  ;;  %v2209_v19 = vsub.f32 0.0, %v2145_v3 }
 0x3be   : > { %3695 = vpow2.f32 %v2277_v53  ;;  %v2279_v21 = vmul.f32 1.442695, %v2207_v7  ;;  %v2212_v22 = vsub.f32 0.0, %v2148_v8  ;;  %v2147_v25 = vadd.f32 %v5048_v17, %v2076_v11  ;;  %v1930_v11 = vld [vmem:[%s5125_s14 + $0x10] sm:$0xff] }
 0x3bf   : > { %3697 = vpow2.f32 %v2275_v28  ;;  %v2079_v27 = vmul.f32 %v5041_v14, %v2008_v4  ;;  %v2285_v31 = vmul.f32 1.442695, %v2210_v16  ;;  %v2283_v32 = vmul.f32 1.442695, %v2209_v19  ;;  %v2016_v19 = vld [vmem:[%s5045_s19 + $0xb8] sm:$0xff] }
 0x3c0   : > { %3699 = vpow2.f32 %v2281_v13  ;;  %v2078_v33 = vmul.f32 %v5041_v14, %v2007_v12  ;;  %v2289_v36 = vmul.f32 1.442695, %v2212_v22  ;;  %v2211_v37 = vsub.f32 0.0, %v2147_v25  ;;  %v1928_v22 = vld [vmem:[%s5125_s14] sm:$0xff] }
 0x3c1   : > { %3701 = vpow2.f32 %v2279_v21  ;;  %v2150_v40 = vadd.f32 %v5048_v17, %v2079_v27  ;;  %v2081_v46 = vmul.f32 %v5041_v14, %v2010_v29  ;;  %v2080_v1 = vmul.f32 %v5041_v14, %v2009_v47 }
 0x3c2   : > { %v3684_v34 = vpop.eup %3683  ;;  %3703 = vpow2.f32 %v2285_v31  ;;  %v2149_v45 = vadd.f32 %v5048_v17, %v2078_v33  ;;  %v5100_v52 = vmul.f32 1.442695, %v2211_v37  ;;  %v2083_v39 = vmul.f32 %v5041_v14, %v2012_v62  ;;  %v2015_v31 = vld [vmem:[%s5045_s19 + $0xb0] sm:$0xff]  ;;  %v1931_v33 = vld [vmem:[%s5125_s14 + $0x18] sm:$0xff]  ;;  %v1932_v62 = vld [vmem:[%s5125_s14 + $0x20] sm:$0xff] }
 0x3c3   : > { %v3686_v41 = vpop.eup %3685  ;;  %v2393_v42 = vadd.f32 1.0, %v3684_v34  ;;  %3705 = vpow2.f32 %v2283_v32  ;;  %v2214_v54 = vsub.f32 0.0, %v2150_v40  ;;  %v2152_v61 = vadd.f32 %v5048_v17, %v2081_v46 }
 0x3c4   : > { %v3688_v48 = vpop.eup %3687  ;;  %v2391_v51 = vadd.f32 1.0, %v3686_v41  ;;  %v2213_v58 = vsub.f32 0.0, %v2149_v45  ;;  %v2151_v26 = vadd.f32 %v5048_v17, %v2080_v1  ;;  %v2082_v5 = vmul.f32 %v5041_v14, %v2011_v6 }
 0x3c5   : > { %v3690_v55 = vpop.eup %3689  ;;  %3707 = vrcp.f32 %v2393_v42  ;;  %v2394_v57 = vadd.f32 1.0, %v3688_v48  ;;  %v5104_v60 = vmul.f32 1.442695, %v2214_v54  ;;  %v2216_v24 = vsub.f32 0.0, %v2152_v61  ;;  %v1929_v42 = vld [vmem:[%s5125_s14 + $0x8] sm:$0xff] }
 0x3c6   : > { %v3692_v63 = vpop.eup %3691  ;;  %3709 = vrcp.f32 %v2391_v51  ;;  %v2392_v56 = vadd.f32 1.0, %v3690_v55  ;;  %v5108_v20 = vmul.f32 1.442695, %v2213_v58  ;;  %v2215_v18 = vsub.f32 0.0, %v2151_v26  ;;  %v1933_v51 = vld [vmem:[%s5125_s14 + $0x28] sm:$0xff] }
 0x3c7   : > { %v3694_v10 = vpop.eup %3693  ;;  %3711 = vrcp.f32 %v2394_v57  ;;  %v2396_v15 = vadd.f32 1.0, %v3692_v63  ;;  %v5114_v0 = vmul.f32 1.442695, %v2216_v24  ;;  %v2154_v23 = vadd.f32 %v5048_v17, %v2083_v39 }
 0x3c8   : > { %v3696_v30 = vpop.eup %3695  ;;  %3713 = vrcp.f32 %v2392_v56  ;;  %v2395_v35 = vadd.f32 1.0, %v3694_v10  ;;  %v2153_v38 = vadd.f32 %v5048_v17, %v2082_v5  ;;  %v2085_v43 = vmul.f32 %v5041_v14, %v2014_v44  ;;  %v1935_v10 = vld [vmem:[%s5125_s14 + $0x38] sm:$0xff]  ;;  %v1937_v5 = vld [vmem:[%s5125_s14 + $0x48] sm:$0xff] }
 0x3c9   : > { %v3698_v53 = vpop.eup %3697  ;;  %3715 = vrcp.f32 %v2396_v15  ;;  %v2398_v59 = vadd.f32 1.0, %v3696_v30  ;;  %v2084_v50 = vmul.f32 %v5041_v14, %v2013_v49  ;;  %v5121_v4 = vmul.f32 1.442695, %v2215_v18  ;;  %v2018_v18 = vld [vmem:[%s5045_s19 + $0xc8] sm:$0xff] }
 0x3ca   : > { %3717 = vrcp.f32 %v2395_v35  ;;  %v2397_v9 = vadd.f32 1.0, %v3698_v53  ;;  %v3700_v28 = vpop.eup %3699  ;;  %v2218_v7 = vsub.f32 0.0, %v2154_v23  ;;  %v2217_v13 = vsub.f32 0.0, %v2153_v38 }
 0x3cb   : > { %3719 = vrcp.f32 %v2398_v59  ;;  %v3702_v2 = vpop.eup %3701  ;;  %v2400_v3 = vadd.f32 1.0, %v3700_v28  ;;  %v2156_v16 = vadd.f32 %v5048_v17, %v2085_v43  ;;  %v2155_v29 = vadd.f32 %v5048_v17, %v2084_v50  ;;  %v2017_v50 = vld [vmem:[%s5045_s19 + $0xc0] sm:$0xff] }
 0x3cc   : > { %3721 = vrcp.f32 %v2397_v9  ;;  %v3704_v8 = vpop.eup %3703  ;;  %v2399_v12 = vadd.f32 1.0, %v3702_v2  ;;  %v2301_v27 = vmul.f32 1.442695, %v2218_v7  ;;  %v2299_v37 = vmul.f32 1.442695, %v2217_v13  ;;  %v2020_v2 = vld [vmem:[%s5045_s19 + $0xd8] sm:$0xff] }
 0x3cd   : > { %3723 = vpow2.f32 %v2289_v36  ;;  %v3706_v21 = vpop.eup %3705  ;;  %v2402_v25 = vadd.f32 1.0, %v3704_v8  ;;  %v2220_v36 = vsub.f32 0.0, %v2156_v16  ;;  %v2219_v45 = vsub.f32 0.0, %v2155_v29 }
 0x3ce   : > { %3725 = vrcp.f32 %v2400_v3  ;;  %v2401_v34 = vadd.f32 1.0, %v3706_v21  ;;  %v2087_v46 = vmul.f32 %v5041_v14, %v2016_v19  ;;  %v2086_v55 = vmul.f32 %v5041_v14, %v2015_v31  ;;  %v1938_v19 = vld [vmem:[%s5125_s14 + $0x50] sm:$0xff] }
 0x3cf   : > { %v3708_v32 = vpop.eup %3707  ;;  %3727 = vrcp.f32 %v2399_v12  ;;  %v2305_v54 = vmul.f32 1.442695, %v2220_v36  ;;  %v2303_v63 = vmul.f32 1.442695, %v2219_v45  ;;  %v2089_v21 = vmul.f32 %v5041_v14, %v2018_v18  ;;  %v2019_v45 = vld [vmem:[%s5045_s19 + $0xd0] sm:$0xff] }
 0x3d0   : > { %v3710_v40 = vpop.eup %3709  ;;  %v5134_v41 = vmul.f32 %v3708_v32, %v1930_v11  ;;  %3729 = vrcp.f32 %v2402_v25  ;;  %v2158_v15 = vadd.f32 %v5048_v17, %v2087_v46  ;;  %v2157_v26 = vadd.f32 %v5048_v17, %v2086_v55 }
 0x3d1   : > { %v3712_v47 = vpop.eup %3711  ;;  %v5138_v48 = vmul.f32 %v3710_v40, %v1928_v22  ;;  %3731 = vrcp.f32 %v2401_v34  ;;  %v2091_v29 = vmul.f32 %v5041_v14, %v2020_v2  ;;  %v2160_v34 = vadd.f32 %v5048_v17, %v2089_v21 }
 0x3d2   : > { %v3714_v57 = vpop.eup %3713  ;;  %v2585_v58 = vmul.f32 %v5134_v41, %v5134_v41  ;;  %v5144_v61 = vmul.f32 %v3712_v47, %v1931_v33  ;;  %3733 = vpow2.f32 %v5100_v52  ;;  %v1934_v52 = vld [vmem:[%s5125_s14 + $0x30] sm:$0xff]  ;;  %v2222_v49 = vsub.f32 0.0, %v2158_v15 }
 0x3d3   : > { %v3716_v56 = vpop.eup %3715  ;;  %v2583_v1 = vmul.f32 %v5138_v48, %v5138_v48  ;;  %v5150_v6 = vmul.f32 %v3714_v57, %v1929_v42  ;;  %3735 = vpow2.f32 %v5104_v60  ;;  %v2221_v9 = vsub.f32 0.0, %v2157_v26 }
 0x3d4   : > { %v3718_v24 = vpop.eup %3717  ;;  %2651 = vadd.xlane.f32.xlu1 %v2585_v58  ;;  %v2586_v30 = vmul.f32 %v5144_v61, %v5144_v61  ;;  %v5157_v35 = vmul.f32 %v3716_v56, %v1933_v51  ;;  %3737 = vpow2.f32 %v5108_v20  ;;  %v2309_v43 = vmul.f32 1.442695, %v2222_v49  ;;  %v2022_v56 = vld [vmem:[%s5045_s19 + $0xe8] sm:$0xff] }
 0x3d5   : > { %v3720_v39 = vpop.eup %3719  ;;  %2647 = vadd.xlane.f32.xlu0 %v2583_v1  ;;  %v2584_v60 = vmul.f32 %v5150_v6, %v5150_v6  ;;  %v5164_v44 = vmul.f32 %v3718_v24, %v1932_v62  ;;  %3739 = vpow2.f32 %v5114_v0  ;;  %v1936_v0 = vld [vmem:[%s5125_s14 + $0x40] sm:$0xff]  ;;  %v2307_v11 = vmul.f32 1.442695, %v2221_v9  ;;  %v2024_v9 = vld [vmem:[%s5045_s19 + $0xf8] sm:$0xff] }
 0x3d6   : > { %v3722_v53 = vpop.eup %3721  ;;  %v2588_v59 = vmul.f32 %v5157_v35, %v5157_v35  ;;  %v5169_v20 = vmul.f32 %v3720_v39, %v1935_v10  ;;  %3741 = vpow2.f32 %v5121_v4  ;;  %v1939_v4 = vld [vmem:[%s5125_s14 + $0x58] sm:$0xff]  ;;  %v2090_v24 = vmul.f32 %v5041_v14, %v2019_v45 }
 0x3d7   : > { %v3724_v23 = vpop.eup %3723  ;;  %v2587_v28 = vmul.f32 %v5164_v44, %v5164_v44  ;;  %v5176_v38 = vmul.f32 %v3722_v53, %v1934_v52  ;;  %3743 = vpow2.f32 %v2301_v27  ;;  %v2088_v27 = vmul.f32 %v5041_v14, %v2017_v50 }
 0x3d8   : > { %v3726_v3 = vpop.eup %3725  ;;  %2653 = vadd.xlane.f32.xlu1 %v2586_v30  ;;  %v2590_v7 = vmul.f32 %v5169_v20, %v5169_v20  ;;  %v2404_v8 = vadd.f32 1.0, %v3724_v23  ;;  %3745 = vpow2.f32 %v2299_v37  ;;  %v2021_v30 = vld [vmem:[%s5045_s19 + $0xe0] sm:$0xff]  ;;  %v1941_v23 = vld [vmem:[%s5125_s14 + $0x68] sm:$0xff] }
 0x3d9   : > { %v3728_v12 = vpop.eup %3727  ;;  %2649 = vadd.xlane.f32.xlu0 %v2584_v60  ;;  %v2589_v13 = vmul.f32 %v5176_v38, %v5176_v38  ;;  %v5186_v16 = vmul.f32 %v3726_v3, %v1937_v5  ;;  %3747 = vpow2.f32 %v2305_v54  ;;  %v2159_v42 = vadd.f32 %v5048_v17, %v2088_v27 }
 0x3da   : > { %v3730_v22 = vpop.eup %3729  ;;  %v5190_v25 = vmul.f32 %v3728_v12, %v1936_v0  ;;  %3749 = vrcp.f32 %v2404_v8  ;;  %v2224_v54 = vsub.f32 0.0, %v2160_v34  ;;  %v2093_v5 = vmul.f32 %v5041_v14, %v2022_v56  ;;  %v2023_v34 = vld [vmem:[%s5045_s19 + $0xf0] sm:$0xff] }
 0x3db   : > { %v3732_v31 = vpop.eup %3731  ;;  %v2592_v32 = vmul.f32 %v5186_v16, %v5186_v16  ;;  %v5196_v33 = vmul.f32 %v3730_v22, %v1939_v4  ;;  %3751 = vpow2.f32 %v2303_v63  ;;  %v2223_v62 = vsub.f32 0.0, %v2159_v42  ;;  %v2025_v42 = vld [vmem:[%s5045_s19 + $0x100] sm:$0xff] }
 0x3dc   : > { %v3734_v37 = vpop.eup %3733  ;;  %2657 = vadd.xlane.f32.xlu1 %v2588_v59  ;;  %v2591_v36 = vmul.f32 %v5190_v25, %v5190_v25  ;;  %v5201_v40 = vmul.f32 %v3732_v31, %v1938_v19  ;;  %3753 = vpow2.f32 %v2309_v43  ;;  %v2162_v63 = vadd.f32 %v5048_v17, %v2091_v29 }
 0x3dd   : > { %v3736_v46 = vpop.eup %3735  ;;  %2655 = vadd.xlane.f32.xlu0 %v2587_v28  ;;  %v5207_v47 = vmul.f32 %v5196_v33, %v5196_v33  ;;  %v2403_v51 = vadd.f32 1.0, %v3734_v37  ;;  %3755 = vpow2.f32 %v2307_v11  ;;  %v2313_v15 = vmul.f32 1.442695, %v2224_v54  ;;  %v2026_v37 = vld [vmem:[%s5045_s19 + $0x108] sm:$0xff] }
 0x3de   : > { %v3738_v55 = vpop.eup %3737  ;;  %v5211_v57 = vmul.f32 %v5201_v40, %v5201_v40  ;;  %v2406_v58 = vadd.f32 1.0, %v3736_v46  ;;  %v5217_v39 = vmul.f32 1.442695, %v2223_v62  ;;  %v2226_v60 = vsub.f32 0.0, %v2162_v63  ;;  %v1940_v46 = vld [vmem:[%s5125_s14 + $0x60] sm:$0xff] }
 0x3df   : > { %v3740_v1 = vpop.eup %3739  ;;  %3757 = vrcp.f32 %v2403_v51  ;;  %v2405_v10 = vadd.f32 1.0, %v3738_v55  ;;  %v2161_v59 = vadd.f32 %v5048_v17, %v2090_v24  ;;  %v2092_v43 = vmul.f32 %v5041_v14, %v2021_v30  ;;  %v2028_v55 = vld [vmem:[%s5045_s19 + $0x118] sm:$0xff] }
 0x3e0   : > { %v3742_v52 = vpop.eup %3741  ;;  %2661 = vadd.xlane.f32.xlu1 %v2590_v7  ;;  %3759 = vrcp.f32 %v2406_v58  ;;  %v2408_v26 = vadd.f32 1.0, %v3740_v1  ;;  %v5223_v0 = vmul.f32 1.442695, %v2226_v60  ;;  %v2164_v7 = vadd.f32 %v5048_v17, %v2093_v5  ;;  %v1943_v58 = vld [vmem:[%s5125_s14 + $0x78] sm:$0xff] }
 0x3e1   : > { %v3744_v49 = vpop.eup %3743  ;;  %2659 = vadd.xlane.f32.xlu0 %v2589_v13  ;;  %3761 = vrcp.f32 %v2405_v10  ;;  %v2407_v53 = vadd.f32 1.0, %v3742_v52  ;;  %v2225_v3 = vsub.f32 0.0, %v2161_v59  ;;  %v2163_v11 = vadd.f32 %v5048_v17, %v2092_v43  ;;  %v1942_v10 = vld [vmem:[%s5125_s14 + $0x70] sm:$0xff]  ;;  %v1944_v59 = vld [vmem:[%s5125_s14 + $0x80] sm:$0xff]  ;;  %v1947_v43 = vld [vmem:[%s5125_s14 + $0x98] sm:$0xff] }
 0x3e2   : > { %v3746_v18 = vpop.eup %3745  ;;  %3763 = vrcp.f32 %v2408_v26  ;;  %v2410_v28 = vadd.f32 1.0, %v3744_v49  ;;  %v2095_v12 = vmul.f32 %v5041_v14, %v2024_v9  ;;  %v2228_v22 = vsub.f32 0.0, %v2164_v7  ;;  %v1945_v26 = vld [vmem:[%s5125_s14 + $0x88] sm:$0xff]  ;;  %v1946_v7 = vld [vmem:[%s5125_s14 + $0x90] sm:$0xff] }
 0x3e3   : > { %v3748_v50 = vpop.eup %3747  ;;  %3765 = vrcp.f32 %v2407_v53  ;;  %v2409_v2 = vadd.f32 1.0, %v3746_v18  ;;  %v2315_v21 = vmul.f32 1.442695, %v2225_v3  ;;  %v2227_v31 = vsub.f32 0.0, %v2163_v11 }
 0x3e4   : > { %v3750_v4 = vpop.eup %3749  ;;  %2665 = vadd.xlane.f32.xlu1 %v2592_v32  ;;  %3767 = vrcp.f32 %v2410_v28  ;;  %v2412_v8 = vadd.f32 1.0, %v3748_v50  ;;  %v2166_v32 = vadd.f32 %v5048_v17, %v2095_v12  ;;  %v2321_v54 = vmul.f32 1.442695, %v2228_v22 }
 0x3e5   : > { %v3752_v13 = vpop.eup %3751  ;;  %2663 = vadd.xlane.f32.xlu0 %v2591_v36  ;;  %v5229_v19 = vmul.f32 %v3750_v4, %v1941_v23  ;;  %3769 = vrcp.f32 %v2409_v2  ;;  %v2319_v63 = vmul.f32 1.442695, %v2227_v31  ;;  %v2094_v24 = vmul.f32 %v5041_v14, %v2023_v34 }
 0x3e6   : > { %v3754_v27 = vpop.eup %3753  ;;  %3771 = vrcp.f32 %v2412_v8  ;;  %v2411_v29 = vadd.f32 1.0, %v3752_v13  ;;  %v2230_v56 = vsub.f32 0.0, %v2166_v32  ;;  %v2096_v30 = vmul.f32 %v5041_v14, %v2025_v42 }
 0x3e7   : > { %v3756_v45 = vpop.eup %3755  ;;  %v2596_v36 = vmul.f32 %v5229_v19, %v5229_v19  ;;  %v2414_v51 = vadd.f32 1.0, %v3754_v27  ;;  %3773 = vpow2.f32 %v2313_v15  ;;  %v2097_v15 = vmul.f32 %v5041_v14, %v2026_v37  ;;  %v1948_v37 = vld [vmem:[%s5125_s14 + $0xa0] sm:$0xff] }
 0x3e8   : > { %2669 = vadd.xlane.f32.xlu1 %v5207_v47  ;;  %3775 = vrcp.f32 %v2411_v29  ;;  %v2413_v62 = vadd.f32 1.0, %v3756_v45  ;;  %v2325_v60 = vmul.f32 1.442695, %v2230_v56  ;;  %v2099_v49 = vmul.f32 %v5041_v14, %v2028_v55  ;;  %v2027_v45 = vld [vmem:[%s5045_s19 + $0x110] sm:$0xff] }
 0x3e9   : > { %v3758_v1 = vpop.eup %3757  ;;  %2667 = vadd.xlane.f32.xlu0 %v5211_v57  ;;  %3777 = vrcp.f32 %v2414_v51  ;;  %v2165_v5 = vadd.f32 %v5048_v17, %v2094_v24  ;;  %v2168_v9 = vadd.f32 %v5048_v17, %v2097_v15  ;;  %v2167_v50 = vadd.f32 %v5048_v17, %v2096_v30  ;;  %v1950_v56 = vld [vmem:[%s5125_s14 + $0xb0] sm:$0xff] }
 0x3ea   : > { %v3760_v52 = vpop.eup %3759  ;;  %v5246_v47 = vmul.f32 %v3758_v1, %v1940_v46  ;;  %3779 = vrcp.f32 %v2413_v62 }
 0x3eb   : > { %v3762_v53 = vpop.eup %3761  ;;  %v5250_v57 = vmul.f32 %v3760_v52, %v1943_v58  ;;  %3781 = vpow2.f32 %v5217_v39  ;;  %v2229_v4 = vsub.f32 0.0, %v2165_v5  ;;  %v2232_v13 = vsub.f32 0.0, %v2168_v9  ;;  %v2030_v58 = vld [vmem:[%s5045_s19 + $0x128] sm:$0xff]  ;;  %v2029_v9 = vld [vmem:[%s5045_s19 + $0x120] sm:$0xff] }
 0x3ec   : > { %v3764_v18 = vpop.eup %3763  ;;  %2673 = vadd.xlane.f32.xlu1 %v2596_v36  ;;  %v2595_v23 = vmul.f32 %v5246_v47, %v5246_v47  ;;  %v5258_v28 = vmul.f32 %v3762_v53, %v1942_v10  ;;  %3783 = vpow2.f32 %v5223_v0  ;;  %v1949_v0 = vld [vmem:[%s5125_s14 + $0xa8] sm:$0xff]  ;;  %v2231_v55 = vsub.f32 0.0, %v2167_v50  ;;  %v2032_v50 = vld [vmem:[%s5045_s19 + $0x138] sm:$0xff] }
 0x3ed   : > { %v3766_v2 = vpop.eup %3765  ;;  %v2598_v39 = vmul.f32 %v5250_v57, %v5250_v57  ;;  %v5265_v3 = vmul.f32 %v3764_v18, %v1945_v26  ;;  %3785 = vpow2.f32 %v2315_v21  ;;  %v2323_v21 = vmul.f32 1.442695, %v2229_v4 }
 0x3ee   : > { %v3768_v8 = vpop.eup %3767  ;;  %2671 = vadd.xlane.f32.xlu0 %v2595_v23  ;;  %v2597_v11 = vmul.f32 %v5258_v28, %v5258_v28  ;;  %v5270_v12 = vmul.f32 %v3766_v2, %v1944_v59  ;;  %3787 = vpow2.f32 %v2321_v54  ;;  %v2329_v42 = vmul.f32 1.442695, %v2232_v13  ;;  %v1951_v54 = vld [vmem:[%s5125_s14 + $0xb8] sm:$0xff] }
 0x3ef   : > { %v3770_v22 = vpop.eup %3769  ;;  %v2600_v27 = vmul.f32 %v5265_v3, %v5265_v3  ;;  %v5275_v29 = vmul.f32 %v3768_v8, %v1947_v43  ;;  %3789 = vpow2.f32 %v2319_v63  ;;  %v2170_v10 = vadd.f32 %v5048_v17, %v2099_v49 }
 0x3f0   : > { %v3772_v31 = vpop.eup %3771  ;;  %2677 = vadd.xlane.f32.xlu1 %v2598_v39  ;;  %v2599_v32 = vmul.f32 %v5270_v12, %v5270_v12  ;;  %v5279_v34 = vmul.f32 %v3770_v22, %v1946_v7  ;;  %3791 = vpow2.f32 %v2325_v60  ;;  %v2327_v52 = vmul.f32 1.442695, %v2231_v55 }
 0x3f1   : > { %v3774_v36 = vpop.eup %3773  ;;  %v2602_v46 = vmul.f32 %v5275_v29, %v5275_v29  ;;  %v5285_v51 = vmul.f32 %v3772_v31, %v1949_v0  ;;  %3793 = vpow2.f32 %v2323_v21  ;;  %v2098_v26 = vmul.f32 %v5041_v14, %v2027_v45 }
 0x3f2   : > { %v3776_v62 = vpop.eup %3775  ;;  %2675 = vadd.xlane.f32.xlu0 %v2597_v11  ;;  %v2601_v63 = vmul.f32 %v5279_v34, %v5279_v34  ;;  %v2416_v1 = vadd.f32 1.0, %v3774_v36  ;;  %3795 = vpow2.f32 %v2329_v42  ;;  %v2234_v59 = vsub.f32 0.0, %v2170_v10  ;;  %v2031_v42 = vld [vmem:[%s5045_s19 + $0x130] sm:$0xff] }
 0x3f3   : > { %v3778_v24 = vpop.eup %3777  ;;  %v2604_v15 = vmul.f32 %v5285_v51, %v5285_v51  ;;  %v5295_v30 = vmul.f32 %v3776_v62, %v1948_v37  ;;  %v2101_v5 = vmul.f32 %v5041_v14, %v2030_v58  ;;  %v2169_v43 = vadd.f32 %v5048_v17, %v2098_v26  ;;  %v2034_v58 = vld [vmem:[%s5045_s19 + $0x148] sm:$0xff] }
 0x3f4   : > { %v3780_v60 = vpop.eup %3779  ;;  %2681 = vadd.xlane.f32.xlu1 %v2600_v27  ;;  %v5298_v53 = vmul.f32 %v3778_v24, %v1951_v54  ;;  %3797 = vrcp.f32 %v2416_v1  ;;  %v2333_v4 = vmul.f32 1.442695, %v2234_v59  ;;  %v2100_v27 = vmul.f32 %v5041_v14, %v2029_v9 }
 0x3f5   : > { %v3782_v49 = vpop.eup %3781  ;;  %v2603_v18 = vmul.f32 %v5295_v30, %v5295_v30  ;;  %v5304_v23 = vmul.f32 %v3780_v60, %v1950_v56  ;;  %3799 = vpow2.f32 %v2327_v52  ;;  %v2172_v8 = vadd.f32 %v5048_v17, %v2101_v5  ;;  %v2033_v60 = vld [vmem:[%s5045_s19 + $0x140] sm:$0xff]  ;;  %v1953_v5 = vld [vmem:[%s5125_s14 + $0xc8] sm:$0xff] }
 0x3f6   : > { %v3784_v2 = vpop.eup %3783  ;;  %2679 = vadd.xlane.f32.xlu0 %v2599_v32  ;;  %v2606_v39 = vmul.f32 %v5298_v53, %v5298_v53  ;;  %v2415_v7 = vadd.f32 1.0, %v3782_v49  ;;  %v2233_v22 = vsub.f32 0.0, %v2169_v43  ;;  %v2103_v37 = vmul.f32 %v5041_v14, %v2032_v50  ;;  %v2036_v43 = vld [vmem:[%s5045_s19 + $0x158] sm:$0xff] }
 0x3f7   : > { %v3786_v11 = vpop.eup %3785  ;;  %v5313_v0 = vmul.f32 %v5304_v23, %v5304_v23  ;;  %v2418_v13 = vadd.f32 1.0, %v3784_v2  ;;  %v2236_v32 = vsub.f32 0.0, %v2172_v8  ;;  %v2171_v55 = vadd.f32 %v5048_v17, %v2100_v27 }
 0x3f8   : > { %v3788_v21 = vpop.eup %3787  ;;  %2685 = vadd.xlane.f32.xlu1 %v2602_v46  ;;  %3801 = vrcp.f32 %v2415_v7  ;;  %v2417_v31 = vadd.f32 1.0, %v3786_v11  ;;  %v2331_v54 = vmul.f32 1.442695, %v2233_v22  ;;  %v2174_v1 = vadd.f32 %v5048_v17, %v2103_v37  ;;  %v1952_v37 = vld [vmem:[%s5125_s14 + $0xc0] sm:$0xff] }
 0x3f9   : > { %v3790_v45 = vpop.eup %3789  ;;  %3803 = vrcp.f32 %v2418_v13  ;;  %v2420_v36 = vadd.f32 1.0, %v3788_v21  ;;  %v2337_v46 = vmul.f32 1.442695, %v2236_v32  ;;  %v2235_v52 = vsub.f32 0.0, %v2171_v55  ;;  %v2035_v32 = vld [vmem:[%s5045_s19 + $0x150] sm:$0xff] }
 0x3fa   : > { %v3792_v62 = vpop.eup %3791  ;;  %2683 = vadd.xlane.f32.xlu0 %v2601_v63  ;;  %3805 = vrcp.f32 %v2417_v31  ;;  %v2419_v56 = vadd.f32 1.0, %v3790_v45  ;;  %v2102_v26 = vmul.f32 %v5041_v14, %v2031_v42  ;;  %v2238_v49 = vsub.f32 0.0, %v2174_v1 }
 0x3fb   : > { %v3794_v10 = vpop.eup %3793  ;;  %3807 = vrcp.f32 %v2420_v36  ;;  %v2422_v24 = vadd.f32 1.0, %v3792_v62  ;;  %v2105_v63 = vmul.f32 %v5041_v14, %v2034_v58  ;;  %v2335_v2 = vmul.f32 1.442695, %v2235_v52  ;;  %v2038_v36 = vld [vmem:[%s5045_s19 + $0x168] sm:$0xff]  ;;  %v1955_v58 = vld [vmem:[%s5125_s14 + $0xd8] sm:$0xff] }
 0x3fc   : > { %v3796_v59 = vpop.eup %3795  ;;  %2689 = vadd.xlane.f32.xlu1 %v2604_v15  ;;  %3809 = vrcp.f32 %v2419_v56  ;;  %v2421_v9 = vadd.f32 1.0, %v3794_v10  ;;  %v2173_v7 = vadd.f32 %v5048_v17, %v2102_v26  ;;  %v2341_v11 = vmul.f32 1.442695, %v2238_v49 }
 0x3fd   : > { %3811 = vrcp.f32 %v2422_v24  ;;  %v2424_v50 = vadd.f32 1.0, %v3796_v59  ;;  %v2176_v15 = vadd.f32 %v5048_v17, %v2105_v63  ;;  %v2104_v13 = vmul.f32 %v5041_v14, %v2033_v60  ;;  %v1957_v60 = vld [vmem:[%s5125_s14 + $0xe8] sm:$0xff] }
 0x3fe   : > { %v3798_v8 = vpop.eup %3797  ;;  %2687 = vadd.xlane.f32.xlu0 %v2603_v18  ;;  %3813 = vrcp.f32 %v2421_v9  ;;  %v2237_v21 = vsub.f32 0.0, %v2173_v7  ;;  %v2107_v31 = vmul.f32 %v5041_v14, %v2036_v43  ;;  %v2106_v24 = vmul.f32 %v5041_v14, %v2035_v32  ;;  %v5366_v32 = vld [vmem:[#allocation7] ss:$0 sm:$0xff] }
 0x3ff   : > { %v3800_v22 = vpop.eup %3799  ;;  %v5329_v27 = vmul.f32 %v3798_v8, %v1953_v5  ;;  %3815 = vrcp.f32 %v2424_v50  ;;  %v2240_v42 = vsub.f32 0.0, %v2176_v15  ;;  %v2175_v45 = vadd.f32 %v5048_v17, %v2104_v13 }
 0x400   : > { %2693 = vadd.xlane.f32.xlu1 %v2606_v39  ;;  %v2423_v18 = vadd.f32 1.0, %v3800_v22  ;;  %3817 = vpow2.f32 %v2333_v4  ;;  %v2339_v62 = vmul.f32 1.442695, %v2237_v21  ;;  %v2178_v56 = vadd.f32 %v5048_v17, %v2107_v31  ;;  %v1954_v39 = vld [vmem:[%s5125_s14 + $0xd0] sm:$0xff] }
 0x401   : > { %v2608_v55 = vmul.f32 %v5329_v27, %v5329_v27  ;;  %3819 = vpow2.f32 %v2331_v54  ;;  %v2345_v4 = vmul.f32 1.442695, %v2240_v42  ;;  %v2239_v10 = vsub.f32 0.0, %v2175_v45 }
 0x402   : > { %v3802_v1 = vpop.eup %3801  ;;  %2691 = vadd.xlane.f32.xlu0 %v5313_v0  ;;  %3821 = vrcp.f32 %v2423_v18  ;;  %v2242_v54 = vsub.f32 0.0, %v2178_v56  ;;  %v2109_v59 = vmul.f32 %v5041_v14, %v2038_v36  ;;  %v1956_v0 = vld [vmem:[%s5125_s14 + $0xe0] sm:$0xff]  ;;  %v2177_v63 = vadd.f32 %v5048_v17, %v2106_v24 }
 0x403   : > { %v3804_v52 = vpop.eup %3803  ;;  %v5343_v26 = vmul.f32 %v3802_v1, %v1952_v37  ;;  %3823 = vpow2.f32 %v2337_v46  ;;  %v2343_v49 = vmul.f32 1.442695, %v2239_v10  ;;  %v1959_v46 = vld [vmem:[%s5125_s14 + $0xf8] sm:$0xff]  ;;  %v2037_v18 = vld [vmem:[%s5045_s19 + $0x160] sm:$0xff] }
 0x404   : > { %v3806_v5 = vpop.eup %3805  ;;  %2697 = vadd.xlane.f32.xlu1 %v2608_v55  ;;  %v5347_v9 = vmul.f32 %v3804_v52, %v1955_v58  ;;  %3825 = vpow2.f32 %v2335_v2  ;;  %v2349_v14 = vmul.f32 1.442695, %v2242_v54  ;;  %v1958_v2 = vld [vmem:[%s5125_s14 + $0xf0] sm:$0xff]  ;;  %v2241_v17 = vsub.f32 0.0, %v2177_v63  ;;  %v2040_v58 = vld [vmem:[%s5045_s19 + $0x178] sm:$0xff] }
 0x405   : > { %v3808_v43 = vpop.eup %3807  ;;  %v2607_v50 = vmul.f32 %v5343_v26, %v5343_v26  ;;  %v5353_v7 = vmul.f32 %v3806_v5, %v1954_v39  ;;  %3827 = vpow2.f32 %v2341_v11  ;;  %v1961_v11 = vld [vmem:[%s5125_s14 + $0x108] sm:$0xff]  ;;  %v2180_v37 = vadd.f32 %v5366_v32, %v2109_v59  ;;  %v5385_v54 = vld [vmem:[#allocation6] ss:$0 sm:$0xff] }
 0x406   : > { %v3810_v8 = vpop.eup %3809  ;;  %v2610_v15 = vmul.f32 %v5347_v9, %v5347_v9  ;;  %v5358_v13 = vmul.f32 %v3808_v43, %v1957_v60  ;;  %3829 = vpow2.f32 %v2339_v62  ;;  %v2347_v55 = vmul.f32 1.442695, %v2241_v17  ;;  %v1960_v60 = vld [vmem:[%s5125_s14 + $0x100] sm:$0xff]  ;;  %v2042_v5 = vld [vmem:[%s5045_s19 + $0x188] sm:$0xff] }
 0x407   : > { %v3812_v22 = vpop.eup %3811  ;;  %2695 = vadd.xlane.f32.xlu0 %v2607_v50  ;;  %v2609_v21 = vmul.f32 %v5353_v7, %v5353_v7  ;;  %v5363_v31 = vmul.f32 %v3810_v8, %v1956_v0  ;;  %3831 = vpow2.f32 %v2345_v4  ;;  %v2244_v39 = vsub.f32 0.0, %v2180_v37  ;;  %v2039_v4 = vld [vmem:[%s5045_s19 + $0x170] sm:$0xff] }
 0x408   : > { %v3814_v42 = vpop.eup %3813  ;;  %2701 = vadd.xlane.f32.xlu1 %v2610_v15  ;;  %v2612_v45 = vmul.f32 %v5358_v13, %v5358_v13  ;;  %v5372_v36 = vmul.f32 %v3812_v22, %v1959_v46  ;;  %3833 = vpow2.f32 %v2343_v49  ;;  %v2108_v59 = vmul.f32 %v5385_v54, %v2037_v18 }
 0x409   : > { %v3816_v62 = vpop.eup %3815  ;;  %v2611_v56 = vmul.f32 %v5363_v31, %v5363_v31  ;;  %v5377_v1 = vmul.f32 %v3814_v42, %v1958_v2  ;;  %3835 = vpow2.f32 %v2349_v14  ;;  %v2353_v43 = vmul.f32 1.442695, %v2244_v39 }
 0x40a   : > { %v3818_v10 = vpop.eup %3817  ;;  %v2614_v24 = vmul.f32 %v5372_v36, %v5372_v36  ;;  %v5382_v52 = vmul.f32 %v3816_v62, %v1961_v11  ;;  %3837 = vpow2.f32 %v2347_v55  ;;  %v2111_v50 = vmul.f32 %v5385_v54, %v2040_v58 }
 0x40b   : > { %v3820_v0 = vpop.eup %3819  ;;  %2699 = vadd.xlane.f32.xlu0 %v2609_v21  ;;  %v2613_v49 = vmul.f32 %v5377_v1, %v5377_v1  ;;  %v2426_v63 = vadd.f32 1.0, %v3818_v10  ;;  %v2179_v15 = vadd.f32 %v5366_v32, %v2108_v59  ;;  %v2110_v2 = vmul.f32 %v5385_v54, %v2039_v4  ;;  %v2041_v4 = vld [vmem:[%s5045_s19 + $0x180] sm:$0xff] }
 0x40c   : > { %v3822_v46 = vpop.eup %3821  ;;  %2705 = vadd.xlane.f32.xlu1 %v2612_v45  ;;  %v2616_v14 = vmul.f32 %v5382_v52, %v5382_v52  ;;  %v2425_v8 = vadd.f32 1.0, %v3820_v0  ;;  %v2182_v21 = vadd.f32 %v5366_v32, %v2111_v50  ;;  %v2113_v11 = vmul.f32 %v5385_v54, %v2042_v5  ;;  %v2044_v0 = vld [vmem:[%s5045_s19 + $0x198] sm:$0xff] }
 0x40d   : > { %v3824_v17 = vpop.eup %3823  ;;  %v5396_v22 = vmul.f32 %v3822_v46, %v1960_v60  ;;  %3839 = vrcp.f32 %v2426_v63  ;;  %v2243_v42 = vsub.f32 0.0, %v2179_v15  ;;  %v2181_v45 = vadd.f32 %v5366_v32, %v2110_v2 }
 0x40e   : > { %v3826_v37 = vpop.eup %3825  ;;  %3841 = vrcp.f32 %v2425_v8  ;;  %v2428_v18 = vadd.f32 1.0, %v3824_v17  ;;  %v2246_v39 = vsub.f32 0.0, %v2182_v21  ;;  %v2184_v46 = vadd.f32 %v5366_v32, %v2113_v11  ;;  %v2043_v8 = vld [vmem:[%s5045_s19 + $0x190] sm:$0xff] }
 0x40f   : > { %v3828_v55 = vpop.eup %3827  ;;  %2703 = vadd.xlane.f32.xlu0 %v2611_v56  ;;  %v2615_v58 = vmul.f32 %v5396_v22, %v5396_v22  ;;  %v2427_v62 = vadd.f32 1.0, %v3826_v37  ;;  %3843 = vpow2.f32 %v2353_v43  ;;  %v2351_v59 = vmul.f32 1.442695, %v2243_v42  ;;  %v2046_v42 = vld [vmem:[%s5045_s19 + $0x1a8] sm:$0xff] }
 0x410   : > { %v3830_v10 = vpop.eup %3829  ;;  %2709 = vadd.xlane.f32.xlu1 %v2614_v24  ;;  %3845 = vrcp.f32 %v2428_v18  ;;  %v2430_v60 = vadd.f32 1.0, %v3828_v55  ;;  %v2245_v5 = vsub.f32 0.0, %v2181_v45  ;;  %v2357_v56 = vmul.f32 1.442695, %v2246_v39  ;;  %v2045_v39 = vld [vmem:[%s5045_s19 + $0x1a0] sm:$0xff] }
 0x411   : > { %v3832_v63 = vpop.eup %3831  ;;  %3847 = vrcp.f32 %v2427_v62  ;;  %v2429_v50 = vadd.f32 1.0, %v3830_v10  ;;  %v2112_v24 = vmul.f32 %v5385_v54, %v2041_v4  ;;  %v2248_v37 = vsub.f32 0.0, %v2184_v46  ;;  %v2048_v4 = vld [vmem:[%s5045_s19 + $0x1b8] sm:$0xff] }
 0x412   : > { %v3834_v15 = vpop.eup %3833  ;;  %3849 = vrcp.f32 %v2430_v60  ;;  %v2432_v43 = vadd.f32 1.0, %v3832_v63  ;;  %v2355_v2 = vmul.f32 1.442695, %v2245_v5  ;;  %v2115_v18 = vmul.f32 %v5385_v54, %v2044_v0  ;;  %v1963_v10 = vld [vmem:[%s5125_s14 + $0x118] sm:$0xff]  ;;  %v1962_v63 = vld [vmem:[%s5125_s14 + $0x110] sm:$0xff] }
 0x413   : > { %v3836_v17 = vpop.eup %3835  ;;  %2707 = vadd.xlane.f32.xlu0 %v2613_v49  ;;  %3851 = vrcp.f32 %v2429_v50  ;;  %v2431_v21 = vadd.f32 1.0, %v3834_v15  ;;  %v2183_v55 = vadd.f32 %v5366_v32, %v2112_v24  ;;  %v2114_v62 = vmul.f32 %v5385_v54, %v2043_v8 }
 0x414   : > { %v3838_v11 = vpop.eup %3837  ;;  %2713 = vadd.xlane.f32.xlu1 %v2616_v14  ;;  %3853 = vrcp.f32 %v2432_v43  ;;  %v2434_v45 = vadd.f32 1.0, %v3836_v17  ;;  %v2361_v60 = vmul.f32 1.442695, %v2248_v37  ;;  %v2186_v5 = vadd.f32 %v5366_v32, %v2115_v18 }
 0x415   : > { %3855 = vrcp.f32 %v2431_v21  ;;  %v2433_v49 = vadd.f32 1.0, %v3838_v11  ;;  %v2247_v0 = vsub.f32 0.0, %v2183_v55  ;;  %v2185_v14 = vadd.f32 %v5366_v32, %v2114_v62  ;;  %v1965_v21 = vld [vmem:[%s5125_s14 + $0x128] sm:$0xff] }
 0x416   : > { %3857 = vrcp.f32 %v2434_v45  ;;  %v2117_v50 = vmul.f32 %v5385_v54, %v2046_v42  ;;  %v2250_v8 = vsub.f32 0.0, %v2186_v5  ;;  %v2116_v15 = vmul.f32 %v5385_v54, %v2045_v39  ;;  %v1964_v42 = vld [vmem:[%s5125_s14 + $0x120] sm:$0xff] }
 0x417   : > { %v3840_v46 = vpop.eup %3839  ;;  %2711 = vadd.xlane.f32.xlu0 %v2615_v58  ;;  %3859 = vrcp.f32 %v2433_v49  ;;  %v2119_v43 = vmul.f32 %v5385_v54, %v2048_v4  ;;  %v2359_v37 = vmul.f32 1.442695, %v2247_v0  ;;  %v2249_v18 = vsub.f32 0.0, %v2185_v14  ;;  %v1967_v4 = vld [vmem:[%s5125_s14 + $0x138] sm:$0xff] }
 0x418   : > { %v3842_v24 = vpop.eup %3841  ;;  %v5421_v17 = vmul.f32 %v3840_v46, %v1963_v10  ;;  %3861 = vpow2.f32 %v2351_v59  ;;  %v2365_v58 = vmul.f32 1.442695, %v2250_v8  ;;  %v2188_v55 = vadd.f32 %v5366_v32, %v2117_v50  ;;  %v1969_v46 = vld [vmem:[%s5125_s14 + $0x148] sm:$0xff] }
 0x419   : > { %v3844_v11 = vpop.eup %3843  ;;  %v5424_v45 = vmul.f32 %v3842_v24, %v1962_v63  ;;  %3863 = vpow2.f32 %v2357_v56  ;;  %v2363_v59 = vmul.f32 1.442695, %v2249_v18  ;;  %v1966_v56 = vld [vmem:[%s5125_s14 + $0x130] sm:$0xff]  ;;  %v2190_v8 = vadd.f32 %v5366_v32, %v2119_v43  ;;  %v1968_v18 = vld [vmem:[%s5125_s14 + $0x140] sm:$0xff] }
 0x41a   : > { %v3846_v62 = vpop.eup %3845  ;;  %v2618_v39 = vmul.f32 %v5421_v17, %v5421_v17  ;;  %v2436_v10 = vadd.f32 1.0, %v3844_v11  ;;  %3865 = vpow2.f32 %v2355_v2  ;;  %v2252_v0 = vsub.f32 0.0, %v2188_v55 }
 0x41b   : > { %v3848_v49 = vpop.eup %3847  ;;  %v2617_v5 = vmul.f32 %v5424_v45, %v5424_v45  ;;  %v5433_v63 = vmul.f32 %v3846_v62, %v1965_v21  ;;  %3867 = vpow2.f32 %v2361_v60  ;;  %v2187_v2 = vadd.f32 %v5366_v32, %v2116_v15  ;;  %v1971_v15 = vld [vmem:[%s5125_s14 + $0x158] sm:$0xff] }
 0x41c   : > { %v3850_v14 = vpop.eup %3849  ;;  %2717 = vadd.xlane.f32.xlu1 %v2618_v39  ;;  %v5436_v50 = vmul.f32 %v3848_v49, %v1964_v42  ;;  %3869 = vrcp.f32 %v2436_v10  ;;  %v2369_v11 = vmul.f32 1.442695, %v2252_v0  ;;  %v2047_v39 = vld [vmem:[%s5045_s19 + $0x1b0] sm:$0xff]  ;;  %v2050_v0 = vld [vmem:[%s5045_s19 + $0x1c8] sm:$0xff] }
 0x41d   : > { %v3852_v24 = vpop.eup %3851  ;;  %2715 = vadd.xlane.f32.xlu0 %v2617_v5  ;;  %v2620_v21 = vmul.f32 %v5433_v63, %v5433_v63  ;;  %v5443_v60 = vmul.f32 %v3850_v14, %v1967_v4  ;;  %3871 = vpow2.f32 %v2359_v37  ;;  %v2251_v43 = vsub.f32 0.0, %v2187_v2  ;;  %v1970_v5 = vld [vmem:[%s5125_s14 + $0x150] sm:$0xff] }
 0x41e   : > { %5864 = vst [vmem:[#allocation23_spill] sm:$0xff] %v5436_v50  ;;  %v3854_v42 = vpop.eup %3853  ;;  %v2619_v55 = vmul.f32 %v5436_v50, %v5436_v50  ;;  %v5448_v62 = vmul.f32 %v3852_v24, %v1966_v56  ;;  %3873 = vpow2.f32 %v2365_v58  ;;  %v2254_v37 = vsub.f32 0.0, %v2190_v8 }
 0x41f   : > { %5865 = vst [vmem:[#allocation24_spill] sm:$0xff] %v5443_v60  ;;  %v3856_v10 = vpop.eup %3855  ;;  %v2622_v49 = vmul.f32 %v5443_v60, %v5443_v60  ;;  %v5454_v4 = vmul.f32 %v3854_v42, %v1969_v46  ;;  %3875 = vpow2.f32 %v2363_v59  ;;  %v2367_v2 = vmul.f32 1.442695, %v2251_v43 }
 0x420   : > { %5866 = vst [vmem:[#allocation25_spill] sm:$0xff] %v5448_v62  ;;  %v3858_v14 = vpop.eup %3857  ;;  %2721 = vadd.xlane.f32.xlu1 %v2620_v21  ;;  %v2621_v56 = vmul.f32 %v5448_v62, %v5448_v62  ;;  %v5460_v58 = vmul.f32 %v3856_v10, %v1968_v18  ;;  %3877 = vpow2.f32 %v2369_v11  ;;  %v2373_v59 = vmul.f32 1.442695, %v2254_v37  ;;  %v2049_v21 = vld [vmem:[%s5045_s19 + $0x1c0] sm:$0xff] }
 0x421   : > { %5867 = vst [vmem:[#allocation26_spill] sm:$0xff] %v5454_v4  ;;  %v3860_v24 = vpop.eup %3859  ;;  %2719 = vadd.xlane.f32.xlu0 %v2619_v55  ;;  %v2624_v46 = vmul.f32 %v5454_v4, %v5454_v4  ;;  %v5464_v42 = vmul.f32 %v3858_v14, %v1971_v15  ;;  %v2118_v8 = vmul.f32 %v5385_v54, %v2047_v39  ;;  %3879 = vpow2.f32 %v2367_v2  ;;  %v2052_v55 = vld [vmem:[%s5045_s19 + $0x1d8] sm:$0xff] }
 0x422   : > { %5868 = vst [vmem:[#allocation27_spill] sm:$0xff] %v5460_v58  ;;  %v3862_v60 = vpop.eup %3861  ;;  %v2623_v62 = vmul.f32 %v5460_v58, %v5460_v58  ;;  %v5470_v18 = vmul.f32 %v3860_v24, %v1970_v5  ;;  %v2121_v11 = vmul.f32 %v5385_v54, %v2050_v0  ;;  %3881 = vpow2.f32 %v2373_v59  ;;  %v1973_v58 = vld [vmem:[%s5125_s14 + $0x168] sm:$0xff] }
 0x423   : > { %5869 = vst [vmem:[#allocation28_spill] sm:$0xff] %v5464_v42  ;;  %v3864_v43 = vpop.eup %3863  ;;  %v2626_v15 = vmul.f32 %v5464_v42, %v5464_v42  ;;  %v2435_v10 = vadd.f32 1.0, %v3862_v60  ;;  %v2189_v39 = vadd.f32 %v5366_v32, %v2118_v8  ;;  %v2120_v0 = vmul.f32 %v5385_v54, %v2049_v21 }
 0x424   : > { %5870 = vst [vmem:[#allocation29_spill] sm:$0xff] %v5470_v18  ;;  %v3866_v37 = vpop.eup %3865  ;;  %2725 = vadd.xlane.f32.xlu1 %v2622_v49  ;;  %v2625_v14 = vmul.f32 %v5470_v18, %v5470_v18  ;;  %v2438_v5 = vadd.f32 1.0, %v3864_v43  ;;  %v2192_v2 = vadd.f32 %v5366_v32, %v2121_v11  ;;  %v2123_v59 = vmul.f32 %v5385_v54, %v2052_v55  ;;  %v2051_v11 = vld [vmem:[%s5045_s19 + $0x1d0] sm:$0xff] }
 0x425   : > { %v3868_v24 = vpop.eup %3867  ;;  %2723 = vadd.xlane.f32.xlu0 %v2621_v56  ;;  %3883 = vrcp.f32 %v2435_v10  ;;  %v2437_v42 = vadd.f32 1.0, %v3866_v37  ;;  %v2253_v60 = vsub.f32 0.0, %v2189_v39  ;;  %v2191_v18 = vadd.f32 %v5366_v32, %v2120_v0 }
 0x426   : > { %v3870_v8 = vpop.eup %3869  ;;  %3885 = vrcp.f32 %v2438_v5  ;;  %v2440_v49 = vadd.f32 1.0, %v3868_v24  ;;  %v2256_v4 = vsub.f32 0.0, %v2192_v2  ;;  %v2194_v56 = vadd.f32 %v5366_v32, %v2123_v59  ;;  %v2054_v5 = vld [vmem:[%s5045_s19 + $0x1e8] sm:$0xff]  ;;  %v2053_v24 = vld [vmem:[%s5045_s19 + $0x1e0] sm:$0xff] }
 0x427   : > { %v3872_v43 = vpop.eup %3871  ;;  %v5484_v50 = vmul.f32 %v3870_v8, %v1973_v58  ;;  %3887 = vrcp.f32 %v2437_v42  ;;  %v2371_v21 = vmul.f32 1.442695, %v2253_v60  ;;  %v2255_v37 = vsub.f32 0.0, %v2191_v18  ;;  %v2056_v60 = vld [vmem:[%s5045_s19 + $0x1f8] sm:$0xff] }
 0x428   : > { %v3874_v10 = vpop.eup %3873  ;;  %2729 = vadd.xlane.f32.xlu1 %v2624_v46  ;;  %3889 = vrcp.f32 %v2440_v49  ;;  %v2439_v55 = vadd.f32 1.0, %v3872_v43  ;;  %v2377_v39 = vmul.f32 1.442695, %v2256_v4  ;;  %v2258_v0 = vsub.f32 0.0, %v2194_v56  ;;  %v2055_v49 = vld [vmem:[%s5045_s19 + $0x1f0] sm:$0xff] }
 0x429   : > { %5871 = vst [vmem:[#allocation30_spill] sm:$0xff] %v5484_v50  ;;  %v3876_v2 = vpop.eup %3875  ;;  %2727 = vadd.xlane.f32.xlu0 %v2623_v62  ;;  %v2628_v58 = vmul.f32 %v5484_v50, %v5484_v50  ;;  %v2442_v42 = vadd.f32 1.0, %v3874_v10  ;;  %3891 = vpow2.f32 %v2371_v21  ;;  %v2375_v46 = vmul.f32 1.442695, %v2255_v37 }
 0x42a   : > { %v3878_v59 = vpop.eup %3877  ;;  %3893 = vrcp.f32 %v2439_v55  ;;  %v2441_v8 = vadd.f32 1.0, %v3876_v2  ;;  %v2122_v4 = vmul.f32 %v5385_v54, %v2051_v11  ;;  %v2381_v62 = vmul.f32 1.442695, %v2258_v0  ;;  %v1972_v11 = vld [vmem:[%s5125_s14 + $0x160] sm:$0xff] }
 0x42b   : > { %3895 = vrcp.f32 %v2442_v42  ;;  %v2444_v18 = vadd.f32 1.0, %v3878_v59  ;;  %v2125_v43 = vmul.f32 %v5385_v54, %v2054_v5  ;;  %v3880_v50 = vpop.eup %3879  ;;  %v2124_v56 = vmul.f32 %v5385_v54, %v2053_v24  ;;  %v1975_v42 = vld [vmem:[%s5125_s14 + $0x178] sm:$0xff]  ;;  %v1974_v24 = vld [vmem:[%s5125_s14 + $0x170] sm:$0xff] }
 0x42c   : > { %2733 = vadd.xlane.f32.xlu1 %v2626_v15  ;;  %3897 = vrcp.f32 %v2441_v8  ;;  %v2193_v21 = vadd.f32 %v5366_v32, %v2122_v4  ;;  %v2127_v10 = vmul.f32 %v5385_v54, %v2056_v60  ;;  %v3882_v55 = vpop.eup %3881  ;;  %v2443_v37 = vadd.f32 1.0, %v3880_v50 }
 0x42d   : > { %2731 = vadd.xlane.f32.xlu0 %v2625_v14  ;;  %3899 = vrcp.f32 %v2444_v18  ;;  %v2196_v2 = vadd.f32 %v5366_v32, %v2125_v43  ;;  %v2126_v5 = vmul.f32 %v5385_v54, %v2055_v49  ;;  %v2446_v15 = vadd.f32 1.0, %v3882_v55  ;;  %v1977_v54 = vld [vmem:[%s5125_s14 + $0x188] sm:$0xff] }
 0x42e   : > { %3901 = vpow2.f32 %v2377_v39  ;;  %v2257_v0 = vsub.f32 0.0, %v2193_v21  ;;  %v2195_v59 = vadd.f32 %v5366_v32, %v2124_v56  ;;  %v2198_v14 = vadd.f32 %v5366_v32, %v2127_v10 }
 0x42f   : > { %v3884_v8 = vpop.eup %3883  ;;  %3903 = vrcp.f32 %v2443_v37  ;;  %v2260_v60 = vsub.f32 0.0, %v2196_v2  ;;  %v2197_v4 = vadd.f32 %v5366_v32, %v2126_v5 }
 0x430   : > { %v3886_v50 = vpop.eup %3885  ;;  %2737 = vadd.xlane.f32.xlu1 %v2628_v58  ;;  %v5507_v18 = vmul.f32 %v3884_v8, %v1972_v11  ;;  %3905 = vrcp.f32 %v2446_v15  ;;  %v2379_v49 = vmul.f32 1.442695, %v2257_v0  ;;  %v2259_v39 = vsub.f32 0.0, %v2195_v59  ;;  %v1976_v58 = vld [vmem:[%s5125_s14 + $0x180] sm:$0xff]  ;;  %v1978_v8 = vld [vmem:[%s5125_s14 + $0x190] sm:$0xff] }
 0x431   : > { %v3888_v43 = vpop.eup %3887  ;;  %v5510_v21 = vmul.f32 %v3886_v50, %v1975_v42  ;;  %3907 = vpow2.f32 %v2375_v46  ;;  %v2385_v56 = vmul.f32 1.442695, %v2260_v60  ;;  %v2262_v55 = vsub.f32 0.0, %v2198_v14  ;;  %v1979_v46 = vld [vmem:[%s5125_s14 + $0x198] sm:$0xff] }
 0x432   : > { %v3890_v10 = vpop.eup %3889  ;;  %v2627_v32 = vmul.f32 %v5507_v18, %v5507_v18  ;;  %v5514_v37 = vmul.f32 %v3888_v43, %v1974_v24  ;;  %3909 = vpow2.f32 %v2381_v62  ;;  %v2383_v11 = vmul.f32 1.442695, %v2259_v39 }
 0x433   : > { %v3892_v2 = vpop.eup %3891  ;;  %v2630_v5 = vmul.f32 %v5510_v21, %v5510_v21  ;;  %v5519_v42 = vmul.f32 %v3890_v10, %v1977_v54  ;;  %3911 = vpow2.f32 %v2379_v49  ;;  %v2389_v15 = vmul.f32 1.442695, %v2262_v55  ;;  %v1981_v54 = vld [vmem:[%s5125_s14 + $0x1a8] sm:$0xff] }
 0x434   : > { %v3894_v0 = vpop.eup %3893  ;;  %2735 = vadd.xlane.f32.xlu0 %v2627_v32  ;;  %v2629_v59 = vmul.f32 %v5514_v37, %v5514_v37  ;;  %v2445_v24 = vadd.f32 1.0, %v3892_v2  ;;  %3913 = vpow2.f32 %v2385_v56  ;;  %v2261_v62 = vsub.f32 0.0, %v2197_v4  ;;  %v1980_v56 = vld [vmem:[%s5125_s14 + $0x1a0] sm:$0xff] }
 0x435   : > { %v3896_v60 = vpop.eup %3895  ;;  %2741 = vadd.xlane.f32.xlu1 %v2630_v5  ;;  %v2632_v14 = vmul.f32 %v5519_v42, %v5519_v42  ;;  %v5527_v50 = vmul.f32 %v3894_v0, %v1976_v58  ;;  %3915 = vpow2.f32 %v2383_v11  ;;  %v1983_v58 = vld [vmem:[%s5125_s14 + $0x1b8] sm:$0xff] }
 0x436   : > { %v3898_v49 = vpop.eup %3897  ;;  %v5530_v39 = vmul.f32 %v3896_v60, %v1979_v46  ;;  %3917 = vrcp.f32 %v2445_v24  ;;  %v2387_v43 = vmul.f32 1.442695, %v2261_v62 }
 0x437   : > { %v3900_v55 = vpop.eup %3899  ;;  %v5532_v10 = vmul.f32 %v3898_v49, %v1978_v8  ;;  %3919 = vpow2.f32 %v2389_v15  ;;  %v2631_v32 = vmul.f32 %v5527_v50, %v5527_v50 }
 0x438   : > { %v3902_v4 = vpop.eup %3901  ;;  %2739 = vadd.xlane.f32.xlu0 %v2629_v59  ;;  %v5537_v2 = vmul.f32 %v3900_v55, %v1981_v54  ;;  %3921 = vpow2.f32 %v2387_v43  ;;  %v2634_v5 = vmul.f32 %v5530_v39, %v5530_v39  ;;  %v1982_v55 = vld [vmem:[%s5125_s14 + $0x1b0] sm:$0xff] }
 0x439   : > { %v3904_v11 = vpop.eup %3903  ;;  %2745 = vadd.xlane.f32.xlu1 %v2632_v14  ;;  %v2448_v46 = vadd.f32 1.0, %v3902_v4  ;;  %v2633_v62 = vmul.f32 %v5532_v10, %v5532_v10 }
 0x43a   : > { %v3906_v0 = vpop.eup %3905  ;;  %v5542_v8 = vmul.f32 %v3904_v11, %v1980_v56  ;;  %v2636_v14 = vmul.f32 %v5537_v2, %v5537_v2 }
 0x43b   : > { %v3908_v15 = vpop.eup %3907  ;;  %v5544_v24 = vmul.f32 %v3906_v0, %v1983_v58  ;;  %3923 = vrcp.f32 %v2448_v46 }
 0x43c   : > { %v3910_v59 = vpop.eup %3909  ;;  %2743 = vadd.xlane.f32.xlu0 %v2631_v32  ;;  %v2447_v60 = vadd.f32 1.0, %v3908_v15  ;;  %v2635_v32 = vmul.f32 %v5542_v8, %v5542_v8 }
 0x43d   : > { %5872 = vst [vmem:[#allocation31_spill] sm:$0xff] %v5544_v24  ;;  %v3912_v54 = vpop.eup %3911  ;;  %2749 = vadd.xlane.f32.xlu1 %v2634_v5  ;;  %v2450_v49 = vadd.f32 1.0, %v3910_v59  ;;  %v2638_v0 = vmul.f32 %v5544_v24, %v5544_v24 }
 0x43e   : > { %v3914_v43 = vpop.eup %3913  ;;  %3925 = vrcp.f32 %v2447_v60  ;;  %v2449_v56 = vadd.f32 1.0, %v3912_v54 }
 0x43f   : > { %v3916_v4 = vpop.eup %3915  ;;  %3927 = vrcp.f32 %v2450_v49  ;;  %v2452_v58 = vadd.f32 1.0, %v3914_v43 }
 0x440   : > { %v3918_v11 = vpop.eup %3917  ;;  %2747 = vadd.xlane.f32.xlu0 %v2633_v62  ;;  %3929 = vrcp.f32 %v2449_v56  ;;  %v2451_v46 = vadd.f32 1.0, %v3916_v4  ;;  %v1985_v62 = vld [vmem:[%s5125_s14 + $0x1c8] sm:$0xff]  ;;  %v1987_v56 = vld [vmem:[%s5125_s14 + $0x1d8] sm:$0xff] }
 0x441   : > { %v3920_v5 = vpop.eup %3919  ;;  %2753 = vadd.xlane.f32.xlu1 %v2636_v14  ;;  %v5555_v15 = vmul.f32 %v3918_v11, %v1982_v55  ;;  %3931 = vrcp.f32 %v2452_v58  ;;  %v1984_v55 = vld [vmem:[%s5125_s14 + $0x1c0] sm:$0xff]  ;;  %v1986_v11 = vld [vmem:[%s5125_s14 + $0x1d0] sm:$0xff] }
 0x442   : > { %v3922_v59 = vpop.eup %3921  ;;  %3933 = vrcp.f32 %v2451_v46  ;;  %v2454_v60 = vadd.f32 1.0, %v3920_v5  ;;  %v1989_v5 = vld [vmem:[%s5125_s14 + $0x1e8] sm:$0xff] }
 0x443   : > { %5873 = vst [vmem:[#allocation32_spill] sm:$0xff] %v5555_v15  ;;  %v2453_v54 = vadd.f32 1.0, %v3922_v59  ;;  %v2637_v49 = vmul.f32 %v5555_v15, %v5555_v15 }
 0x444   : > { %2751 = vadd.xlane.f32.xlu0 %v2635_v32  ;;  %3935 = vrcp.f32 %v2454_v60  ;;  %v1988_v60 = vld [vmem:[%s5125_s14 + $0x1e0] sm:$0xff] }
 0x445   : > { %v3924_v14 = vpop.eup %3923  ;;  %2757 = vadd.xlane.f32.xlu1 %v2638_v0  ;;  %3937 = vrcp.f32 %v2453_v54 }
 0x446   : > { %v5560_v43 = vmul.f32 %v3924_v14, %v1985_v62 }
 0x448   : > { %5874 = vst [vmem:[#allocation33_spill] sm:$0xff] %v5560_v43  ;;  %v3926_v4 = vpop.eup %3925  ;;  %2755 = vadd.xlane.f32.xlu0 %v2637_v49  ;;  %v2640_v58 = vmul.f32 %v5560_v43, %v5560_v43 }
 0x449   : > { %v3928_v32 = vpop.eup %3927  ;;  %v5567_v46 = vmul.f32 %v3926_v4, %v1984_v55  ;;  %v1991_v55 = vld [vmem:[%s5125_s14 + $0x1f8] sm:$0xff] }
 0x44a   : > { %v3930_v59 = vpop.eup %3929  ;;  %2761 = vadd.xlane.f32.xlu1 %v2640_v58  ;;  %v5570_v0 = vmul.f32 %v3928_v32, %v1987_v56  ;;  %v1990_v58 = vld [vmem:[%s5125_s14 + $0x1f0] sm:$0xff] }
 0x44b   : > { %5875 = vst [vmem:[#allocation34_spill] sm:$0xff] %v5567_v46  ;;  %v3932_v62 = vpop.eup %3931  ;;  %v2639_v54 = vmul.f32 %v5567_v46, %v5567_v46  ;;  %v5575_v49 = vmul.f32 %v3930_v59, %v1986_v11 }
 0x44c   : > { %v3934_v14 = vpop.eup %3933  ;;  %v2642_v43 = vmul.f32 %v5570_v0, %v5570_v0  ;;  %v5579_v15 = vmul.f32 %v3932_v62, %v1989_v5 }
 0x44d   : > { %2759 = vadd.xlane.f32.xlu0 %v2639_v54  ;;  %v2641_v4 = vmul.f32 %v5575_v49, %v5575_v49  ;;  %v5584_v56 = vmul.f32 %v3934_v14, %v1988_v60 }
 0x44e   : > { %v3936_v32 = vpop.eup %3935  ;;  %2765 = vadd.xlane.f32.xlu1 %v2642_v43  ;;  %v2644_v11 = vmul.f32 %v5579_v15, %v5579_v15 }
 0x44f   : > { %5876 = vst [vmem:[#allocation35_spill] sm:$0xff] %v5584_v56  ;;  %v3938_v59 = vpop.eup %3937  ;;  %v5589_v46 = vmul.f32 %v3936_v32, %v1991_v55  ;;  %v2643_v5 = vmul.f32 %v5584_v56, %v5584_v56 }
 0x450   : > { %v5591_v24 = vmul.f32 %v3938_v59, %v1990_v58 }
 0x451   : > { %5877 = vst [vmem:[#allocation36_spill] sm:$0xff] %v5589_v46  ;;  %2763 = vadd.xlane.f32.xlu0 %v2641_v4  ;;  %v2646_v60 = vmul.f32 %v5589_v46, %v5589_v46 }
 0x452   : > { %2769 = vadd.xlane.f32.xlu1 %v2644_v11  ;;  %v2645_v43 = vmul.f32 %v5591_v24, %v5591_v24 }
 0x455   : > { %2767 = vadd.xlane.f32.xlu0 %v2643_v5 }
 0x456   : > { %2773 = vadd.xlane.f32.xlu1 %v2646_v60 }
 0x459   : > { %2771 = vadd.xlane.f32.xlu0 %v2645_v43 }
 0x461   : > { %v2652_v62 = vpop.xlane.xlu1 %2651 }
 0x462   : > { %v2777_v54 = vmax.f32 %v2652_v62, 1e-24  ;;  %v2648_v14 = vpop.xlane.xlu0 %2647 }
 0x463   : > { %v2775_v55 = vmax.f32 %v2648_v14, 1e-24 }
 0x464   : > { %3939 = vrsqrt.f32 %v2777_v54 }
 0x465   : > { %3941 = vrsqrt.f32 %v2775_v55  ;;  %v2654_v4 = vpop.xlane.xlu1 %2653 }
 0x466   : > { %v2778_v58 = vmax.f32 %v2654_v4, 1e-24  ;;  %v2650_v32 = vpop.xlane.xlu0 %2649 }
 0x467   : > { %v2776_v59 = vmax.f32 %v2650_v32, 1e-24 }
 0x468   : > { %3943 = vrsqrt.f32 %v2778_v58 }
 0x469   : > { %3945 = vrsqrt.f32 %v2776_v59  ;;  %v2658_v11 = vpop.xlane.xlu1 %2657 }
 0x46a   : > { %v2780_v5 = vmax.f32 %v2658_v11, 1e-24  ;;  %v2656_v46 = vpop.xlane.xlu0 %2655 }
 0x46b   : > { %v2779_v56 = vmax.f32 %v2656_v46, 1e-24 }
 0x46c   : > { %3947 = vrsqrt.f32 %v2780_v5 }
 0x46d   : > { %3949 = vrsqrt.f32 %v2779_v56  ;;  %v2662_v60 = vpop.xlane.xlu1 %2661 }
 0x46e   : > { %v3940_v43 = vpop.eup %3939  ;;  %v2782_v62 = vmax.f32 %v2662_v60, 1e-24  ;;  %v2660_v14 = vpop.xlane.xlu0 %2659 }
 0x46f   : > { %v3942_v54 = vpop.eup %3941  ;;  %v2905_v55 = vmul.f32 %v3940_v43, %v5134_v41  ;;  %v2781_v4 = vmax.f32 %v2660_v14, 1e-24 }
 0x470   : > { %v2903_v58 = vmul.f32 %v3942_v54, %v5138_v48  ;;  %3951 = vrsqrt.f32 %v2782_v62 }
 0x471   : > { %2969 = vst [vmem:[%s4569_s13 + $0x10] sm:$0xff] %v2905_v55  ;;  %3953 = vrsqrt.f32 %v2781_v4  ;;  %v2666_v32 = vpop.xlane.xlu1 %2665 }
 0x472   : > { %v3944_v46 = vpop.eup %3943  ;;  %2967 = vst [vmem:[%s4569_s13] sm:$0xff] %v2903_v58  ;;  %v2784_v59 = vmax.f32 %v2666_v32, 1e-24  ;;  %v2664_v56 = vpop.xlane.xlu0 %2663 }
 0x473   : > { %v3946_v11 = vpop.eup %3945  ;;  %v2906_v5 = vmul.f32 %v3944_v46, %v5144_v61  ;;  %v2783_v60 = vmax.f32 %v2664_v56, 1e-24 }
 0x474   : > { %v2904_v41 = vmul.f32 %v3946_v11, %v5150_v6  ;;  %3955 = vrsqrt.f32 %v2784_v59 }
 0x475   : > { %2970 = vst [vmem:[%s4569_s13 + $0x18] sm:$0xff] %v2906_v5  ;;  %3957 = vrsqrt.f32 %v2783_v60  ;;  %v2670_v48 = vpop.xlane.xlu1 %2669 }
 0x476   : > { %v3948_v43 = vpop.eup %3947  ;;  %2968 = vst [vmem:[%s4569_s13 + $0x8] sm:$0xff] %v2904_v41  ;;  %v2786_v62 = vmax.f32 %v2670_v48, 1e-24  ;;  %v2668_v14 = vpop.xlane.xlu0 %2667 }
 0x477   : > { %v3950_v54 = vpop.eup %3949  ;;  %v2908_v55 = vmul.f32 %v3948_v43, %v5157_v35  ;;  %v2785_v4 = vmax.f32 %v2668_v14, 1e-24 }
 0x478   : > { %v2907_v61 = vmul.f32 %v3950_v54, %v5164_v44  ;;  %3959 = vrsqrt.f32 %v2786_v62 }
 0x479   : > { %2972 = vst [vmem:[%s4569_s13 + $0x28] sm:$0xff] %v2908_v55  ;;  %3961 = vrsqrt.f32 %v2785_v4  ;;  %v2674_v6 = vpop.xlane.xlu1 %2673 }
 0x47a   : > { %v3952_v58 = vpop.eup %3951  ;;  %2971 = vst [vmem:[%s4569_s13 + $0x20] sm:$0xff] %v2907_v61  ;;  %v2788_v32 = vmax.f32 %v2674_v6, 1e-24 }
 0x47b   : > { %v3954_v46 = vpop.eup %3953  ;;  %v2910_v59 = vmul.f32 %v3952_v58, %v5169_v20  ;;  %v2672_v56 = vpop.xlane.xlu0 %2671 }
 0x47c   : > { %v2909_v11 = vmul.f32 %v3954_v46, %v5176_v38  ;;  %3963 = vrsqrt.f32 %v2788_v32  ;;  %v2787_v35 = vmax.f32 %v2672_v56, 1e-24 }
 0x47d   : > { %2974 = vst [vmem:[%s4569_s13 + $0x38] sm:$0xff] %v2910_v59  ;;  %v2678_v44 = vpop.xlane.xlu1 %2677 }
 0x47e   : > { %v3956_v5 = vpop.eup %3955  ;;  %2973 = vst [vmem:[%s4569_s13 + $0x30] sm:$0xff] %v2909_v11  ;;  %3965 = vrsqrt.f32 %v2787_v35  ;;  %v2790_v60 = vmax.f32 %v2678_v44, 1e-24 }
 0x47f   : > { %v3958_v41 = vpop.eup %3957  ;;  %v2912_v48 = vmul.f32 %v3956_v5, %v5186_v16  ;;  %v2676_v43 = vpop.xlane.xlu0 %2675 }
 0x480   : > { %v2911_v20 = vmul.f32 %v3958_v41, %v5190_v25  ;;  %3967 = vrsqrt.f32 %v2790_v60  ;;  %v2789_v62 = vmax.f32 %v2676_v43, 1e-24 }
 0x481   : > { %2976 = vst [vmem:[%s4569_s13 + $0x48] sm:$0xff] %v2912_v48  ;;  %v2682_v38 = vpop.xlane.xlu1 %2681 }
 0x482   : > { %v3960_v14 = vpop.eup %3959  ;;  %2975 = vst [vmem:[%s4569_s13 + $0x40] sm:$0xff] %v2911_v20  ;;  %3969 = vrsqrt.f32 %v2789_v62  ;;  %v2792_v54 = vmax.f32 %v2682_v38, 1e-24 }
 0x483   : > { %v3962_v55 = vpop.eup %3961  ;;  %v2914_v4 = vmul.f32 %v3960_v14, %v5196_v33  ;;  %v2680_v61 = vpop.xlane.xlu0 %2679 }
 0x484   : > { %v2913_v16 = vmul.f32 %v3962_v55, %v5201_v40  ;;  %3971 = vrsqrt.f32 %v2792_v54  ;;  %v2791_v6 = vmax.f32 %v2680_v61, 1e-24 }
 0x485   : > { %2978 = vst [vmem:[%s4569_s13 + $0x58] sm:$0xff] %v2914_v4  ;;  %v2686_v25 = vpop.xlane.xlu1 %2685 }
 0x486   : > { %v3964_v58 = vpop.eup %3963  ;;  %2977 = vst [vmem:[%s4569_s13 + $0x50] sm:$0xff] %v2913_v16  ;;  %3973 = vrsqrt.f32 %v2791_v6  ;;  %v2794_v32 = vmax.f32 %v2686_v25, 1e-24 }
 0x487   : > { %v2916_v46 = vmul.f32 %v3964_v58, %v5229_v19  ;;  %v2684_v59 = vpop.xlane.xlu0 %2683 }
 0x488   : > { %v3966_v56 = vpop.eup %3965  ;;  %3975 = vrsqrt.f32 %v2794_v32  ;;  %v2793_v33 = vmax.f32 %v2684_v59, 1e-24 }
 0x489   : > { %2980 = vst [vmem:[%s4569_s13 + $0x68] sm:$0xff] %v2916_v46  ;;  %v2915_v11 = vmul.f32 %v3966_v56, %v5246_v47  ;;  %v2690_v40 = vpop.xlane.xlu1 %2689 }
 0x48a   : > { %v3968_v35 = vpop.eup %3967  ;;  %3977 = vrsqrt.f32 %v2793_v33  ;;  %v2796_v44 = vmax.f32 %v2690_v40, 1e-24 }
 0x48b   : > { %2979 = vst [vmem:[%s4569_s13 + $0x60] sm:$0xff] %v2915_v11  ;;  %v2918_v5 = vmul.f32 %v3968_v35, %v5250_v57  ;;  %v2688_v60 = vpop.xlane.xlu0 %2687 }
 0x48c   : > { %v3970_v41 = vpop.eup %3969  ;;  %3979 = vrsqrt.f32 %v2796_v44  ;;  %v2795_v19 = vmax.f32 %v2688_v60, 1e-24 }
 0x48d   : > { %2982 = vst [vmem:[%s4569_s13 + $0x78] sm:$0xff] %v2918_v5  ;;  %v2917_v48 = vmul.f32 %v3970_v41, %v5258_v28  ;;  %v2694_v43 = vpop.xlane.xlu1 %2693 }
 0x48e   : > { %v3972_v20 = vpop.eup %3971  ;;  %3981 = vrsqrt.f32 %v2795_v19  ;;  %v2798_v47 = vmax.f32 %v2694_v43, 1e-24 }
 0x48f   : > { %2981 = vst [vmem:[%s4569_s13 + $0x70] sm:$0xff] %v2917_v48  ;;  %v2920_v62 = vmul.f32 %v3972_v20, %v5265_v3  ;;  %v2692_v38 = vpop.xlane.xlu0 %2691 }
 0x490   : > { %v3974_v14 = vpop.eup %3973  ;;  %3983 = vrsqrt.f32 %v2798_v47  ;;  %v2797_v57 = vmax.f32 %v2692_v38, 1e-24 }
 0x491   : > { %2984 = vst [vmem:[%s4569_s13 + $0x88] sm:$0xff] %v2920_v62  ;;  %v2919_v54 = vmul.f32 %v3974_v14, %v5270_v12  ;;  %v2698_v55 = vpop.xlane.xlu1 %2697 }
 0x492   : > { %v3976_v4 = vpop.eup %3975  ;;  %3985 = vrsqrt.f32 %v2797_v57  ;;  %v2800_v28 = vmax.f32 %v2698_v55, 1e-24 }
 0x493   : > { %2983 = vst [vmem:[%s4569_s13 + $0x80] sm:$0xff] %v2919_v54  ;;  %v2922_v61 = vmul.f32 %v3976_v4, %v5275_v29 }
 0x494   : > { %v3978_v16 = vpop.eup %3977  ;;  %3987 = vrsqrt.f32 %v2800_v28  ;;  %v2696_v3 = vpop.xlane.xlu0 %2695 }
 0x495   : > { %2986 = vst [vmem:[%s4569_s13 + $0x98] sm:$0xff] %v2922_v61  ;;  %v2921_v6 = vmul.f32 %v3978_v16, %v5279_v34  ;;  %v2799_v25 = vmax.f32 %v2696_v3, 1e-24  ;;  %v2702_v58 = vpop.xlane.xlu1 %2701 }
 0x496   : > { %v3980_v32 = vpop.eup %3979  ;;  %v2802_v12 = vmax.f32 %v2702_v58, 1e-24 }
 0x497   : > { %2985 = vst [vmem:[%s4569_s13 + $0x90] sm:$0xff] %v2921_v6  ;;  %v2924_v46 = vmul.f32 %v3980_v32, %v5285_v51  ;;  %3989 = vrsqrt.f32 %v2799_v25 }
 0x498   : > { %v3982_v59 = vpop.eup %3981  ;;  %3991 = vrsqrt.f32 %v2802_v12  ;;  %v2700_v29 = vpop.xlane.xlu0 %2699 }
 0x499   : > { %2988 = vst [vmem:[%s4569_s13 + $0xa8] sm:$0xff] %v2924_v46  ;;  %v2923_v56 = vmul.f32 %v3982_v59, %v5295_v30  ;;  %v2801_v33 = vmax.f32 %v2700_v29, 1e-24  ;;  %v2706_v11 = vpop.xlane.xlu1 %2705 }
 0x49a   : > { %v3984_v34 = vpop.eup %3983  ;;  %v2804_v40 = vmax.f32 %v2706_v11, 1e-24 }
 0x49b   : > { %2987 = vst [vmem:[%s4569_s13 + $0xa0] sm:$0xff] %v2923_v56  ;;  %v2926_v35 = vmul.f32 %v3984_v34, %v5298_v53  ;;  %3993 = vrsqrt.f32 %v2801_v33 }
 0x49c   : > { %v3986_v44 = vpop.eup %3985  ;;  %3995 = vrsqrt.f32 %v2804_v40  ;;  %v2704_v51 = vpop.xlane.xlu0 %2703 }
 0x49d   : > { %2990 = vst [vmem:[%s4569_s13 + $0xb8] sm:$0xff] %v2926_v35  ;;  %v2925_v5 = vmul.f32 %v3986_v44, %v5304_v23  ;;  %v2803_v60 = vmax.f32 %v2704_v51, 1e-24  ;;  %v2710_v41 = vpop.xlane.xlu1 %2709 }
 0x49e   : > { %v3988_v19 = vpop.eup %3987  ;;  %v2806_v30 = vmax.f32 %v2710_v41, 1e-24 }
 0x49f   : > { %2989 = vst [vmem:[%s4569_s13 + $0xb0] sm:$0xff] %v2925_v5  ;;  %v2928_v48 = vmul.f32 %v3988_v19, %v5329_v27  ;;  %3997 = vrsqrt.f32 %v2803_v60 }
 0x4a0   : > { %3999 = vrsqrt.f32 %v2806_v30  ;;  %v2708_v53 = vpop.xlane.xlu0 %2707 }
 0x4a1   : > { %v3990_v43 = vpop.eup %3989  ;;  %2992 = vst [vmem:[%s4569_s13 + $0xc8] sm:$0xff] %v2928_v48  ;;  %v2805_v20 = vmax.f32 %v2708_v53, 1e-24  ;;  %v2714_v47 = vpop.xlane.xlu1 %2713 }
 0x4a2   : > { %v3992_v62 = vpop.eup %3991  ;;  %v2927_v23 = vmul.f32 %v3990_v43, %v5343_v26  ;;  %v2808_v38 = vmax.f32 %v2714_v47, 1e-24  ;;  %v5878_v47 = vld [vmem:[#allocation23_spill] sm:$0xff] }
 0x4a3   : > { %v2930_v14 = vmul.f32 %v3992_v62, %v5347_v9  ;;  %4001 = vrsqrt.f32 %v2805_v20 }
 0x4a4   : > { %2991 = vst [vmem:[%s4569_s13 + $0xc0] sm:$0xff] %v2927_v23  ;;  %4003 = vrsqrt.f32 %v2808_v38  ;;  %v2712_v27 = vpop.xlane.xlu0 %2711 }
 0x4a5   : > { %v3994_v57 = vpop.eup %3993  ;;  %2994 = vst [vmem:[%s4569_s13 + $0xd8] sm:$0xff] %v2930_v14  ;;  %v2807_v54 = vmax.f32 %v2712_v27, 1e-24  ;;  %v5879_v14 = vld [vmem:[#allocation24_spill] sm:$0xff] }
 0x4a6   : > { %v3996_v55 = vpop.eup %3995  ;;  %v2929_v4 = vmul.f32 %v3994_v57, %v5353_v7  ;;  %v5880_v57 = vld [vmem:[#allocation25_spill] sm:$0xff] }
 0x4a7   : > { %v2932_v28 = vmul.f32 %v3996_v55, %v5358_v13  ;;  %4005 = vrsqrt.f32 %v2807_v54 }
 0x4a8   : > { %2993 = vst [vmem:[%s4569_s13 + $0xd0] sm:$0xff] %v2929_v4 }
 0x4a9   : > { %v3998_v26 = vpop.eup %3997  ;;  %2996 = vst [vmem:[%s4569_s13 + $0xe8] sm:$0xff] %v2932_v28  ;;  %v2718_v61 = vpop.xlane.xlu1 %2717 }
 0x4aa   : > { %v4000_v9 = vpop.eup %3999  ;;  %v2931_v16 = vmul.f32 %v3998_v26, %v5363_v31  ;;  %v2810_v3 = vmax.f32 %v2718_v61, 1e-24  ;;  %v2716_v6 = vpop.xlane.xlu0 %2715  ;;  %v5881_v61 = vld [vmem:[#allocation26_spill] sm:$0xff] }
 0x4ab   : > { %v2934_v25 = vmul.f32 %v4000_v9, %v5372_v36  ;;  %v2809_v58 = vmax.f32 %v2716_v6, 1e-24 }
 0x4ac   : > { %2995 = vst [vmem:[%s4569_s13 + $0xe0] sm:$0xff] %v2931_v16  ;;  %4007 = vrsqrt.f32 %v2810_v3  ;;  %v5882_v3 = vld [vmem:[#allocation27_spill] sm:$0xff] }
 0x4ad   : > { %v4002_v7 = vpop.eup %4001  ;;  %2998 = vst [vmem:[%s4569_s13 + $0xf8] sm:$0xff] %v2934_v25  ;;  %4009 = vrsqrt.f32 %v2809_v58  ;;  %v2722_v13 = vpop.xlane.xlu1 %2721 }
 0x4ae   : > { %v4004_v32 = vpop.eup %4003  ;;  %v2933_v12 = vmul.f32 %v4002_v7, %v5377_v1  ;;  %v2812_v46 = vmax.f32 %v2722_v13, 1e-24  ;;  %v2720_v59 = vpop.xlane.xlu0 %2719 }
 0x4af   : > { %v2936_v31 = vmul.f32 %v4004_v32, %v5382_v52  ;;  %v2811_v29 = vmax.f32 %v2720_v59, 1e-24 }
 0x4b0   : > { %2997 = vst [vmem:[%s4569_s13 + $0xf0] sm:$0xff] %v2933_v12  ;;  %4011 = vrsqrt.f32 %v2812_v46  ;;  %v5883_v12 = vld [vmem:[#allocation28_spill] sm:$0xff] }
 0x4b1   : > { %v4006_v36 = vpop.eup %4005  ;;  %3000 = vst [vmem:[%s4569_s13 + $0x108] sm:$0xff] %v2936_v31  ;;  %4013 = vrsqrt.f32 %v2811_v29  ;;  %v2726_v56 = vpop.xlane.xlu1 %2725  ;;  %v5884_v31 = vld [vmem:[#allocation29_spill] sm:$0xff] }
 0x4b2   : > { %v2935_v33 = vmul.f32 %v4006_v36, %v5396_v22  ;;  %v2814_v11 = vmax.f32 %v2726_v56, 1e-24  ;;  %v2724_v34 = vpop.xlane.xlu0 %2723 }
 0x4b3   : > { %v2813_v40 = vmax.f32 %v2724_v34, 1e-24  ;;  %v5885_v34 = vld [vmem:[#allocation30_spill] sm:$0xff] }
 0x4b4   : > { %2999 = vst [vmem:[%s4569_s13 + $0x100] sm:$0xff] %v2935_v33  ;;  %4015 = vrsqrt.f32 %v2814_v11 }
 0x4b5   : > { %4017 = vrsqrt.f32 %v2813_v40  ;;  %v2730_v1 = vpop.xlane.xlu1 %2729 }
 0x4b6   : > { %v4008_v35 = vpop.eup %4007  ;;  %v2816_v52 = vmax.f32 %v2730_v1, 1e-24  ;;  %v2728_v44 = vpop.xlane.xlu0 %2727 }
 0x4b7   : > { %v4010_v51 = vpop.eup %4009  ;;  %v2938_v5 = vmul.f32 %v4008_v35, %v5421_v17  ;;  %v2815_v60 = vmax.f32 %v2728_v44, 1e-24 }
 0x4b8   : > { %v2937_v41 = vmul.f32 %v4010_v51, %v5424_v45  ;;  %4019 = vrsqrt.f32 %v2816_v52 }
 0x4b9   : > { %3002 = vst [vmem:[%s4569_s13 + $0x118] sm:$0xff] %v2938_v5  ;;  %4021 = vrsqrt.f32 %v2815_v60  ;;  %v2734_v22 = vpop.xlane.xlu1 %2733 }
 0x4ba   : > { %v4012_v19 = vpop.eup %4011  ;;  %3001 = vst [vmem:[%s4569_s13 + $0x110] sm:$0xff] %v2937_v41  ;;  %v2818_v30 = vmax.f32 %v2734_v22, 1e-24  ;;  %v2732_v48 = vpop.xlane.xlu0 %2731 }
 0x4bb   : > { %v4014_v53 = vpop.eup %4013  ;;  %v2940_v43 = vmul.f32 %v4012_v19, %v5433_v63  ;;  %v2817_v20 = vmax.f32 %v2732_v48, 1e-24 }
 0x4bc   : > { %v2939_v17 = vmul.f32 %v4014_v53, %v5878_v47  ;;  %4023 = vrsqrt.f32 %v2818_v30 }
 0x4bd   : > { %3004 = vst [vmem:[%s4569_s13 + $0x128] sm:$0xff] %v2940_v43  ;;  %4025 = vrsqrt.f32 %v2817_v20  ;;  %v2738_v45 = vpop.xlane.xlu1 %2737 }
 0x4be   : > { %v4016_v62 = vpop.eup %4015  ;;  %3003 = vst [vmem:[%s4569_s13 + $0x120] sm:$0xff] %v2939_v17  ;;  %v2820_v23 = vmax.f32 %v2738_v45, 1e-24 }
 0x4bf   : > { %v4018_v38 = vpop.eup %4017  ;;  %v2942_v27 = vmul.f32 %v4016_v62, %v5879_v14 }
 0x4c0   : > { %v2941_v54 = vmul.f32 %v4018_v38, %v5880_v57  ;;  %4027 = vrsqrt.f32 %v2820_v23 }
 0x4c1   : > { %3006 = vst [vmem:[%s4569_s13 + $0x138] sm:$0xff] %v2942_v27  ;;  %v2736_v63 = vpop.xlane.xlu0 %2735 }
 0x4c2   : > { %v4020_v55 = vpop.eup %4019  ;;  %3005 = vst [vmem:[%s4569_s13 + $0x130] sm:$0xff] %v2941_v54  ;;  %v2819_v4 = vmax.f32 %v2736_v63, 1e-24  ;;  %v2742_v28 = vpop.xlane.xlu1 %2741 }
 0x4c3   : > { %v4022_v26 = vpop.eup %4021  ;;  %v2944_v9 = vmul.f32 %v4020_v55, %v5881_v61  ;;  %v2822_v16 = vmax.f32 %v2742_v28, 1e-24 }
 0x4c4   : > { %v2943_v6 = vmul.f32 %v4022_v26, %v5882_v3  ;;  %4029 = vrsqrt.f32 %v2819_v4 }
 0x4c5   : > { %3008 = vst [vmem:[%s4569_s13 + $0x148] sm:$0xff] %v2944_v9  ;;  %4031 = vrsqrt.f32 %v2822_v16  ;;  %v2740_v25 = vpop.xlane.xlu0 %2739 }
 0x4c6   : > { %v4024_v58 = vpop.eup %4023  ;;  %3007 = vst [vmem:[%s4569_s13 + $0x140] sm:$0xff] %v2943_v6  ;;  %v2821_v7 = vmax.f32 %v2740_v25, 1e-24  ;;  %v2746_v13 = vpop.xlane.xlu1 %2745 }
 0x4c7   : > { %v4026_v32 = vpop.eup %4025  ;;  %v2946_v46 = vmul.f32 %v4024_v58, %v5883_v12  ;;  %v2824_v59 = vmax.f32 %v2746_v13, 1e-24  ;;  %v5887_v58 = vld [vmem:[#allocation32_spill] sm:$0xff] }
 0x4c8   : > { %v2945_v29 = vmul.f32 %v4026_v32, %v5884_v31  ;;  %4033 = vrsqrt.f32 %v2821_v7 }
 0x4c9   : > { %3010 = vst [vmem:[%s4569_s13 + $0x158] sm:$0xff] %v2946_v46  ;;  %4035 = vrsqrt.f32 %v2824_v59  ;;  %v2744_v36 = vpop.xlane.xlu0 %2743  ;;  %v5888_v46 = vld [vmem:[#allocation33_spill] sm:$0xff] }
 0x4ca   : > { %v4028_v56 = vpop.eup %4027  ;;  %3009 = vst [vmem:[%s4569_s13 + $0x150] sm:$0xff] %v2945_v29  ;;  %v2823_v33 = vmax.f32 %v2744_v36, 1e-24  ;;  %v2750_v11 = vpop.xlane.xlu1 %2749 }
 0x4cb   : > { %v2948_v40 = vmul.f32 %v4028_v56, %v5885_v34  ;;  %v2826_v1 = vmax.f32 %v2750_v11, 1e-24 }
 0x4cc   : > { %4037 = vrsqrt.f32 %v2823_v33  ;;  %v5889_v33 = vld [vmem:[#allocation34_spill] sm:$0xff] }
 0x4cd   : > { %3012 = vst [vmem:[%s4569_s13 + $0x168] sm:$0xff] %v2948_v40  ;;  %4039 = vrsqrt.f32 %v2826_v1  ;;  %v2748_v35 = vpop.xlane.xlu0 %2747 }
 0x4ce   : > { %v4030_v52 = vpop.eup %4029  ;;  %v2825_v44 = vmax.f32 %v2748_v35, 1e-24  ;;  %v2754_v51 = vpop.xlane.xlu1 %2753 }
 0x4cf   : > { %v4032_v5 = vpop.eup %4031  ;;  %v2947_v60 = vmul.f32 %v4030_v52, %v5507_v18  ;;  %v2828_v41 = vmax.f32 %v2754_v51, 1e-24 }
 0x4d0   : > { %v2950_v22 = vmul.f32 %v4032_v5, %v5510_v21  ;;  %4041 = vrsqrt.f32 %v2825_v44  ;;  %v5890_v5 = vld [vmem:[#allocation35_spill] sm:$0xff] }
 0x4d1   : > { %3011 = vst [vmem:[%s4569_s13 + $0x160] sm:$0xff] %v2947_v60  ;;  %4043 = vrsqrt.f32 %v2828_v41  ;;  %v2752_v19 = vpop.xlane.xlu0 %2751  ;;  %v5891_v41 = vld [vmem:[#allocation36_spill] sm:$0xff] }
 0x4d2   : > { %v4034_v30 = vpop.eup %4033  ;;  %3014 = vst [vmem:[%s4569_s13 + $0x178] sm:$0xff] %v2950_v22  ;;  %v2827_v48 = vmax.f32 %v2752_v19, 1e-24  ;;  %v2758_v53 = vpop.xlane.xlu1 %2757 }
 0x4d3   : > { %v4036_v43 = vpop.eup %4035  ;;  %v2949_v20 = vmul.f32 %v4034_v30, %v5514_v37  ;;  %v2830_v47 = vmax.f32 %v2758_v53, 1e-24 }
 0x4d4   : > { %v2952_v18 = vmul.f32 %v4036_v43, %v5519_v42  ;;  %4045 = vrsqrt.f32 %v2827_v48 }
 0x4d5   : > { %3013 = vst [vmem:[%s4569_s13 + $0x170] sm:$0xff] %v2949_v20  ;;  %4047 = vrsqrt.f32 %v2830_v47  ;;  %v2756_v21 = vpop.xlane.xlu0 %2755 }
 0x4d6   : > { %v4038_v17 = vpop.eup %4037  ;;  %3016 = vst [vmem:[%s4569_s13 + $0x188] sm:$0xff] %v2952_v18  ;;  %v2829_v45 = vmax.f32 %v2756_v21, 1e-24 }
 0x4d7   : > { %v4040_v62 = vpop.eup %4039  ;;  %v2951_v23 = vmul.f32 %v4038_v17, %v5527_v50  ;;  %v2762_v38 = vpop.xlane.xlu1 %2761 }
 0x4d8   : > { %v2954_v14 = vmul.f32 %v4040_v62, %v5530_v39  ;;  %4049 = vrsqrt.f32 %v2829_v45  ;;  %v2832_v37 = vmax.f32 %v2762_v38, 1e-24 }
 0x4d9   : > { %3015 = vst [vmem:[%s4569_s13 + $0x180] sm:$0xff] %v2951_v23 }
 0x4da   : > { %v4042_v42 = vpop.eup %4041  ;;  %3018 = vst [vmem:[%s4569_s13 + $0x198] sm:$0xff] %v2954_v14  ;;  %4051 = vrsqrt.f32 %v2832_v37  ;;  %v2760_v27 = vpop.xlane.xlu0 %2759 }
 0x4db   : > { %v4044_v57 = vpop.eup %4043  ;;  %v2953_v54 = vmul.f32 %v4042_v42, %v5532_v10  ;;  %v2831_v63 = vmax.f32 %v2760_v27, 1e-24  ;;  %v2766_v55 = vpop.xlane.xlu1 %2765  ;;  %v5886_v10 = vld [vmem:[#allocation31_spill] sm:$0xff] }
 0x4dc   : > { %v2956_v50 = vmul.f32 %v4044_v57, %v5537_v2  ;;  %v2834_v4 = vmax.f32 %v2766_v55, 1e-24 }
 0x4dd   : > { %3017 = vst [vmem:[%s4569_s13 + $0x190] sm:$0xff] %v2953_v54  ;;  %4053 = vrsqrt.f32 %v2831_v63 }
 0x4de   : > { %v4046_v39 = vpop.eup %4045  ;;  %3020 = vst [vmem:[%s4569_s13 + $0x1a8] sm:$0xff] %v2956_v50  ;;  %4055 = vrsqrt.f32 %v2834_v4  ;;  %v2764_v28 = vpop.xlane.xlu0 %2763 }
 0x4df   : > { %v4048_v26 = vpop.eup %4047  ;;  %v2955_v61 = vmul.f32 %v4046_v39, %v5542_v8  ;;  %v2833_v9 = vmax.f32 %v2764_v28, 1e-24  ;;  %v2770_v16 = vpop.xlane.xlu1 %2769 }
 0x4e0   : > { %v2958_v3 = vmul.f32 %v4048_v26, %v5886_v10  ;;  %v2836_v6 = vmax.f32 %v2770_v16, 1e-24 }
 0x4e1   : > { %3019 = vst [vmem:[%s4569_s13 + $0x1a0] sm:$0xff] %v2955_v61  ;;  %4057 = vrsqrt.f32 %v2833_v9 }
 0x4e2   : > { %v4050_v2 = vpop.eup %4049  ;;  %3022 = vst [vmem:[%s4569_s13 + $0x1b8] sm:$0xff] %v2958_v3  ;;  %4059 = vrsqrt.f32 %v2836_v6  ;;  %v2768_v25 = vpop.xlane.xlu0 %2767 }
 0x4e3   : > { %v2957_v7 = vmul.f32 %v4050_v2, %v5887_v58  ;;  %v2835_v13 = vmax.f32 %v2768_v25, 1e-24  ;;  %v2774_v32 = vpop.xlane.xlu1 %2773 }
 0x4e4   : > { %v4052_v12 = vpop.eup %4051  ;;  %v2838_v8 = vmax.f32 %v2774_v32, 1e-24 }
 0x4e5   : > { %3021 = vst [vmem:[%s4569_s13 + $0x1b0] sm:$0xff] %v2957_v7  ;;  %v2960_v59 = vmul.f32 %v4052_v12, %v5888_v46  ;;  %4061 = vrsqrt.f32 %v2835_v13 }
 0x4e6   : > { %4063 = vrsqrt.f32 %v2838_v8  ;;  %v2772_v31 = vpop.xlane.xlu0 %2771 }
 0x4e7   : > { %v4054_v29 = vpop.eup %4053  ;;  %3024 = vst [vmem:[%s4569_s13 + $0x1c8] sm:$0xff] %v2960_v59  ;;  %v2837_v36 = vmax.f32 %v2772_v31, 1e-24 }
 0x4e8   : > { %v4056_v56 = vpop.eup %4055  ;;  %v2959_v11 = vmul.f32 %v4054_v29, %v5889_v33 }
 0x4e9   : > { %v2962_v34 = vmul.f32 %v4056_v56, %v5570_v0  ;;  %4065 = vrsqrt.f32 %v2837_v36 }
 0x4ea   : > { %3023 = vst [vmem:[%s4569_s13 + $0x1c0] sm:$0xff] %v2959_v11 }
 0x4eb   : > { %v4058_v40 = vpop.eup %4057  ;;  %3026 = vst [vmem:[%s4569_s13 + $0x1d8] sm:$0xff] %v2962_v34 }
 0x4ec   : > { %v4060_v1 = vpop.eup %4059  ;;  %v2961_v35 = vmul.f32 %v4058_v40, %v5575_v49 }
 0x4ed   : > { %v2964_v52 = vmul.f32 %v4060_v1, %v5579_v15 }
 0x4ee   : > { %3025 = vst [vmem:[%s4569_s13 + $0x1d0] sm:$0xff] %v2961_v35 }
 0x4ef   : > { %v4062_v44 = vpop.eup %4061  ;;  %3028 = vst [vmem:[%s4569_s13 + $0x1e8] sm:$0xff] %v2964_v52 }
 0x4f0   : > { %v4064_v51 = vpop.eup %4063  ;;  %v2963_v60 = vmul.f32 %v4062_v44, %v5890_v5 }
 0x4f1   : > { %v2966_v22 = vmul.f32 %v4064_v51, %v5891_v41 }
 0x4f2   : > { %3027 = vst [vmem:[%s4569_s13 + $0x1e0] sm:$0xff] %v2963_v60 }
 0x4f3   : > { %v4066_v0 = vpop.eup %4065  ;;  %3030 = vst [vmem:[%s4569_s13 + $0x1f8] sm:$0xff] %v2966_v22 }
 0x4f4   : > { %v2965_v19 = vmul.f32 %v4066_v0, %v5591_v24 }
 0x4f6   : > { %3029 = vst [vmem:[%s4569_s13 + $0x1f0] sm:$0xff] %v2965_v19 }
 0x4f7 PF: > { %s5892_s16 = sld [smem:[#allocation21_spill]]  ;;  %s3039_s1 = smul.u32 %s4265_s30, %s4269_s8 }
 0x4f8   : > { %s3046_s24 = sshll.u32 %s4569_s13, 4  ;;  %s5893_s21 = sld [smem:[#allocation43_spill]]  ;;  %s5730_s24 = int_to_ptr.vmem [resolvable:$true] %s3046_s24 }
 0x4f9   : > { %s3277_s12 = sshll.u32 %s3039_s1, 13  ;;  %s5739_s6 = scalar_lea.sflag [#allocation10], %s344_s2 }
 0x4fa   : > { %s4155_s7 = scalar_lea.vmem %s5730_s24, 8192  ;;  %s4292_s30 = smov [#allocation14]  }
 0x4fb   : > { %p4156_p7 = scmp.ne.s32.totalorder %s5730_s24, %s4155_s7  ;;  %s4159_s8 = sshll.u32 %s4292_s30, 4  ;;  %s4160_s8 = int_to_ptr.vmem [resolvable:$false] %s4159_s8 }
 0x4fc   : > { %s4161_s13 = scalar_lea.vmem %s4160_s8, 16384  ;;  %p4162_p8 = scmp.lt.s32.totalorder %s5730_s24, %s4160_s8 }
 0x4fd   : > { %p5894_p9 = scmp.ne.s32.totalorder %s5892_s16, 0  ;;  %p4163_p12 = scmp.lt.s32.totalorder %s4161_s13, %s4155_s7 }
 0x4fe   : > { %s5735_s5 = scalar_lea.hbm %s5893_s21, %s3277_s12 }
 0x4ff   : > { %p4157_p11 = pnand %p4156_p7, %p5894_p9  ;;  %p4164_p2 = por %p4163_p12, %p4162_p8 }
 0x501   : > { %p4158_p5 = pneg %p4157_p11 }
 0x503   : > { %p4165_p6 = pnand %p4164_p2, %p4158_p5 }
 0x505   : > { %4168 = shalt.err (!%p4165_p6)
}
 0x506   : > { %s4169_s2 = scalar_lea.hbm %s5735_s5, 8192  ;;  %s4173_s9 = scalar_lea.hbm %s5893_s21, 16384 }
 0x507   : > { %p4170_p10 = scmp.ne.s32.totalorder %s5735_s5, %s4169_s2  ;;  %p4174_p1 = scmp.lt.u32.totalorder %s5735_s5, %s5893_s21 }
 0x508   : > { %p4175_p3 = scmp.lt.u32.totalorder %s4173_s9, %s4169_s2  ;;  %p4177_p7 = scmp.lt.u32.totalorder %s4169_s2, %s5735_s5 }
 0x509   : > { %p4171_p0 = pnand %p4170_p10, %p5894_p9 }
 0x50a   : > { %p4176_p13 = por %p4175_p3, %p4174_p1 }
 0x50b   : > { %p4172_p4 = pneg %p4171_p0 }
 0x50c   : > { %p4178_p11 = por %p4177_p7, %p4176_p13 }
 0x50e   : > { %p4179_p5 = pnand %p4178_p11, %p4172_p4 }
 0x510   : > { %4182 = shalt.err (!%p4179_p5)
}
 0x511   : > { %s4293_s19 = smov 128   ;;  %s4294_s14 = smov 8  }
 0x512   : > { %3440 = dma.vmem_to_hbm [thread:$0]  (%p5894_p9), %s5730_s24, 8192, %s5735_s5, %s5739_s6, %s4293_s19, %s4293_s19, %s4294_s14  }
 0x513 PF: > { %s5895_s1 = sld [smem:[#allocation18_spill]]  ;;  %s5896_s12 = sld [smem:[#allocation22_spill]] }
 0x514   : > { %p3462_p8 = scmp.ge.s32.totalorder %s4281_s11, 2 }
 0x519   : > { %s3061_s23 = sand.u32 1, %s5895_s1   ;;  %p5897_p12 = scmp.ne.s32.totalorder %s5896_s12, 0 }
 0x51a   : > { %s3062_s18 = scalar_lea.sflag [#allocation10], %s3061_s23 }
 0x51b   : > { %p3454_p2 = pnand %p3462_p8, %p5897_p12 }
 0x51d   : > { %4236 = dma.done.wait (!%p3454_p2), %s3062_s18, 8192  }
 0x51e   : > { %4238 = vsyncadd (!%p3454_p2), %s3062_s18, 4294959104  ;;  %s24_s11 = sadd.s32 1, %s4281_s11   ;;  %s5898_s30 = sld [smem:[#allocation19_spill]] }
 0x51f   : > { %p21_p6 = scmp.ge.s32.totalorder %s24_s11, 6   ;;  %s5899_s8 = sld [smem:[#allocation20_spill]] }
 0x520   : > { %s5900_s24 = smov %s4245_s25  ;;  %s5901_s25 = smov %s4249_s26 }
 0x521   : > { %s5902_s26 = smov %s4505_s3  ;;  %s5903_s27 = smov %s4257_s28 }
 0x522   : > { %s5904_s28 = smov %s4261_s29  ;;  %s5905_s29 = smov %s4508_s10 }
 0x523   : > { %s5906_s9 = smov %s5909_s17  ;;  %s5907_s10 = smov %s5913_s22 }
 0x524   :  { %23 = sbr.rel (!%p21_p6) target bundleno = 18 (0x12), region = 121 }
 0x52b   :  { %3067 = vsyncpa [#allocation9], 1 }
 0x52c   :  { %3069 = vsyncpa [#allocation9 + $0x1], 1 }
 0x52d   :  { %3070 = vsyncpa [#allocation12], 1 }
 0x52e   :  { %3071 = vsyncpa [#allocation10], 1 }
 0x52f   :  { %3073 = vsyncpa [#allocation10 + $0x1], 1 }

</bundles_post_ra>
